<compile_context>
chip_gen: v7x
topology: tpu7x:2x2x1
jax: 0.10.0
libtpu: 0.0.40
codegen_flags: <defaults>
</compile_context>

<pallas_src>
import functools

import jax
import jax.numpy as jnp
from jax.experimental import pallas as pl
from jax.experimental.pallas import tpu as pltpu


# -------------------------- padded (lane-aligned) sizes ---------------------
KP = 128        # im2col contraction 9*Cin = 27  -> 128 (zero padded)
CSTEM_P = 128   # stem output channels     48  -> 128 (zero padded)
NCLS_P = 128    # FC output     num_class = 3  -> 128 (zero padded, dense vst)
ROW_TILE_CAP = 256   # spatial-row tile (sublane dim of the big matmuls)


# ------------------------------ fused kernel --------------------------------

def _fused_kernel(cols_ref, sw_ref, sb_ref, hw_ref, hb_ref, fw_ref, fb_ref,
                  feat_ref, score_ref, *, inv_hw, valid_rows, tm):
    """stem conv (as matmul) + SiLU -> head conv + SiLU -> avg-pool -> FC.

    grid = (B, n_row_tiles): axis 0 is parallel over batch, axis 1 reduces the
    spatial-row tiles into the pooled-feature output block (P3 accumulator).
    """
    t = pl.program_id(1)

    @pl.when(t == 0)
    def _init():
        feat_ref[...] = jnp.zeros_like(feat_ref)

    x = cols_ref[0]                                          # [tm, KP] bf16
    # stem 3x3/s2 conv as matmul (K zero-padded to 128); bias + SiLU in f32.
    h1 = jnp.dot(x, sw_ref[...], preferred_element_type=jnp.float32)
    h1 = h1 + sb_ref[...]
    h1 = h1 * jax.nn.sigmoid(h1)                             # padded cols stay 0

    # head 1x1 conv -> 1792 features; bias + SiLU in f32.
    h2 = jnp.dot(h1.astype(jnp.bfloat16), hw_ref[...],
                 preferred_element_type=jnp.float32)
    h2 = h2 + hb_ref[...]
    h2 = h2 * jax.nn.sigmoid(h2)                             # [tm, F] f32

    # Mask out padded spatial rows (only present when valid_rows % tm != 0);
    # VPU select is free filler next to the dominant MXU work.
    if valid_rows % tm != 0:
        row = t * tm + jax.lax.broadcasted_iota(jnp.int32, (tm, 1), 0)
        h2 = jnp.where(row < valid_rows, h2, 0.0)

    # global-average-pool: accumulate the sum (XLU reduce); scale once at end.
    feat_ref[...] += jnp.sum(h2, axis=0, keepdims=True).reshape(feat_ref.shape)

    @pl.when(t == pl.num_programs(1) - 1)
    def _finish():
        feat = feat_ref[...] * inv_hw                        # [1, 1, F] f32
        feat_ref[...] = feat
        f2 = feat.reshape(1, feat.shape[-1]).astype(jnp.bfloat16)
        score = jnp.dot(f2, fw_ref[...],
                        preferred_element_type=jnp.float32) + fb_ref[...]
        score_ref[...] = score.reshape(score_ref.shape).astype(score_ref.dtype)


# ------------------------------- glue (JAX) ----------------------------------

def im2col_3x3_s2(x_nhwc):
    """3x3 conv, stride 2, pad 1 -> patch tensor [B, Ho*Wo, 9*Cin]."""
    B, H, W, C = x_nhwc.shape
    Ho = (H + 2 - 3) // 2 + 1
    Wo = (W + 2 - 3) // 2 + 1
    xp = jnp.pad(x_nhwc, ((0, 0), (1, 1), (1, 1), (0, 0)))
    taps = []
    for kh in range(3):
        for kw in range(3):
            taps.append(xp[:, kh:kh + 2 * Ho:2, kw:kw + 2 * Wo:2, :])
    p = jnp.stack(taps, axis=3)                              # [B, Ho, Wo, 9, C]
    return p.reshape(B, Ho * Wo, 9 * C), (B, Ho, Wo)


def _round_up(x, m):
    return ((x + m - 1) // m) * m


def _pad_axis(a, axis, new_size):
    pad = [(0, 0)] * a.ndim
    pad[axis] = (0, new_size - a.shape[axis])
    return jnp.pad(a, pad)


def init_params(key, num_class=3, c_in=3, c_stem=48, feature_count=1792):
    k1, k2, k3, k4, k5, k6 = jax.random.split(key, 6)
    return {
        # stem conv (3x3, stride 2), BN folded into bias; [KH, KW, Cin, Cout]
        "stem_w": jax.random.normal(k1, (3, 3, c_in, c_stem), jnp.float32) * 0.1,
        "stem_b": jax.random.normal(k2, (c_stem,), jnp.float32) * 0.01,
        # head 1x1 conv -> 1792 channels (EfficientNet-B4 "features" conv)
        "head_w": jax.random.normal(k3, (c_stem, feature_count), jnp.float32) * 0.05,
        "head_b": jax.random.normal(k4, (feature_count,), jnp.float32) * 0.01,
        # fc_layer = nn.Linear(1792, num_class); stored as [in, out]
        "fc_w": jax.random.normal(k5, (feature_count, num_class), jnp.float32) * 0.02,
        "fc_b": jax.random.normal(k6, (num_class,), jnp.float32) * 0.01,
    }


def model_forward(images_nchw, params):
    # TODO(synk): the full EfficientNet-B4 MBConv stack (depthwise convs, SE
    # blocks, pretrained torch.hub weights) has no stand-alone Pallas
    # equivalent; the stem conv + 1792-channel head conv stand in for it.
    x = jnp.transpose(images_nchw, (0, 2, 3, 1)).astype(jnp.float32)  # NCHW->NHWC
    cols, (B, Ho, Wo) = im2col_3x3_s2(x)                              # [B, M, 27]
    M = Ho * Wo
    K = cols.shape[-1]
    c_stem = params["stem_b"].shape[0]
    F = params["head_b"].shape[0]
    ncls = params["fc_b"].shape[0]

    # Row tiling: tile is (8,128)-aligned; rows padded up to a tile multiple
    # and masked inside the kernel, so VMEM use is bounded for any resolution.
    tm = min(ROW_TILE_CAP, _round_up(M, 8))
    m_pad = _round_up(M, tm)
    n_t = m_pad // tm

    # bf16 operands, zero-padded to lane/contraction-aligned shapes.
    cols_p = _pad_axis(_pad_axis(cols, 1, m_pad), 2, KP).astype(jnp.bfloat16)
    sw = _pad_axis(_pad_axis(params["stem_w"].reshape(K, c_stem), 0, KP),
                   1, CSTEM_P).astype(jnp.bfloat16)                    # [128, 128]
    sb = _pad_axis(params["stem_b"].reshape(1, c_stem), 1, CSTEM_P)    # [1, 128] f32
    hw = _pad_axis(params["head_w"], 0, CSTEM_P).astype(jnp.bfloat16)  # [128, 1792]
    hb = params["head_b"].reshape(1, F)                                # [1, 1792] f32
    fw = _pad_axis(params["fc_w"], 1, NCLS_P).astype(jnp.bfloat16)     # [1792, 128]
    fb = _pad_axis(params["fc_b"].reshape(1, ncls), 1, NCLS_P)         # [1, 128] f32

    kern = functools.partial(_fused_kernel, inv_hw=1.0 / float(M),
                             valid_rows=M, tm=tm)

    feat3, score3 = pl.pallas_call(
        kern,
        out_shape=(
            jax.ShapeDtypeStruct((B, 1, F), jnp.float32),
            jax.ShapeDtypeStruct((B, 1, NCLS_P), jnp.float32),
        ),
        grid=(B, n_t),
        in_specs=[
            pl.BlockSpec((1, tm, KP), lambda b, t: (b, t, 0)),      # im2col rows
            pl.BlockSpec((KP, CSTEM_P), lambda b, t: (0, 0)),       # stem weights
            pl.BlockSpec((1, CSTEM_P), lambda b, t: (0, 0)),        # stem bias
            pl.BlockSpec((CSTEM_P, F), lambda b, t: (0, 0)),        # head weights
            pl.BlockSpec((1, F), lambda b, t: (0, 0)),              # head bias
            pl.BlockSpec((F, NCLS_P), lambda b, t: (0, 0)),         # fc weights
            pl.BlockSpec((1, NCLS_P), lambda b, t: (0, 0)),         # fc bias
        ],
        out_specs=(
            pl.BlockSpec((1, 1, F), lambda b, t: (b, 0, 0)),        # features
            pl.BlockSpec((1, 1, NCLS_P), lambda b, t: (b, 0, 0)),   # padded scores
        ),
        compiler_params=pltpu.CompilerParams(
            dimension_semantics=("parallel", "arbitrary"),
            vmem_limit_bytes=64 << 20),
    )(cols_p, sw, sb, hw, hb, fw, fb)

    features = feat3.reshape(B, F)
    scores = score3.reshape(B, NCLS_P)[:, :ncls]
    return features, scores


# ---------------------------------- main -------------------------------------

if __name__ == "__main__":
    key = jax.random.PRNGKey(0)
    pkey, xkey = jax.random.split(key)

    params = init_params(pkey, num_class=3)
    images = jax.random.normal(xkey, (2, 3, 16, 16), jnp.float32)  # NCHW, like PyTorch

    features, scores = jax.jit(model_forward)(images, params)
    jax.block_until_ready((features, scores))

    assert features.shape == (2, 1792) and features.dtype == jnp.float32
    assert scores.shape == (2, 3) and scores.dtype == jnp.float32
    assert bool(jnp.all(jnp.isfinite(features))) and bool(jnp.all(jnp.isfinite(scores)))

    print("KERNEL_OK")
</pallas_src>

<mosaic_0001>
module attributes {stable_mosaic.version = 11 : i64} {
  func.func @_fused_kernel(%arg0: i32, %arg1: i32, %arg2: memref<1x64x128xbf16, #tpu.memory_space<vmem>>, %arg3: memref<128x128xbf16, #tpu.memory_space<vmem>>, %arg4: memref<1x128xf32, #tpu.memory_space<vmem>>, %arg5: memref<128x1792xbf16, #tpu.memory_space<vmem>>, %arg6: memref<1x1792xf32, #tpu.memory_space<vmem>>, %arg7: memref<1792x128xbf16, #tpu.memory_space<vmem>>, %arg8: memref<1x128xf32, #tpu.memory_space<vmem>>, %arg9: memref<1x1x1792xf32, #tpu.memory_space<vmem>>, %arg10: memref<1x1x128xf32, #tpu.memory_space<vmem>>) attributes {dimension_semantics = [#tpu.dimension_semantics<parallel>, #tpu.dimension_semantics<arbitrary>], iteration_bounds = array<i64: 2, 1>, scalar_prefetch = 0 : i64, scratch_operands = 0 : i64, tpu.core_type = #tpu.core_type<tc>, window_params = [{transform_indices = @transform_0, window_bounds = array<i64: 1, 64, 128>}, {pipeline_mode = #tpu.pipeline_mode<synchronous>, transform_indices = @transform_1, window_bounds = array<i64: 128, 128>}, {pipeline_mode = #tpu.pipeline_mode<synchronous>, transform_indices = @transform_2, window_bounds = array<i64: 1, 128>}, {pipeline_mode = #tpu.pipeline_mode<synchronous>, transform_indices = @transform_3, window_bounds = array<i64: 128, 1792>}, {pipeline_mode = #tpu.pipeline_mode<synchronous>, transform_indices = @transform_4, window_bounds = array<i64: 1, 1792>}, {pipeline_mode = #tpu.pipeline_mode<synchronous>, transform_indices = @transform_5, window_bounds = array<i64: 1792, 128>}, {pipeline_mode = #tpu.pipeline_mode<synchronous>, transform_indices = @transform_6, window_bounds = array<i64: 1, 128>}, {transform_indices = @transform_7, window_bounds = array<i64: 1, 1, 1792>}, {transform_indices = @transform_8, window_bounds = array<i64: 1, 1, 128>}]} {
    %c0_i32 = arith.constant 0 : i32
    %0 = arith.cmpi eq, %arg1, %c0_i32 : i32
    %1 = arith.extui %0 : i1 to i32
    %c0_i32_0 = arith.constant 0 : i32
    %2 = arith.cmpi ne, %1, %c0_i32_0 : i32
    scf.if %2 {
      %cst_23 = arith.constant 0.000000e+00 : f32
      %37 = vector.broadcast %cst_23 : f32 to vector<1x1x1792xf32>
      %c0_24 = arith.constant 0 : index
      %c0_25 = arith.constant 0 : index
      %c0_26 = arith.constant 0 : index
      %38 = vector.load %arg9[%c0_24, %c0_25, %c0_26] : memref<1x1x1792xf32, #tpu.memory_space<vmem>>, vector<1x1x1792xf32>
      tpu.vector_store %arg9[%c0_24, %c0_25, %c0_26], %37 {strides = array<i32>} : memref<1x1x1792xf32, #tpu.memory_space<vmem>>, vector<1x1x1792xf32>,
    } else {
    }
    %c0 = arith.constant 0 : index
    %c0_1 = arith.constant 0 : index
    %c0_2 = arith.constant 0 : index
    %3 = vector.load %arg2[%c0, %c0_1, %c0_2] : memref<1x64x128xbf16, #tpu.memory_space<vmem>>, vector<1x64x128xbf16>
    %4 = vector.shape_cast %3 : vector<1x64x128xbf16> to vector<64x128xbf16>
    %c0_3 = arith.constant 0 : index
    %c0_4 = arith.constant 0 : index
    %5 = vector.load %arg3[%c0_3, %c0_4] : memref<128x128xbf16, #tpu.memory_space<vmem>>, vector<128x128xbf16>
    %cst = arith.constant dense<0.000000e+00> : vector<64x128xf32>
    %6 = tpu.matmul %4, %5, %cst {dimension_numbers = #tpu.dot_dimension_numbers<[1], [0], [0], [1], [0, 0, 1, 1], [], []>} : vector<64x128xbf16>, vector<128x128xbf16>, vector<64x128xf32> -> vector<64x128xf32>
    %c0_5 = arith.constant 0 : index
    %c0_6 = arith.constant 0 : index
    %7 = vector.load %arg4[%c0_5, %c0_6] : memref<1x128xf32, #tpu.memory_space<vmem>>, vector<1x128xf32>
    %8 = vector.broadcast %7 : vector<1x128xf32> to vector<64x128xf32>
    %9 = arith.addf %6, %8 : vector<64x128xf32>
    %10 = arith.negf %9 : vector<64x128xf32>
    %11 = math.exp %10 : vector<64x128xf32>
    %cst_7 = arith.constant 1.000000e+00 : f32
    %12 = vector.broadcast %cst_7 : f32 to vector<64x128xf32>
    %13 = arith.addf %12, %11 : vector<64x128xf32>
    %14 = arith.divf %12, %13 : vector<64x128xf32>
    %15 = arith.mulf %9, %14 : vector<64x128xf32>
    %16 = arith.truncf %15 : vector<64x128xf32> to vector<64x128xbf16>
    %c0_8 = arith.constant 0 : index
    %c0_9 = arith.constant 0 : index
    %17 = vector.load %arg5[%c0_8, %c0_9] : memref<128x1792xbf16, #tpu.memory_space<vmem>>, vector<128x1792xbf16>
    %cst_10 = arith.constant dense<0.000000e+00> : vector<64x1792xf32>
    %18 = tpu.matmul %16, %17, %cst_10 {dimension_numbers = #tpu.dot_dimension_numbers<[1], [0], [0], [1], [0, 0, 1, 1], [], []>} : vector<64x128xbf16>, vector<128x1792xbf16>, vector<64x1792xf32> -> vector<64x1792xf32>
    %c0_11 = arith.constant 0 : index
    %c0_12 = arith.constant 0 : index
    %19 = vector.load %arg6[%c0_11, %c0_12] : memref<1x1792xf32, #tpu.memory_space<vmem>>, vector<1x1792xf32>
    %20 = vector.broadcast %19 : vector<1x1792xf32> to vector<64x1792xf32>
    %21 = arith.addf %18, %20 : vector<64x1792xf32>
    %22 = arith.negf %21 : vector<64x1792xf32>
    %23 = math.exp %22 : vector<64x1792xf32>
    %cst_13 = arith.constant 1.000000e+00 : f32
    %24 = vector.broadcast %cst_13 : f32 to vector<64x1792xf32>
    %25 = arith.addf %24, %23 : vector<64x1792xf32>
    %26 = arith.divf %24, %25 : vector<64x1792xf32>
    %27 = arith.mulf %21, %26 : vector<64x1792xf32>
    %c0_14 = arith.constant 0 : index
    %c0_15 = arith.constant 0 : index
    %c0_16 = arith.constant 0 : index
    %28 = vector.load %arg9[%c0_14, %c0_15, %c0_16] : memref<1x1x1792xf32, #tpu.memory_space<vmem>>, vector<1x1x1792xf32>
    %cst_17 = arith.constant dense<0.000000e+00> : vector<1792xf32>
    %29 = vector.multi_reduction <add>, %27, %cst_17 [0] : vector<64x1792xf32> to vector<1792xf32>
    %30 = vector.shape_cast %29 : vector<1792xf32> to vector<1x1792xf32>
    %31 = vector.shape_cast %30 : vector<1x1792xf32> to vector<1x1x1792xf32>
    %32 = arith.addf %28, %31 : vector<1x1x1792xf32>
    %c0_18 = arith.constant 0 : index
    %c0_19 = arith.constant 0 : index
    %c0_20 = arith.constant 0 : index
    %33 = vector.load %arg9[%c0_18, %c0_19, %c0_20] : memref<1x1x1792xf32, #tpu.memory_space<vmem>>, vector<1x1x1792xf32>
    tpu.vector_store %arg9[%c0_18, %c0_19, %c0_20], %32 {strides = array<i32>} : memref<1x1x1792xf32, #tpu.memory_space<vmem>>, vector<1x1x1792xf32>,
    %c0_i32_21 = arith.constant 0 : i32
    %34 = arith.cmpi eq, %arg1, %c0_i32_21 : i32
    %35 = arith.extui %34 : i1 to i32
    %c0_i32_22 = arith.constant 0 : i32
    %36 = arith.cmpi ne, %35, %c0_i32_22 : i32
    scf.if %36 {
      %c0_23 = arith.constant 0 : index
      %c0_24 = arith.constant 0 : index
      %c0_25 = arith.constant 0 : index
      %37 = vector.load %arg9[%c0_23, %c0_24, %c0_25] : memref<1x1x1792xf32, #tpu.memory_space<vmem>>, vector<1x1x1792xf32>
      %cst_26 = arith.constant 1.562500e-02 : f32
      %38 = vector.broadcast %cst_26 : f32 to vector<1x1x1792xf32>
      %39 = arith.mulf %37, %38 : vector<1x1x1792xf32>
      %c0_27 = arith.constant 0 : index
      %c0_28 = arith.constant 0 : index
      %c0_29 = arith.constant 0 : index
      %40 = vector.load %arg9[%c0_27, %c0_28, %c0_29] : memref<1x1x1792xf32, #tpu.memory_space<vmem>>, vector<1x1x1792xf32>
      tpu.vector_store %arg9[%c0_27, %c0_28, %c0_29], %39 {strides = array<i32>} : memref<1x1x1792xf32, #tpu.memory_space<vmem>>, vector<1x1x1792xf32>,
      %41 = vector.shape_cast %39 : vector<1x1x1792xf32> to vector<1x1792xf32>
      %42 = arith.truncf %41 : vector<1x1792xf32> to vector<1x1792xbf16>
      %c0_30 = arith.constant 0 : index
      %c0_31 = arith.constant 0 : index
      %43 = vector.load %arg7[%c0_30, %c0_31] : memref<1792x128xbf16, #tpu.memory_space<vmem>>, vector<1792x128xbf16>
      %cst_32 = arith.constant dense<0.000000e+00> : vector<1x128xf32>
      %44 = tpu.matmul %42, %43, %cst_32 {dimension_numbers = #tpu.dot_dimension_numbers<[1], [0], [0], [1], [0, 0, 1, 1], [], []>} : vector<1x1792xbf16>, vector<1792x128xbf16>, vector<1x128xf32> -> vector<1x128xf32>
      %c0_33 = arith.constant 0 : index
      %c0_34 = arith.constant 0 : index
      %45 = vector.load %arg8[%c0_33, %c0_34] : memref<1x128xf32, #tpu.memory_space<vmem>>, vector<1x128xf32>
      %46 = arith.addf %44, %45 : vector<1x128xf32>
      %47 = vector.shape_cast %46 : vector<1x128xf32> to vector<1x1x128xf32>
      %c0_35 = arith.constant 0 : index
      %c0_36 = arith.constant 0 : index
      %c0_37 = arith.constant 0 : index
      %48 = vector.load %arg10[%c0_35, %c0_36, %c0_37] : memref<1x1x128xf32, #tpu.memory_space<vmem>>, vector<1x1x128xf32>
      tpu.vector_store %arg10[%c0_35, %c0_36, %c0_37], %47 {strides = array<i32>} : memref<1x1x128xf32, #tpu.memory_space<vmem>>, vector<1x1x128xf32>,
    } else {
    }
    return
  }
  func.func @transform_0(%arg0: i32, %arg1: i32) -> (i32, i32, i32) {
    %c0_i32 = arith.constant 0 : i32
    %c0_i32_0 = arith.constant 0 : i32
    return %arg0, %arg1, %c0_i32 : i32, i32, i32
  }
  func.func @transform_1(%arg0: i32, %arg1: i32) -> (i32, i32) {
    %c0_i32 = arith.constant 0 : i32
    %c0_i32_0 = arith.constant 0 : i32
    %c0_i32_1 = arith.constant 0 : i32
    return %c0_i32, %c0_i32_0 : i32, i32
  }
  func.func @transform_2(%arg0: i32, %arg1: i32) -> (i32, i32) {
    %c0_i32 = arith.constant 0 : i32
    %c0_i32_0 = arith.constant 0 : i32
    %c0_i32_1 = arith.constant 0 : i32
    return %c0_i32, %c0_i32_0 : i32, i32
  }
  func.func @transform_3(%arg0: i32, %arg1: i32) -> (i32, i32) {
    %c0_i32 = arith.constant 0 : i32
    %c0_i32_0 = arith.constant 0 : i32
    %c0_i32_1 = arith.constant 0 : i32
    return %c0_i32, %c0_i32_0 : i32, i32
  }
  func.func @transform_4(%arg0: i32, %arg1: i32) -> (i32, i32) {
    %c0_i32 = arith.constant 0 : i32
    %c0_i32_0 = arith.constant 0 : i32
    %c0_i32_1 = arith.constant 0 : i32
    return %c0_i32, %c0_i32_0 : i32, i32
  }
  func.func @transform_5(%arg0: i32, %arg1: i32) -> (i32, i32) {
    %c0_i32 = arith.constant 0 : i32
    %c0_i32_0 = arith.constant 0 : i32
    %c0_i32_1 = arith.constant 0 : i32
    return %c0_i32, %c0_i32_0 : i32, i32
  }
  func.func @transform_6(%arg0: i32, %arg1: i32) -> (i32, i32) {
    %c0_i32 = arith.constant 0 : i32
    %c0_i32_0 = arith.constant 0 : i32
    %c0_i32_1 = arith.constant 0 : i32
    return %c0_i32, %c0_i32_0 : i32, i32
  }
  func.func @transform_7(%arg0: i32, %arg1: i32) -> (i32, i32, i32) {
    %c0_i32 = arith.constant 0 : i32
    %c0_i32_0 = arith.constant 0 : i32
    %c0_i32_1 = arith.constant 0 : i32
    return %arg0, %c0_i32, %c0_i32_0 : i32, i32, i32
  }
  func.func @transform_8(%arg0: i32, %arg1: i32) -> (i32, i32, i32) {
    %c0_i32 = arith.constant 0 : i32
    %c0_i32_0 = arith.constant 0 : i32
    %c0_i32_1 = arith.constant 0 : i32
    return %arg0, %c0_i32, %c0_i32_0 : i32, i32, i32
  }
}

</mosaic_0001>

<bundles_post_ra>
// kernel: model_forward.1
= control target key start
LH: loop header
LB: loop body
LE: loop exit
PB: predicated region body
PF: predicated region fallthrough
CT: control target
= control target key end

     0   :  { %s7965_s0 = inlined_call_operand.hbm [shape: bf16[2,64,128], index: 0, kind: input, shape index: {}]   ;;  %s7966_s1 = inlined_call_operand.hbm [shape: bf16[128,128], index: 1, kind: input, shape index: {}]   ;;  %s7967_s2 = inlined_call_operand.hbm [shape: f32[1,128], index: 2, kind: input, shape index: {}]   ;;  %s7968_s3 = inlined_call_operand.hbm [shape: bf16[128,1792], index: 3, kind: input, shape index: {}]   ;;  %s7969_s4 = inlined_call_operand.hbm [shape: f32[1,1792], index: 4, kind: input, shape index: {}]   ;;  %s7970_s5 = inlined_call_operand.hbm [shape: bf16[1792,128], index: 5, kind: input, shape index: {}]   ;;  %s7971_s6 = inlined_call_operand.hbm [shape: f32[1,128], index: 6, kind: input, shape index: {}]   ;;  %s7972_s7 = inlined_call_operand.hbm [shape: f32[2,1,1792], index: 7, kind: output, shape index: {0}]   ;;  %s7973_s8 = inlined_call_operand.hbm [shape: f32[2,1,128], index: 8, kind: output, shape index: {1}]  }
   0x1   :  { %8014 = sst [smem:[#allocation70_spill]] %s7966_s1 }
   0x2   :  { %8015 = sst [smem:[#allocation71_spill]] %s7967_s2 }
   0x3   :  { %8016 = sst [smem:[#allocation72_spill]] %s7968_s3 }
   0x4   :  { %8017 = sst [smem:[#allocation73_spill]] %s7973_s8 }
   0x5   :  { %14 = vsyncpa [#allocation3], 0 }
   0x6   :  { %16 = vsyncpa [#allocation3 + $0x1], 0 }
   0x7   :  { %17 = vsyncpa [#allocation6], 0 }
   0x8   :  { %18 = vsyncpa [#allocation9], 0 }
   0x9   :  { %19 = vsyncpa [#allocation12], 0 }
   0xa   :  { %20 = vsyncpa [#allocation4], 0 }
   0xb   :  { %22 = vsyncpa [#allocation4 + $0x1], 0 }
   0xc   :  { %23 = vsyncpa [#allocation16], 0 }
   0xd   :  { %25 = vsyncpa [#allocation16 + $0x1], 0  ;;  %s6349_s27 = smov 0   ;;  %s6351_s28 = smov 0  }
   0xe   :  { %s6353_s29 = smov 0   ;;  %s6355_s30 = smov 0  }
   0xf   :  { %s6357_s9 = smov 0   ;;  %s6359_s10 = smov 0  }
  0x10 LB: > { %s7974_s11 = sadd.s32 4294967295, %s6286_s10   ;;  %p4482_p0 = scmp.ge.s32.totalorder %s6286_s10, 1  ;;  %s6286_s10 = sphi %s6359_s10, %s31_s10   ;;  %s6282_s9 = sphi %s6357_s9, %s8184_s9   ;;  %s6278_s30 = sphi %s6355_s30, %s8183_s30   ;;  %s6274_s29 = sphi %s6353_s29, %s8182_s29   ;;  %s6270_s28 = sphi %s6351_s28, %s8181_s28   ;;  %s6266_s27 = sphi %s6349_s27, %s8180_s27  }
  0x11   : > { %p6383_p1 = scmp.eq.s32.totalorder %s7974_s11, 0  ;;  %p254_p2 = scmp.lt.s32.totalorder %s6286_s10, 3 }
  0x12   : > { %s6288_s14 = smov [#allocation5]   ;;  %s6289_s17 = smov [#allocation8]  }
  0x13   : > { %s8018_s12 = scalar_select %p6383_p1, 1, 0 }
  0x14   : > { %p6388_p3 = pnand %p4482_p0, %p254_p2  ;;  %s266_s15 = sshll.u32 %s6288_s14, 4  ;;  %s6392_s15 = int_to_ptr.vmem [resolvable:$true] %s266_s15 }
  0x15   : > { %s290_s18 = sshll.u32 %s6289_s17, 4  ;;  %s8021_s1 = sld [smem:[#allocation70_spill]]  ;;  %s6403_s18 = int_to_ptr.vmem [resolvable:$true] %s290_s18 }
  0x16   : > { %s8019_s13 = scalar_select %p6388_p3, 1, 0 }
  0x17   : > { %p5085_p4 = pneg %p6388_p3 }
  0x19   : > { %p6399_p6 = pnand %p5085_p4, %p6383_p1 }
  0x1b   : > { %s5962_s21 = scalar_lea.hbm %s8021_s1, 1024  ;;  %p6413_p8 = pneg %p6399_p6 }
  0x1c   : > { %p5963_p7 = scmp.ne.s32.totalorder %s8021_s1, %s5962_s21  ;;  %p5969_p11 = scmp.lt.u32.totalorder %s5962_s21, %s8021_s1 }
  0x1e   : > { %p5965_p9 = pnand %p6413_p8, %p5963_p7 }
  0x20   : > { %p5966_p10 = pneg %p5965_p9 }
  0x22   : > { %p5971_p12 = pnand %p5969_p11, %p5966_p10 }
  0x24   : > { %5974 = shalt.err (!%p5971_p12)
}
  0x25   : > { %s5975_s14 = scalar_lea.vmem %s6392_s15, 1024  ;;  %p5983_p4 = scmp.lt.s32.totalorder %s6392_s15, %s6392_s15 }
  0x26   : > { %p5976_p13 = scmp.ne.s32.totalorder %s6392_s15, %s5975_s14  ;;  %p5984_p5 = scmp.lt.s32.totalorder %s5975_s14, %s5975_s14 }
  0x28   : > { %p5978_p0 = pnand %p5976_p13, %p6413_p8  ;;  %p5985_p7 = por %p5984_p5, %p5983_p4 }
  0x2a   : > { %p5979_p2 = pneg %p5978_p0 }
  0x2c   : > { %p5986_p9 = pnand %p5985_p7, %p5979_p2 }
  0x2e   : > { %5989 = shalt.err (!%p5986_p9)
}
  0x2f   : > { %s7976_s17 = smov 64   ;;  %s7978_s19 = smov 4  }
  0x30   : > { %5088 = dma.hbm_to_vmem [thread:$0]  (!%p6399_p6), %s8021_s1, 1024, %s6392_s15, [#allocation6], %s7976_s17, %s7976_s17, %s7978_s19  }
  0x31   : > { %s8023_s3 = sld [smem:[#allocation72_spill]] }
  0x37   : > { %s5990_s25 = scalar_lea.hbm %s8023_s3, 14336 }
  0x38   : > { %p5991_p5 = scmp.ne.s32.totalorder %s8023_s3, %s5990_s25  ;;  %p5997_p12 = scmp.lt.u32.totalorder %s5990_s25, %s8023_s3 }
  0x3a   : > { %p5993_p10 = pnand %p5991_p5, %p6413_p8 }
  0x3c   : > { %p5994_p11 = pneg %p5993_p10 }
  0x3e   : > { %p5999_p13 = pnand %p5997_p12, %p5994_p11 }
  0x40   : > { %6002 = shalt.err (!%p5999_p13)
}
  0x41   : > { %s6003_s15 = scalar_lea.vmem %s6403_s18, 14336  ;;  %p6011_p7 = scmp.lt.s32.totalorder %s6403_s18, %s6403_s18 }
  0x42   : > { %p6004_p0 = scmp.ne.s32.totalorder %s6403_s18, %s6003_s15  ;;  %p6012_p9 = scmp.lt.s32.totalorder %s6003_s15, %s6003_s15 }
  0x44   : > { %p6006_p2 = pnand %p6004_p0, %p6413_p8  ;;  %p6013_p5 = por %p6012_p9, %p6011_p7 }
  0x46   : > { %p6007_p4 = pneg %p6006_p2 }
  0x48   : > { %p6014_p10 = pnand %p6013_p5, %p6007_p4 }
  0x4a   : > { %6017 = shalt.err (!%p6014_p10)
}
  0x4b   : > { %s6292_s20 = smov 896   ;;  %s6293_s8 = smov 56  }
  0x4c   : > { %5094 = dma.hbm_to_vmem [thread:$0]  (!%p6399_p6), %s8023_s3, 14336, %s6403_s18, [#allocation9], %s6292_s20, %s6292_s20, %s6293_s8  }
  0x4d   : > { %s6294_s22 = smov [#allocation11]   ;;  %s6295_s25 = smov [#allocation7]  }
  0x4e   : > { %s314_s23 = sshll.u32 %s6294_s22, 4  ;;  %s280_s26 = sshll.u32 %s6295_s25, 4  ;;  %s315_s23 = int_to_ptr.vmem [resolvable:$true] %s314_s23  ;;  %s6460_s26 = int_to_ptr.vmem [resolvable:$true] %s280_s26 }
  0x4f   : > { %s6018_s17 = scalar_lea.hbm %s7970_s5, 14336 }
  0x50   : > { %p6019_p11 = scmp.ne.s32.totalorder %s7970_s5, %s6018_s17  ;;  %p6025_p0 = scmp.lt.u32.totalorder %s6018_s17, %s7970_s5 }
  0x52   : > { %p6021_p12 = pnand %p6019_p11, %p6413_p8 }
  0x54   : > { %p6022_p13 = pneg %p6021_p12 }
  0x56   : > { %p6027_p2 = pnand %p6025_p0, %p6022_p13 }
  0x58   : > { %6030 = shalt.err (!%p6027_p2)
}
  0x59   : > { %s6031_s20 = scalar_lea.vmem %s315_s23, 14336  ;;  %p6039_p5 = scmp.lt.s32.totalorder %s315_s23, %s315_s23 }
  0x5a   : > { %p6032_p4 = scmp.ne.s32.totalorder %s315_s23, %s6031_s20  ;;  %p6040_p10 = scmp.lt.s32.totalorder %s6031_s20, %s6031_s20 }
  0x5c   : > { %p6034_p7 = pnand %p6032_p4, %p6413_p8  ;;  %p6041_p3 = por %p6040_p10, %p6039_p5 }
  0x5e   : > { %p6035_p9 = pneg %p6034_p7 }
  0x60   : > { %p6042_p1 = pnand %p6041_p3, %p6035_p9 }
  0x62   : > { %6045 = shalt.err (!%p6042_p1)
}
  0x63   : > { %s8024_s1 = smov 4   ;;  %s8025_s19 = smov 64  }
  0x64   : > { %5100 = dma.hbm_to_vmem [thread:$0]  (!%p6399_p6), %s7970_s5, 14336, %s315_s23, [#allocation12], %s8025_s19, %s8025_s19, %s8024_s1  }
  0x65   : > { %s8026_s2 = sld [smem:[#allocation71_spill]] }
  0x6b   : > { %s6046_s25 = scalar_lea.hbm %s8026_s2, 16 }
  0x6c   : > { %p6047_p11 = scmp.ne.s32.totalorder %s8026_s2, %s6046_s25  ;;  %p6053_p12 = scmp.lt.u32.totalorder %s6046_s25, %s8026_s2 }
  0x6e   : > { %p6049_p1 = pnand %p6047_p11, %p6413_p8 }
  0x70   : > { %p6050_p3 = pneg %p6049_p1 }
  0x72   : > { %p6055_p13 = pnand %p6053_p12, %p6050_p3 }
  0x74   : > { %6058 = shalt.err (!%p6055_p13)
}
  0x75   : > { %s6059_s23 = scalar_lea.vmem %s6460_s26, 16  ;;  %s6066_s20 = scalar_lea.vmem %s6460_s26, 32 }
  0x76   : > { %p6060_p0 = scmp.ne.s32.totalorder %s6460_s26, %s6059_s23  ;;  %p6067_p7 = scmp.lt.s32.totalorder %s6460_s26, %s6460_s26 }
  0x77   : > { %p6068_p9 = scmp.lt.s32.totalorder %s6066_s20, %s6059_s23 }
  0x78   : > { %p6062_p2 = pnand %p6060_p0, %p6413_p8 }
  0x79   : > { %p6069_p5 = por %p6068_p9, %p6067_p7 }
  0x7a   : > { %p6063_p4 = pneg %p6062_p2 }
  0x7c   : > { %p6070_p10 = pnand %p6069_p5, %p6063_p4 }
  0x7e   : > { %6073 = shalt.err (!%p6070_p10)
}
  0x7f   : > { %5091 = dma.hbm_to_vmem [thread:$0]  (!%p6399_p6), %s8026_s2, 16, %s6460_s26, [#allocation6]  }
  0x80   : > { %s6296_s21 = smov [#allocation10]   ;;  %s6297_s25 = smov [#allocation13]  }
  0x81   : > { %s304_s22 = sshll.u32 %s6296_s21, 4  ;;  %s328_s14 = sshll.u32 %s6297_s25, 4  ;;  %s305_s22 = int_to_ptr.vmem [resolvable:$true] %s304_s22  ;;  %s6507_s14 = int_to_ptr.vmem [resolvable:$true] %s328_s14 }
  0x82   : > { %s6074_s18 = scalar_lea.hbm %s7969_s4, 224 }
  0x83   : > { %p6075_p11 = scmp.ne.s32.totalorder %s7969_s4, %s6074_s18  ;;  %p6081_p12 = scmp.lt.u32.totalorder %s6074_s18, %s7969_s4 }
  0x85   : > { %p6077_p1 = pnand %p6075_p11, %p6413_p8 }
  0x87   : > { %p6078_p3 = pneg %p6077_p1 }
  0x89   : > { %p6083_p13 = pnand %p6081_p12, %p6078_p3 }
  0x8b   : > { %6086 = shalt.err (!%p6083_p13)
}
  0x8c   : > { %s6087_s17 = scalar_lea.vmem %s305_s22, 224  ;;  %p6095_p7 = scmp.lt.s32.totalorder %s305_s22, %s305_s22 }
  0x8d   : > { %p6088_p0 = scmp.ne.s32.totalorder %s305_s22, %s6087_s17  ;;  %p6096_p9 = scmp.lt.s32.totalorder %s6087_s17, %s6087_s17 }
  0x8f   : > { %p6090_p2 = pnand %p6088_p0, %p6413_p8  ;;  %p6097_p5 = por %p6096_p9, %p6095_p7 }
  0x91   : > { %p6091_p4 = pneg %p6090_p2 }
  0x93   : > { %p6098_p10 = pnand %p6097_p5, %p6091_p4 }
  0x95   : > { %6101 = shalt.err (!%p6098_p10)
}
  0x96   : > { %5097 = dma.hbm_to_vmem [thread:$0]  (!%p6399_p6), %s7969_s4, 224, %s305_s22, [#allocation9]  }
  0x97   : > { %s6102_s18 = scalar_lea.hbm %s7971_s6, 16 }
  0x98   : > { %p6103_p11 = scmp.ne.s32.totalorder %s7971_s6, %s6102_s18  ;;  %p6109_p12 = scmp.lt.u32.totalorder %s6102_s18, %s7971_s6 }
  0x9a   : > { %p6105_p1 = pnand %p6103_p11, %p6413_p8 }
  0x9c   : > { %p6106_p3 = pneg %p6105_p1 }
  0x9e   : > { %p6111_p13 = pnand %p6109_p12, %p6106_p3 }
  0xa0   : > { %6114 = shalt.err (!%p6111_p13)
}
  0xa1   : > { %s6115_s22 = scalar_lea.vmem %s6507_s14, 16  ;;  %s6122_s17 = scalar_lea.vmem %s6507_s14, 32 }
  0xa2   : > { %p6116_p0 = scmp.ne.s32.totalorder %s6507_s14, %s6115_s22  ;;  %p6123_p7 = scmp.lt.s32.totalorder %s6507_s14, %s6507_s14 }
  0xa3   : > { %p6124_p9 = scmp.lt.s32.totalorder %s6122_s17, %s6115_s22 }
  0xa4   : > { %p6118_p2 = pnand %p6116_p0, %p6413_p8 }
  0xa5   : > { %p6125_p5 = por %p6124_p9, %p6123_p7 }
  0xa6   : > { %p6119_p4 = pneg %p6118_p2 }
  0xa8   : > { %p6126_p10 = pnand %p6125_p5, %p6119_p4 }
  0xaa   : > { %6129 = shalt.err (!%p6126_p10)
}
  0xab   : > { %5103 = dma.hbm_to_vmem [thread:$0]  (!%p6399_p6), %s7971_s6, 16, %s6507_s14, [#allocation12]  }
  0xac   : > { %s4481_s24 = sadd.s32 4294967294, %s6286_s10   ;;  %s43_s15 = sadd.s32 1, %s6282_s9 }
  0xad   : > { %p45_p8 = scmp.ge.s32.totalorder %s43_s15, 2  ;;  %s52_s16 = sadd.s32 1, %s6274_s29 }
  0xae   : > { %p59_p11 = scmp.ne.s32.totalorder %s6274_s29, %s6270_s28  ;;  %p60_p1 = scmp.eq.s32.totalorder %s6286_s10, 0 }
  0xaf   : > { %s8186_s15 = smov (%p45_p8, %s43_s15), 0  ;;  %p65_p12 = scmp.ne.s32.totalorder %s6270_s28, %s6266_s27 }
  0xb0   : > { %p6559_p3 = por %p60_p1, %p59_p11  ;;  %s47_s14 = ssub.s32 %s6282_s9, %s8186_s15 }
  0xb1   : > { %s8028_s18 = sadd.s32 4294967295, %s6286_s10   ;;  %p50_p13 = scmp.eq.s32.totalorder %s47_s14, 0 }
  0xb2   : > { %p215_p6 = scmp.eq.s32.totalorder %s8028_s18, 1  ;;  %p8029_p0 = scmp.ne.s32.totalorder %s8018_s12, 0 }
  0xb3   : > { %p221_p7 = scmp.eq.s32.totalorder %s4481_s24, 1  ;;  %p5121_p5 = scmp.lt.s32.totalorder %s6286_s10, 2 }
  0xb4   : > { %p6571_p2 = por %p8029_p0, %p65_p12  ;;  %p6575_p4 = por %p215_p6, %p59_p11 }
  0xb5   : > { %s6580_s8 = scalar_select %p50_p13, %s6274_s29, %s52_s16  }
  0xb6   : > { %s8031_s20 = scalar_select %p6575_p4, 1, 0 }
  0xb7   : > { %p6582_p9 = por %p221_p7, %p65_p12  ;;  %s339_s22 = sand.u32 1, %s6274_s29  }
  0xb8   : > { %s4862_s17 = sshll.u32 %s6282_s9, 9  ;;  %s4490_s21 = sshll.u32 %s339_s22, 5 }
  0xb9   : > { %s8032_s26 = scalar_select %p6582_p9, 1, 0 }
  0xba   : > { %s6592_s18 = scalar_lea.hbm %s7965_s0, %s4862_s17  ;;  %s343_s24 = scalar_lea.vmem [#allocation2], %s4490_s21 }
  0xbb   : > { %s352_s16 = sshll.u32 %s343_s24, 4  ;;  %p6596_p10 = pnand %p5121_p5, %p6559_p3  ;;  %s6600_s16 = int_to_ptr.vmem [resolvable:$true] %s352_s16 }
  0xbc   : > { %s6602_s3 = scalar_lea.sflag [#allocation3], %s339_s22  ;;  %s6130_s25 = scalar_lea.hbm %s6592_s18, 512 }
  0xbd   : > { %p6131_p8 = scmp.ne.s32.totalorder %s6592_s18, %s6130_s25  ;;  %p6132_p11 = pneg %p6596_p10 }
  0xbe   : > { %s6135_s21 = scalar_lea.hbm %s7965_s0, 1024  ;;  %p6136_p3 = scmp.lt.u32.totalorder %s6592_s18, %s7965_s0 }
  0xbf   : > { %p6133_p1 = pnand %p6132_p11, %p6131_p8  ;;  %p6137_p6 = scmp.lt.u32.totalorder %s6135_s21, %s6130_s25 }
  0xc0   : > { %p6139_p0 = scmp.lt.u32.totalorder %s6130_s25, %s6592_s18 }
  0xc1   : > { %p6134_p12 = pneg %p6133_p1  ;;  %p6138_p13 = por %p6137_p6, %p6136_p3 }
  0xc3   : > { %p6140_p7 = por %p6139_p0, %p6138_p13 }
  0xc5   : > { %p6141_p5 = pnand %p6140_p7, %p6134_p12 }
  0xc7   : > { %6144 = shalt.err (!%p6141_p5)
}
  0xc8   : > { %s6145_s22 = scalar_lea.vmem %s6600_s16, 512  ;;  %s6298_s17 = smov [#allocation2]  }
  0xc9   : > { %p6146_p8 = scmp.ne.s32.totalorder %s6600_s16, %s6145_s22  ;;  %s6150_s11 = sshll.u32 %s6298_s17, 4  ;;  %s6151_s11 = int_to_ptr.vmem [resolvable:$false] %s6150_s11 }
  0xca   : > { %s6152_s14 = scalar_lea.vmem %s6151_s11, 1024  ;;  %p6153_p4 = scmp.lt.s32.totalorder %s6600_s16, %s6151_s11 }
  0xcb   : > { %p6148_p1 = pnand %p6146_p8, %p6132_p11  ;;  %p6154_p3 = scmp.lt.s32.totalorder %s6152_s14, %s6145_s22 }
  0xcd   : > { %p6149_p9 = pneg %p6148_p1  ;;  %p6155_p6 = por %p6154_p3, %p6153_p4 }
  0xcf   : > { %p6156_p13 = pnand %p6155_p6, %p6149_p9 }
  0xd1   : > { %6159 = shalt.err (!%p6156_p13)
}
  0xd2   : > { %5107 = dma.hbm_to_vmem [thread:$0]  (!%p6596_p10), %s6592_s18, 512, %s6600_s16, %s6602_s3, %s8025_s19, %s8025_s19, %s8024_s1  }
  0xd3   : > { %p8034_p11 = scmp.ne.s32.totalorder %s8019_s13, 0 }
  0xd5   : > { %364 = sbr.rel (%p8034_p11) target bundleno = 1290 (0x50a), region = 48 }
  0xdc   : > { %s6636_s25 = sand.u32 1, %s6270_s28  }
  0xdd   : > { %s4494_s21 = sshll.u32 %s6636_s25, 5  ;;  %s367_s24 = scalar_lea.sflag [#allocation3], %s6636_s25 }
  0xde   : > { %s6640_s22 = scalar_lea.vmem [#allocation2], %s4494_s21 }
  0xdf   : > { %6241 = dma.done.wait (%p6571_p2), %s367_s24, 512  }
  0xe0   : > { %6243 = vsyncadd (%p6571_p2), %s367_s24, 4294966784  ;;  %p8035_p4 = scmp.ne.s32.totalorder %s8018_s12, 0 }
  0xe2   : > { %6245 = dma.done.wait (%p8035_p4), [#allocation6], 1040  }
  0xe3   : > { %6247 = vsyncadd (%p8035_p4), [#allocation6], 4294966256 }
  0xe4   : > { %6249 = dma.done.wait (%p8035_p4), [#allocation9], 14560  }
  0xe5   : > { %6251 = vsyncadd (%p8035_p4), [#allocation9], 4294952736 }
  0xe6   : > { %6253 = dma.done.wait (%p8035_p4), [#allocation12], 14352  }
  0xe7   : > { %6255 = vsyncadd (%p8035_p4), [#allocation12], 4294952944  ;;  %v5190_v0 = vld [vmem:[#allocation5] sm:$0xff]   ;;  %v5191_v1 = vld [vmem:[#allocation5 + $0x8] sm:$0xff]   ;;  %v6299_v46 = vmov 0   ;;  %s5053_s2 = smul.u32 14, %s6636_s25 }
  0xe8   : > { %5029 = vmatprep.subr.bf16.mxu0 %v5190_v0  ;;  %v5192_v2 = vld [vmem:[#allocation5 + $0x10] sm:$0xff]   ;;  %v5193_v3 = vld [vmem:[#allocation5 + $0x18] sm:$0xff]   ;;  %v5198_v4 = vld [vmem:[%s6640_s22] sm:$0xff]   ;;  %1449 = vmatprep.mubr.bf16.mxu1 %v6299_v46  ;;  %s5054_s12 = smul.u32 224, %s6278_s30  ;;  %s4283_s18 = scalar_lea.sflag [#allocation4], %s6636_s25 }
  0xe9   : > { %5030 = vmatpush3.bf16.msra.mxu0 %v5190_v0  ;;  %5045 = vmatprep.mubr.bf16.mxu0 %v5198_v4  ;;  %v5194_v5 = vld [vmem:[#allocation5 + $0x20] sm:$0xff]   ;;  %v5195_v6 = vld [vmem:[#allocation5 + $0x28] sm:$0xff]   ;;  %v5196_v7 = vld [vmem:[#allocation5 + $0x30] sm:$0xff]   ;;  %s7493_s3 = scalar_lea.vmem [#allocation14], %s5053_s2  ;;  %p8176_p9 = scmp.ne.s32.totalorder %s8031_s20, 0 }
  0xea   : > { %5031 = vmatprep.subr.bf16.mxu0 %v5191_v1  ;;  %v5197_v8 = vld [vmem:[#allocation5 + $0x38] sm:$0xff]   ;;  %v5199_v9 = vld [vmem:[%s6640_s22 + $0x8] sm:$0xff]   ;;  %v5200_v10 = vld [vmem:[%s6640_s22 + $0x10] sm:$0xff]   ;;  %s4301_s13 = sshll.u32 %s7493_s3, 4  ;;  %s7891_s23 = scalar_lea.hbm %s7972_s7, %s5054_s12  ;;  %s4302_s13 = int_to_ptr.vmem [resolvable:$true] %s4301_s13 }
  0xeb   : > { %v5201_v11 = vld [vmem:[%s6640_s22 + $0x18] sm:$0xff]   ;;  %v5206_v13 = vld [vmem:[#allocation8 + $0xc] ss:$56 sps:$4 sm:$0xff]   ;;  %v5204_v14 = vld [vmem:[#allocation8 + $0x8] ss:$56 sps:$4 sm:$0xff]   ;;  %s6160_s16 = scalar_lea.vmem %s4302_s13, 224 }
  0xec   : > { %v5202_v12 = vld [vmem:[#allocation8 + $0x4] ss:$56 sps:$4 sm:$0xff]   ;;  %v5207_v15 = vld [vmem:[#allocation8] ss:$56 sps:$4 sm:$0xff]   ;;  %v5208_v16 = vld [vmem:[#allocation8 + $0x74] ss:$56 sps:$4 sm:$0xff]   ;;  %p6161_p2 = scmp.ne.s32.totalorder %s4302_s13, %s6160_s16 }
  0xed   : > { %5032 = vmatpush3.bf16.msra.mxu0 %v5191_v1  ;;  %1417 = vmatprep.subr.bf16.mxu1 %v5202_v12  ;;  %v5212_v17 = vld [vmem:[#allocation8 + $0x7c] ss:$56 sps:$4 sm:$0xff]   ;;  %v5210_v18 = vld [vmem:[#allocation8 + $0x78] ss:$56 sps:$4 sm:$0xff]   ;;  %v5218_v21 = vld [vmem:[#allocation8 + $0xec] ss:$56 sps:$4 sm:$0xff]  }
  0xee   : > { %5033 = vmatprep.subr.bf16.mxu0 %v5192_v2  ;;  %1418 = vmatpush1.bf16.msra.mxu1 %v5207_v15  ;;  %v5213_v19 = vld [vmem:[#allocation8 + $0x70] ss:$56 sps:$4 sm:$0xff]   ;;  %v5214_v20 = vld [vmem:[#allocation8 + $0xe4] ss:$56 sps:$4 sm:$0xff]   ;;  %v5219_v23 = vld [vmem:[#allocation8 + $0xe0] ss:$56 sps:$4 sm:$0xff]   ;;  %p6162_p10 = pnand %p6161_p2, %p8176_p9 }
  0xef   : > { %1419 = vmatprep.subr.bf16.mxu1 %v5208_v16  ;;  %v5216_v22 = vld [vmem:[#allocation8 + $0xe8] ss:$56 sps:$4 sm:$0xff]   ;;  %v5220_v24 = vld [vmem:[#allocation8 + $0x154] ss:$56 sps:$4 sm:$0xff]   ;;  %v5222_v26 = vld [vmem:[#allocation8 + $0x158] ss:$56 sps:$4 sm:$0xff]  }
  0xf0   : > { %v5224_v25 = vld [vmem:[#allocation8 + $0x15c] ss:$56 sps:$4 sm:$0xff]   ;;  %v5225_v27 = vld [vmem:[#allocation8 + $0x150] ss:$56 sps:$4 sm:$0xff]   ;;  %v5230_v29 = vld [vmem:[#allocation8 + $0x1cc] ss:$56 sps:$4 sm:$0xff]   ;;  %p6163_p12 = pneg %p6162_p10 }
  0xf1   : > { %5034 = vmatpush3.bf16.msra.mxu0 %v5192_v2  ;;  %v5226_v28 = vld [vmem:[#allocation8 + $0x1c4] ss:$56 sps:$4 sm:$0xff]   ;;  %v5228_v30 = vld [vmem:[#allocation8 + $0x1c8] ss:$56 sps:$4 sm:$0xff]   ;;  %v5232_v32 = vld [vmem:[#allocation8 + $0x234] ss:$56 sps:$4 sm:$0xff]  }
  0xf2   : > { %5035 = vmatprep.subr.bf16.mxu0 %v5193_v3  ;;  %1420 = vmatpush1.bf16.msra.mxu1 %v5213_v19  ;;  %v5231_v31 = vld [vmem:[#allocation8 + $0x1c0] ss:$56 sps:$4 sm:$0xff]   ;;  %v5236_v33 = vld [vmem:[#allocation8 + $0x23c] ss:$56 sps:$4 sm:$0xff]   ;;  %v5237_v35 = vld [vmem:[#allocation8 + $0x230] ss:$56 sps:$4 sm:$0xff]  }
  0xf3   : > { %1421 = vmatprep.subr.bf16.mxu1 %v5214_v20  ;;  %v5234_v34 = vld [vmem:[#allocation8 + $0x238] ss:$56 sps:$4 sm:$0xff]   ;;  %v5238_v36 = vld [vmem:[#allocation8 + $0x2a4] ss:$56 sps:$4 sm:$0xff]   ;;  %v5240_v38 = vld [vmem:[#allocation8 + $0x2a8] ss:$56 sps:$4 sm:$0xff]  }
  0xf4   : > { %v5242_v37 = vld [vmem:[#allocation8 + $0x2ac] ss:$56 sps:$4 sm:$0xff]   ;;  %v5243_v39 = vld [vmem:[#allocation8 + $0x2a0] ss:$56 sps:$4 sm:$0xff]   ;;  %v5248_v41 = vld [vmem:[#allocation8 + $0x31c] ss:$56 sps:$4 sm:$0xff]  }
  0xf5   : > { %5036 = vmatpush3.bf16.msra.mxu0 %v5193_v3  ;;  %v5244_v40 = vld [vmem:[#allocation8 + $0x314] ss:$56 sps:$4 sm:$0xff]   ;;  %v5246_v42 = vld [vmem:[#allocation8 + $0x318] ss:$56 sps:$4 sm:$0xff]   ;;  %v4501_v47 = vld [vmem:[#allocation7] ss:$0 sm:$0xff] }
  0xf6   : > { %5037 = vmatprep.subr.bf16.mxu0 %v5194_v5  ;;  %1422 = vmatpush1.bf16.msra.mxu1 %v5219_v23  ;;  %v5249_v43 = vld [vmem:[#allocation8 + $0x310] ss:$56 sps:$4 sm:$0xff]   ;;  %v5252_v44 = vld [vmem:[#allocation8 + $0x14] ss:$56 sps:$4 sm:$0xff]   ;;  %s6302_s17 = smov [#allocation14]  }
  0xf7   : > { %1423 = vmatprep.subr.bf16.mxu1 %v5220_v24  ;;  %v5255_v45 = vld [vmem:[#allocation8 + $0x1c] ss:$56 sps:$4 sm:$0xff]   ;;  %s6164_s11 = sshll.u32 %s6302_s17, 4  ;;  %s6165_s11 = int_to_ptr.vmem [resolvable:$false] %s6164_s11 }
  0xf8   : > { %s6166_s14 = scalar_lea.vmem %s6165_s11, 448  ;;  %p6167_p0 = scmp.lt.s32.totalorder %s4302_s13, %s6165_s11 }
  0xf9   : > { %5038 = vmatpush3.bf16.msra.mxu0 %v5194_v5  ;;  %p6168_p7 = scmp.lt.s32.totalorder %s6166_s14, %s6160_s16 }
  0xfa   : > { %5039 = vmatprep.subr.bf16.mxu0 %v5195_v6  ;;  %1424 = vmatpush1.bf16.msra.mxu1 %v5225_v27 }
  0xfb   : > { %1425 = vmatprep.subr.bf16.mxu1 %v5226_v28  ;;  %p6169_p5 = por %p6168_p7, %p6167_p0 }
  0xfd   : > { %5040 = vmatpush3.bf16.msra.mxu0 %v5195_v6  ;;  %p6170_p8 = pnand %p6169_p5, %p6163_p12 }
  0xfe   : > { %5041 = vmatprep.subr.bf16.mxu0 %v5196_v7  ;;  %1426 = vmatpush1.bf16.msra.mxu1 %v5231_v31 }
  0xff   : > { %1427 = vmatprep.subr.bf16.mxu1 %v5232_v32 }
 0x101   : > { %5042 = vmatpush3.bf16.msra.mxu0 %v5196_v7 }
 0x102   : > { %5043 = vmatprep.subr.bf16.mxu0 %v5197_v8  ;;  %1428 = vmatpush1.bf16.msra.mxu1 %v5237_v35 }
 0x103   : > { %1429 = vmatprep.subr.bf16.mxu1 %v5238_v36  ;;  %v5258_v36 = vld [vmem:[#allocation8 + $0x84] ss:$56 sps:$4 sm:$0xff]  }
 0x105   : > { %5044 = vmatpush3.bf16.msra.mxu0 %v5197_v8 }
 0x106   : > { %1490 = vmatprep.subr.bf16.mxu0 %v5206_v13  ;;  %1430 = vmatpush1.bf16.msra.mxu1 %v5243_v39 }
 0x107   : > { %1431 = vmatprep.subr.bf16.mxu1 %v5244_v40  ;;  %v5256_v40 = vld [vmem:[#allocation8 + $0x80] ss:$56 sps:$4 sm:$0xff]  }
 0x108   : > { %5046 = vmatmul.mubr.bf16.vlgmr.msra.gmra.mrb[0].mxu0 %v5199_v9 }
 0x109   : > { %5049 = vmatprep.mubr.bf16.mxu0 %v5200_v10  ;;  %1491 = vmatpush1.bf16.msra.mxu0 %v5204_v14 }
 0x10a   : > { %1492 = vmatprep.subr.bf16.mxu0 %v5212_v17  ;;  %1432 = vmatpush1.bf16.msra.mxu1 %v5249_v43  ;;  %v5264_v43 = vld [vmem:[#allocation8 + $0xf4] ss:$56 sps:$4 sm:$0xff]  }
 0x10b   : > { %1563 = vmatprep.subr.bf16.mxu1 %v5252_v44  ;;  %v5267_v44 = vld [vmem:[#allocation8 + $0xfc] ss:$56 sps:$4 sm:$0xff]  }
 0x10d   : > { %1493 = vmatpush1.bf16.msra.mxu0 %v5210_v18 }
 0x10e   : > { %1494 = vmatprep.subr.bf16.mxu0 %v5218_v21 }
 0x110   : > { %5050 = vmatmul.mubr.bf16.gmra.mrb[4].mxu0 %v5201_v11 }
 0x111   : > { %1495 = vmatpush1.bf16.msra.mxu0 %v5216_v22  ;;  %1522 = vmatprep.mubr.bf16.mxu0 %v6299_v46 }
 0x112   : > { %1496 = vmatprep.subr.bf16.mxu0 %v5224_v25 }
 0x115   : > { %1497 = vmatpush1.bf16.msra.mxu0 %v5222_v26 }
 0x116   : > { %1498 = vmatprep.subr.bf16.mxu0 %v5230_v29 }
 0x119   : > { %1499 = vmatpush1.bf16.msra.mxu0 %v5228_v30 }
 0x11a   : > { %1500 = vmatprep.subr.bf16.mxu0 %v5236_v33  ;;  %v5250_v33 = vld [vmem:[#allocation8 + $0x10] ss:$56 sps:$4 sm:$0xff]  }
 0x11d   : > { %1501 = vmatpush1.bf16.msra.mxu0 %v5234_v34  ;;  %v5253_v34 = vld [vmem:[#allocation8 + $0x18] ss:$56 sps:$4 sm:$0xff]  }
 0x11e   : > { %1502 = vmatprep.subr.bf16.mxu0 %v5242_v37  ;;  %v5261_v37 = vld [vmem:[#allocation8 + $0x8c] ss:$56 sps:$4 sm:$0xff]  }
 0x121   : > { %1503 = vmatpush1.bf16.msra.mxu0 %v5240_v38 }
 0x122   : > { %1504 = vmatprep.subr.bf16.mxu0 %v5248_v41  ;;  %v5259_v41 = vld [vmem:[#allocation8 + $0x88] ss:$56 sps:$4 sm:$0xff]  }
 0x125   : > { %1505 = vmatpush1.bf16.msra.mxu0 %v5246_v42 }
 0x126   : > { %1636 = vmatprep.subr.bf16.mxu0 %v5255_v45 }
 0x1db   : > { %v5047_v48 = vpop.f32.mrb[0].mxu0 }
 0x1dc   : > { %v589_v49 = vadd.f32 %v5047_v48, %v4501_v47  ;;  %v580_v50 = vpop.f32.mrb[1].mxu0 }
 0x1dd   : > { %v581_v51 = vadd.f32 %v4501_v47, %v580_v50  ;;  %v5048_v52 = vpop.f32.mrb[2].mxu0 }
 0x1de   : > { %v4516_v53 = vmul.f32 -1.442695, %v589_v49  ;;  %v592_v54 = vadd.f32 %v5048_v52, %v4501_v47  ;;  %v583_v55 = vpop.f32.mrb[3].mxu0  ;;  %v5262_v52 = vld [vmem:[#allocation8 + $0xf0] ss:$56 sps:$4 sm:$0xff]  }
 0x1df   : > { %v4514_v56 = vmul.f32 -1.442695, %v581_v51  ;;  %v584_v57 = vadd.f32 %v4501_v47, %v583_v55  ;;  %v5270_v55 = vld [vmem:[#allocation8 + $0x164] ss:$56 sps:$4 sm:$0xff]  }
 0x1e0   : > { %5482 = vpow2.f32 %v4516_v53  ;;  %v4517_v58 = vmul.f32 -1.442695, %v592_v54  ;;  %v5265_v53 = vld [vmem:[#allocation8 + $0xf8] ss:$56 sps:$4 sm:$0xff]  }
 0x1e1   : > { %5484 = vpow2.f32 %v4514_v56  ;;  %v4515_v59 = vmul.f32 -1.442695, %v584_v57  ;;  %v5273_v56 = vld [vmem:[#allocation8 + $0x16c] ss:$56 sps:$4 sm:$0xff]  }
 0x1e2   : > { %5486 = vpow2.f32 %v4517_v58  ;;  %v5271_v58 = vld [vmem:[#allocation8 + $0x168] ss:$56 sps:$4 sm:$0xff]  }
 0x1e3   : > { %5488 = vpow2.f32 %v4515_v59  ;;  %v5051_v60 = vpop.f32.mrb[4].mxu0  ;;  %v5276_v59 = vld [vmem:[#allocation8 + $0x1d4] ss:$56 sps:$4 sm:$0xff]  }
 0x1e4   : > { %v6664_v61 = vadd.f32 %v5051_v60, %v4501_v47  ;;  %v596_v62 = vpop.f32.mrb[5].mxu0  ;;  %v5279_v60 = vld [vmem:[#allocation8 + $0x1dc] ss:$56 sps:$4 sm:$0xff]  }
 0x1e5   : > { %v6666_v63 = vadd.f32 %v4501_v47, %v596_v62  ;;  %v5052_v0 = vpop.f32.mrb[6].mxu0  ;;  %v5277_v62 = vld [vmem:[#allocation8 + $0x1d8] ss:$56 sps:$4 sm:$0xff]  }
 0x1e6   : > { %v4520_v1 = vmul.f32 -1.442695, %v6664_v61  ;;  %v6669_v2 = vadd.f32 %v5052_v0, %v4501_v47  ;;  %v599_v3 = vpop.f32.mrb[7].mxu0  ;;  %v5285_v0 = vld [vmem:[#allocation8 + $0x24c] ss:$56 sps:$4 sm:$0xff]  }
 0x1e7   : > { %v4518_v4 = vmul.f32 -1.442695, %v6666_v63  ;;  %v6672_v5 = vadd.f32 %v4501_v47, %v599_v3  ;;  %v5288_v3 = vld [vmem:[#allocation8 + $0x2b4] ss:$56 sps:$4 sm:$0xff]  }
 0x1e8   : > { %5490 = vpow2.f32 %v4520_v1  ;;  %v4521_v6 = vmul.f32 -1.442695, %v6669_v2  ;;  %v5280_v1 = vld [vmem:[#allocation8 + $0x240] ss:$56 sps:$4 sm:$0xff]  }
 0x1e9   : > { %5492 = vpow2.f32 %v4518_v4  ;;  %v4519_v7 = vmul.f32 -1.442695, %v6672_v5  ;;  %v5291_v4 = vld [vmem:[#allocation8 + $0x2bc] ss:$56 sps:$4 sm:$0xff]  }
 0x1ea   : > { %v5483_v8 = vpop.eup %5482  ;;  %5494 = vpow2.f32 %v4521_v6  ;;  %v5289_v6 = vld [vmem:[#allocation8 + $0x2b8] ss:$56 sps:$4 sm:$0xff]  }
 0x1eb   : > { %v5485_v9 = vpop.eup %5484  ;;  %v637_v10 = vadd.f32 1.0, %v5483_v8  ;;  %5496 = vpow2.f32 %v4519_v7  ;;  %v5294_v7 = vld [vmem:[#allocation8 + $0x324] ss:$56 sps:$4 sm:$0xff]  }
 0x1ec   : > { %v5487_v11 = vpop.eup %5486  ;;  %v635_v12 = vadd.f32 1.0, %v5485_v9  ;;  %v5297_v8 = vld [vmem:[#allocation8 + $0x32c] ss:$56 sps:$4 sm:$0xff]   ;;  %v5292_v9 = vld [vmem:[#allocation8 + $0x320] ss:$56 sps:$4 sm:$0xff]  }
 0x1ed   : > { %v5489_v13 = vpop.eup %5488  ;;  %5498 = vrcp.f32 %v637_v10  ;;  %v638_v14 = vadd.f32 1.0, %v5487_v11  ;;  %v5295_v10 = vld [vmem:[#allocation8 + $0x328] ss:$56 sps:$4 sm:$0xff]   ;;  %v5300_v11 = vld [vmem:[#allocation8 + $0x24] ss:$56 sps:$4 sm:$0xff]  }
 0x1ee   : > { %5500 = vrcp.f32 %v635_v12  ;;  %v636_v15 = vadd.f32 1.0, %v5489_v13  ;;  %v5303_v12 = vld [vmem:[#allocation8 + $0x2c] ss:$56 sps:$4 sm:$0xff]   ;;  %v5298_v13 = vld [vmem:[#allocation8 + $0x20] ss:$56 sps:$4 sm:$0xff]  }
 0x1ef   : > { %5502 = vrcp.f32 %v638_v14  ;;  %v5301_v14 = vld [vmem:[#allocation8 + $0x28] ss:$56 sps:$4 sm:$0xff]  }
 0x1f0   : > { %5504 = vrcp.f32 %v636_v15  ;;  %v5306_v15 = vld [vmem:[#allocation8 + $0x94] ss:$56 sps:$4 sm:$0xff]  }
 0x1f2   : > { %v5491_v16 = vpop.eup %5490 }
 0x1f3   : > { %v5493_v17 = vpop.eup %5492  ;;  %v641_v18 = vadd.f32 1.0, %v5491_v16  ;;  %v5309_v16 = vld [vmem:[#allocation8 + $0x9c] ss:$56 sps:$4 sm:$0xff]  }
 0x1f4   : > { %v5495_v19 = vpop.eup %5494  ;;  %v639_v20 = vadd.f32 1.0, %v5493_v17  ;;  %v5304_v17 = vld [vmem:[#allocation8 + $0x90] ss:$56 sps:$4 sm:$0xff]  }
 0x1f5   : > { %v5497_v21 = vpop.eup %5496  ;;  %5506 = vrcp.f32 %v641_v18  ;;  %v642_v22 = vadd.f32 1.0, %v5495_v19  ;;  %v5307_v18 = vld [vmem:[#allocation8 + $0x98] ss:$56 sps:$4 sm:$0xff]   ;;  %v5312_v19 = vld [vmem:[#allocation8 + $0x104] ss:$56 sps:$4 sm:$0xff]  }
 0x1f6   : > { %5508 = vrcp.f32 %v639_v20  ;;  %v640_v23 = vadd.f32 1.0, %v5497_v21  ;;  %v5315_v20 = vld [vmem:[#allocation8 + $0x10c] ss:$56 sps:$4 sm:$0xff]   ;;  %v5310_v21 = vld [vmem:[#allocation8 + $0x100] ss:$56 sps:$4 sm:$0xff]  }
 0x1f7   : > { %v5499_v24 = vpop.eup %5498  ;;  %5510 = vrcp.f32 %v642_v22  ;;  %v5313_v22 = vld [vmem:[#allocation8 + $0x108] ss:$56 sps:$4 sm:$0xff]  }
 0x1f8   : > { %v5501_v25 = vpop.eup %5500  ;;  %5512 = vrcp.f32 %v640_v23  ;;  %v661_v28 = vmul.f32 %v5499_v24, %v589_v49  ;;  %v5318_v23 = vld [vmem:[#allocation8 + $0x174] ss:$56 sps:$4 sm:$0xff]  }
 0x1f9   : > { %v5503_v26 = vpop.eup %5502  ;;  %v659_v30 = vmul.f32 %v5501_v25, %v581_v51  ;;  %v5321_v24 = vld [vmem:[#allocation8 + $0x17c] ss:$56 sps:$4 sm:$0xff]   ;;  %v5316_v25 = vld [vmem:[#allocation8 + $0x170] ss:$56 sps:$4 sm:$0xff]  }
 0x1fa   : > { %v5505_v27 = vpop.eup %5504  ;;  %v662_v29 = vmul.f32 %v5503_v26, %v592_v54  ;;  %v5319_v26 = vld [vmem:[#allocation8 + $0x178] ss:$56 sps:$4 sm:$0xff]  }
 0x1fb   : > { %v660_v31 = vmul.f32 %v5505_v27, %v584_v57  ;;  %v5268_v57 = vld [vmem:[#allocation8 + $0x160] ss:$56 sps:$4 sm:$0xff]   ;;  %v5324_v27 = vld [vmem:[#allocation8 + $0x1e4] ss:$56 sps:$4 sm:$0xff]  }
 0x1fc   : > { %v6676_v32 = vpack.c.bf16 %v662_v29, %v661_v28  ;;  %v5327_v28 = vld [vmem:[#allocation8 + $0x1ec] ss:$56 sps:$4 sm:$0xff]   ;;  %v5322_v29 = vld [vmem:[#allocation8 + $0x1e0] ss:$56 sps:$4 sm:$0xff]  }
 0x1fd   : > { %v6678_v35 = vpack.c.bf16 %v660_v31, %v659_v30  ;;  %v5325_v30 = vld [vmem:[#allocation8 + $0x1e8] ss:$56 sps:$4 sm:$0xff]   ;;  %v5330_v31 = vld [vmem:[#allocation8 + $0x254] ss:$56 sps:$4 sm:$0xff]  }
 0x1ff   : > { %v5507_v38 = vpop.eup %5506  ;;  %1450 = vmatmul.mubr.bf16.vlgmr.msra.gmra.mrb[0].mxu1 %v6678_v35  ;;  %1523 = vmatmul.mubr.bf16.vlgmr.msra.gmra.mrb[8].mxu0 %v6678_v35 }
 0x200   : > { %v5509_v39 = vpop.eup %5508  ;;  %1564 = vmatpush1.bf16.msra.mxu1 %v5250_v33  ;;  %1637 = vmatpush1.bf16.msra.mxu0 %v5253_v34  ;;  %v665_v47 = vmul.f32 %v5507_v38, %v6664_v61  ;;  %v5274_v61 = vld [vmem:[#allocation8 + $0x1d0] ss:$56 sps:$4 sm:$0xff]   ;;  %v5333_v33 = vld [vmem:[#allocation8 + $0x25c] ss:$56 sps:$4 sm:$0xff]   ;;  %v5339_v38 = vld [vmem:[#allocation8 + $0x2cc] ss:$56 sps:$4 sm:$0xff]  }
 0x201   : > { %v5511_v42 = vpop.eup %5510  ;;  %1565 = vmatprep.subr.bf16.mxu1 %v5258_v36  ;;  %1638 = vmatprep.subr.bf16.mxu0 %v5261_v37  ;;  %v663_v49 = vmul.f32 %v5509_v39, %v6666_v63  ;;  %v5282_v63 = vld [vmem:[#allocation8 + $0x244] ss:$56 sps:$4 sm:$0xff]   ;;  %v5328_v34 = vld [vmem:[#allocation8 + $0x250] ss:$56 sps:$4 sm:$0xff]   ;;  %v5334_v39 = vld [vmem:[#allocation8 + $0x2c0] ss:$56 sps:$4 sm:$0xff]  }
 0x202   : > { %v5513_v45 = vpop.eup %5512  ;;  %v666_v48 = vmul.f32 %v5511_v42, %v6669_v2  ;;  %1459 = vmatprep.mubr.bf16.mxu1 %v6299_v46  ;;  %1532 = vmatprep.mubr.bf16.mxu0 %v6299_v46  ;;  %v5283_v2 = vld [vmem:[#allocation8 + $0x248] ss:$56 sps:$4 sm:$0xff]   ;;  %v5331_v36 = vld [vmem:[#allocation8 + $0x258] ss:$56 sps:$4 sm:$0xff]   ;;  %v5336_v37 = vld [vmem:[#allocation8 + $0x2c4] ss:$56 sps:$4 sm:$0xff]  }
 0x203   : > { %v664_v50 = vmul.f32 %v5513_v45, %v6672_v5  ;;  %v5286_v5 = vld [vmem:[#allocation8 + $0x2b0] ss:$56 sps:$4 sm:$0xff]   ;;  %v5345_v42 = vld [vmem:[#allocation8 + $0x33c] ss:$56 sps:$4 sm:$0xff]  }
 0x204   : > { %v6688_v51 = vpack.c.bf16 %v666_v48, %v665_v47  ;;  %1566 = vmatpush1.bf16.msra.mxu1 %v5256_v40  ;;  %1639 = vmatpush1.bf16.msra.mxu0 %v5259_v41  ;;  %v5337_v40 = vld [vmem:[#allocation8 + $0x2c8] ss:$56 sps:$4 sm:$0xff]   ;;  %v5342_v41 = vld [vmem:[#allocation8 + $0x334] ss:$56 sps:$4 sm:$0xff]   ;;  %v5351_v48 = vld [vmem:[#allocation8 + $0xa4] ss:$56 sps:$4 sm:$0xff]  }
 0x205   : > { %v6690_v54 = vpack.c.bf16 %v664_v50, %v663_v49  ;;  %1567 = vmatprep.subr.bf16.mxu1 %v5264_v43  ;;  %1640 = vmatprep.subr.bf16.mxu0 %v5267_v44  ;;  %v5340_v43 = vld [vmem:[#allocation8 + $0x330] ss:$56 sps:$4 sm:$0xff]   ;;  %v5348_v45 = vld [vmem:[#allocation8 + $0x34] ss:$56 sps:$4 sm:$0xff]   ;;  %v5349_v49 = vld [vmem:[#allocation8 + $0xa0] ss:$56 sps:$4 sm:$0xff]  }
 0x206   : > { %v5343_v44 = vld [vmem:[#allocation8 + $0x338] ss:$56 sps:$4 sm:$0xff]   ;;  %v5354_v50 = vld [vmem:[#allocation8 + $0x114] ss:$56 sps:$4 sm:$0xff]  }
 0x207   : > { %1460 = vmatmul.mubr.bf16.gmra.mrb[4].mxu1 %v6676_v32  ;;  %1533 = vmatmul.mubr.bf16.gmra.mrb[12].mxu0 %v6676_v32  ;;  %v5346_v47 = vld [vmem:[#allocation8 + $0x30] ss:$56 sps:$4 sm:$0xff]  }
 0x208   : > { %1568 = vmatpush1.bf16.msra.mxu1 %v5262_v52  ;;  %1641 = vmatpush1.bf16.msra.mxu0 %v5265_v53  ;;  %v5352_v52 = vld [vmem:[#allocation8 + $0x110] ss:$56 sps:$4 sm:$0xff]   ;;  %v5357_v53 = vld [vmem:[#allocation8 + $0x184] ss:$56 sps:$4 sm:$0xff]  }
 0x209   : > { %1569 = vmatprep.subr.bf16.mxu1 %v5270_v55  ;;  %1642 = vmatprep.subr.bf16.mxu0 %v5273_v56  ;;  %v5355_v55 = vld [vmem:[#allocation8 + $0x180] ss:$56 sps:$4 sm:$0xff]   ;;  %v5360_v56 = vld [vmem:[#allocation8 + $0x1f4] ss:$56 sps:$4 sm:$0xff]  }
 0x20a   : > { %1469 = vmatprep.mubr.bf16.mxu1 %v6299_v46  ;;  %1542 = vmatprep.mubr.bf16.mxu0 %v6299_v46 }
 0x20c   : > { %1570 = vmatpush1.bf16.msra.mxu1 %v5268_v57  ;;  %1643 = vmatpush1.bf16.msra.mxu0 %v5271_v58  ;;  %v5358_v57 = vld [vmem:[#allocation8 + $0x1f0] ss:$56 sps:$4 sm:$0xff]   ;;  %v5363_v58 = vld [vmem:[#allocation8 + $0x264] ss:$56 sps:$4 sm:$0xff]  }
 0x20d   : > { %1571 = vmatprep.subr.bf16.mxu1 %v5276_v59  ;;  %1644 = vmatprep.subr.bf16.mxu0 %v5279_v60  ;;  %v5361_v59 = vld [vmem:[#allocation8 + $0x260] ss:$56 sps:$4 sm:$0xff]   ;;  %v5366_v60 = vld [vmem:[#allocation8 + $0x2d4] ss:$56 sps:$4 sm:$0xff]  }
 0x20f   : > { %1470 = vmatmul.mubr.bf16.gmra.mrb[8].mxu1 %v6690_v54  ;;  %1543 = vmatmul.mubr.bf16.gmra.mrb[16].mxu0 %v6690_v54 }
 0x210   : > { %1572 = vmatpush1.bf16.msra.mxu1 %v5274_v61  ;;  %1645 = vmatpush1.bf16.msra.mxu0 %v5277_v62  ;;  %v5364_v61 = vld [vmem:[#allocation8 + $0x2d0] ss:$56 sps:$4 sm:$0xff]   ;;  %v5369_v62 = vld [vmem:[#allocation8 + $0x344] ss:$56 sps:$4 sm:$0xff]  }
 0x211   : > { %1573 = vmatprep.subr.bf16.mxu1 %v5282_v63  ;;  %1646 = vmatprep.subr.bf16.mxu0 %v5285_v0  ;;  %v5367_v63 = vld [vmem:[#allocation8 + $0x340] ss:$56 sps:$4 sm:$0xff]   ;;  %v7984_v0 = vlaneseq }
 0x212   : > { %1479 = vmatprep.mubr.bf16.mxu1 %v6299_v46  ;;  %1552 = vmatprep.mubr.bf16.mxu0 %v6299_v46 }
 0x214   : > { %1574 = vmatpush1.bf16.msra.mxu1 %v5280_v1  ;;  %1647 = vmatpush1.bf16.msra.mxu0 %v5283_v2  ;;  %v6743_v1 = vshrl.u32 %v7984_v0, 7 }
 0x215   : > { %1575 = vmatprep.subr.bf16.mxu1 %v5288_v3  ;;  %1648 = vmatprep.subr.bf16.mxu0 %v5291_v4  ;;  %v6751_v3 = vld [vmem:[#allocation10] sm:$0xff] }
 0x216   : > { %8036 = vst [vmem:[#allocation23_spill] sm:$0xff] %v6743_v1  ;;  %v6746_v2 = vsub.s32 0, %v6743_v1 }
 0x217   : > { %1480 = vmatmul.mubr.bf16.gmra.mrb[12].mxu1 %v6688_v51  ;;  %1553 = vmatmul.mubr.bf16.gmra.mrb[20].mxu0 %v6688_v51 }
 0x218   : > { %1576 = vmatpush1.bf16.msra.mxu1 %v5286_v5  ;;  %1649 = vmatpush1.bf16.msra.mxu0 %v5289_v6  ;;  %8037 = vst [vmem:[#allocation24_spill] sm:$0xff] %v6746_v2 }
 0x219   : > { %1577 = vmatprep.subr.bf16.mxu1 %v5294_v7  ;;  %1650 = vmatprep.subr.bf16.mxu0 %v5297_v8 }
 0x21a   : > { %1595 = vmatprep.mubr.bf16.mxu1 %v6299_v46  ;;  %1668 = vmatprep.mubr.bf16.mxu0 %v6299_v46 }
 0x21c   : > { %1578 = vmatpush1.bf16.msra.mxu1 %v5292_v9  ;;  %1651 = vmatpush1.bf16.msra.mxu0 %v5295_v10 }
 0x21d   : > { %1709 = vmatprep.subr.bf16.mxu1 %v5300_v11  ;;  %1782 = vmatprep.subr.bf16.mxu0 %v5303_v12 }
 0x21f   : > { %1596 = vmatmul.mubr.bf16.vlgmr.msra.gmra.mrb[16].mxu1 %v6678_v35  ;;  %1669 = vmatmul.mubr.bf16.vlgmr.msra.gmra.mrb[24].mxu0 %v6678_v35 }
 0x220   : > { %1710 = vmatpush1.bf16.msra.mxu1 %v5298_v13  ;;  %1783 = vmatpush1.bf16.msra.mxu0 %v5301_v14 }
 0x221   : > { %1711 = vmatprep.subr.bf16.mxu1 %v5306_v15  ;;  %1784 = vmatprep.subr.bf16.mxu0 %v5309_v16 }
 0x222   : > { %1605 = vmatprep.mubr.bf16.mxu1 %v6299_v46  ;;  %1678 = vmatprep.mubr.bf16.mxu0 %v6299_v46 }
 0x224   : > { %1712 = vmatpush1.bf16.msra.mxu1 %v5304_v17  ;;  %1785 = vmatpush1.bf16.msra.mxu0 %v5307_v18 }
 0x225   : > { %1713 = vmatprep.subr.bf16.mxu1 %v5312_v19  ;;  %1786 = vmatprep.subr.bf16.mxu0 %v5315_v20 }
 0x227   : > { %1606 = vmatmul.mubr.bf16.gmra.mrb[20].mxu1 %v6676_v32  ;;  %1679 = vmatmul.mubr.bf16.gmra.mrb[28].mxu0 %v6676_v32 }
 0x228   : > { %1714 = vmatpush1.bf16.msra.mxu1 %v5310_v21  ;;  %1787 = vmatpush1.bf16.msra.mxu0 %v5313_v22 }
 0x229   : > { %1715 = vmatprep.subr.bf16.mxu1 %v5318_v23  ;;  %1788 = vmatprep.subr.bf16.mxu0 %v5321_v24 }
 0x22a   : > { %1615 = vmatprep.mubr.bf16.mxu1 %v6299_v46  ;;  %1688 = vmatprep.mubr.bf16.mxu0 %v6299_v46 }
 0x22c   : > { %1716 = vmatpush1.bf16.msra.mxu1 %v5316_v25  ;;  %1789 = vmatpush1.bf16.msra.mxu0 %v5319_v26 }
 0x22d   : > { %1717 = vmatprep.subr.bf16.mxu1 %v5324_v27  ;;  %1790 = vmatprep.subr.bf16.mxu0 %v5327_v28 }
 0x22f   : > { %1616 = vmatmul.mubr.bf16.gmra.mrb[24].mxu1 %v6690_v54  ;;  %1689 = vmatmul.mubr.bf16.gmra.mrb[32].mxu0 %v6690_v54 }
 0x230   : > { %1718 = vmatpush1.bf16.msra.mxu1 %v5322_v29  ;;  %1791 = vmatpush1.bf16.msra.mxu0 %v5325_v30 }
 0x231   : > { %1719 = vmatprep.subr.bf16.mxu1 %v5330_v31  ;;  %1792 = vmatprep.subr.bf16.mxu0 %v5333_v33 }
 0x232   : > { %1625 = vmatprep.mubr.bf16.mxu1 %v6299_v46  ;;  %1698 = vmatprep.mubr.bf16.mxu0 %v6299_v46 }
 0x234   : > { %1720 = vmatpush1.bf16.msra.mxu1 %v5328_v34  ;;  %1793 = vmatpush1.bf16.msra.mxu0 %v5331_v36 }
 0x235   : > { %1721 = vmatprep.subr.bf16.mxu1 %v5336_v37  ;;  %1794 = vmatprep.subr.bf16.mxu0 %v5339_v38 }
 0x237   : > { %1626 = vmatmul.mubr.bf16.gmra.mrb[28].mxu1 %v6688_v51  ;;  %1699 = vmatmul.mubr.bf16.gmra.mrb[36].mxu0 %v6688_v51 }
 0x238   : > { %1722 = vmatpush1.bf16.msra.mxu1 %v5334_v39  ;;  %1795 = vmatpush1.bf16.msra.mxu0 %v5337_v40 }
 0x239   : > { %1723 = vmatprep.subr.bf16.mxu1 %v5342_v41  ;;  %1796 = vmatprep.subr.bf16.mxu0 %v5345_v42 }
 0x23a   : > { %1741 = vmatprep.mubr.bf16.mxu1 %v6299_v46  ;;  %1814 = vmatprep.mubr.bf16.mxu0 %v6299_v46 }
 0x23c   : > { %1724 = vmatpush1.bf16.msra.mxu1 %v5340_v43  ;;  %1797 = vmatpush1.bf16.msra.mxu0 %v5343_v44 }
 0x23d   : > { %1855 = vmatprep.subr.bf16.mxu1 %v5348_v45 }
 0x23f   : > { %1742 = vmatmul.mubr.bf16.vlgmr.msra.gmra.mrb[32].mxu1 %v6678_v35  ;;  %1815 = vmatmul.mubr.bf16.vlgmr.msra.gmra.mrb[40].mxu0 %v6678_v35 }
 0x240   : > { %1856 = vmatpush1.bf16.msra.mxu1 %v5346_v47  ;;  %1751 = vmatprep.mubr.bf16.mxu1 %v6299_v46 }
 0x241   : > { %1857 = vmatprep.subr.bf16.mxu1 %v5351_v48  ;;  %1824 = vmatprep.mubr.bf16.mxu0 %v6299_v46 }
 0x244   : > { %1858 = vmatpush1.bf16.msra.mxu1 %v5349_v49 }
 0x245   : > { %1859 = vmatprep.subr.bf16.mxu1 %v5354_v50 }
 0x247   : > { %1752 = vmatmul.mubr.bf16.gmra.mrb[36].mxu1 %v6676_v32  ;;  %1825 = vmatmul.mubr.bf16.gmra.mrb[44].mxu0 %v6676_v32 }
 0x248   : > { %1860 = vmatpush1.bf16.msra.mxu1 %v5352_v52  ;;  %1761 = vmatprep.mubr.bf16.mxu1 %v6299_v46 }
 0x249   : > { %1861 = vmatprep.subr.bf16.mxu1 %v5357_v53  ;;  %1834 = vmatprep.mubr.bf16.mxu0 %v6299_v46 }
 0x24c   : > { %1862 = vmatpush1.bf16.msra.mxu1 %v5355_v55 }
 0x24d   : > { %1863 = vmatprep.subr.bf16.mxu1 %v5360_v56 }
 0x24f   : > { %1762 = vmatmul.mubr.bf16.gmra.mrb[40].mxu1 %v6690_v54  ;;  %1835 = vmatmul.mubr.bf16.gmra.mrb[48].mxu0 %v6690_v54 }
 0x250   : > { %1864 = vmatpush1.bf16.msra.mxu1 %v5358_v57  ;;  %1771 = vmatprep.mubr.bf16.mxu1 %v6299_v46 }
 0x251   : > { %1865 = vmatprep.subr.bf16.mxu1 %v5363_v58  ;;  %1844 = vmatprep.mubr.bf16.mxu0 %v6299_v46 }
 0x254   : > { %1866 = vmatpush1.bf16.msra.mxu1 %v5361_v59 }
 0x255   : > { %1867 = vmatprep.subr.bf16.mxu1 %v5366_v60 }
 0x257   : > { %1772 = vmatmul.mubr.bf16.gmra.mrb[44].mxu1 %v6688_v51  ;;  %1845 = vmatmul.mubr.bf16.gmra.mrb[52].mxu0 %v6688_v51 }
 0x258   : > { %1868 = vmatpush1.bf16.msra.mxu1 %v5364_v61  ;;  %1887 = vmatprep.mubr.bf16.mxu1 %v6299_v46 }
 0x259   : > { %1869 = vmatprep.subr.bf16.mxu1 %v5369_v62 }
 0x25c   : > { %1870 = vmatpush1.bf16.msra.mxu1 %v5367_v63 }
 0x25f   : > { %1888 = vmatmul.mubr.bf16.vlgmr.msra.gmra.mrb[48].mxu1 %v6678_v35  ;;  %v6749_v35 = vsub.s32 2, %v6743_v1 }
 0x260   : > { %1897 = vmatprep.mubr.bf16.mxu1 %v6299_v46 }
 0x261   : > { %8038 = vst [vmem:[#allocation25_spill] sm:$0xff] %v6749_v35 }
 0x267   : > { %1898 = vmatmul.mubr.bf16.gmra.mrb[52].mxu1 %v6676_v32  ;;  %v6754_v32 = vsub.s32 1, %v6743_v1 }
 0x268   : > { %1907 = vmatprep.mubr.bf16.mxu1 %v6299_v46 }
 0x269   : > { %8039 = vst [vmem:[#allocation26_spill] sm:$0xff] %v6754_v32  ;;  %v6769_v4 = vrot.slane %v6751_v3, %v6754_v32 }
 0x26f   : > { %1908 = vmatmul.mubr.bf16.gmra.mrb[56].mxu1 %v6690_v54  ;;  %v6757_v54 = vsub.s32 3, %v6743_v1 }
 0x270   : > { %1917 = vmatprep.mubr.bf16.mxu1 %v6299_v46  ;;  %v6761_v46 = vrot.slane %v6751_v3, %v6746_v2 }
 0x271   : > { %8040 = vst [vmem:[#allocation27_spill] sm:$0xff] %v6757_v54  ;;  %v6773_v5 = vrot.slane %v6751_v3, %v6757_v54 }
 0x277   : > { %1918 = vmatmul.mubr.bf16.gmra.mrb[60].mxu1 %v6688_v51  ;;  %v6765_v51 = vrot.slane %v6751_v3, %v6749_v35 }
 0x2d2   : > { %v1451_v6 = vpop.f32.mrb[0].mxu1  ;;  %v1524_v7 = vpop.f32.mrb[8].mxu0 }
 0x2d3   : > { %v6776_v8 = vadd.f32 %v1451_v6, %v6761_v46  ;;  %v6779_v9 = vadd.f32 %v1524_v7, %v6765_v51  ;;  %v1453_v10 = vpop.f32.mrb[1].mxu1  ;;  %v1526_v11 = vpop.f32.mrb[9].mxu0 }
 0x2d4   : > { %v6782_v12 = vadd.f32 %v1453_v10, %v6769_v4  ;;  %v6785_v13 = vadd.f32 %v1526_v11, %v6773_v5  ;;  %v1455_v14 = vpop.f32.mrb[2].mxu1  ;;  %v1528_v15 = vpop.f32.mrb[10].mxu0 }
 0x2d5   : > { %v4634_v16 = vmul.f32 -1.442695, %v6776_v8  ;;  %v4636_v17 = vmul.f32 -1.442695, %v6779_v9  ;;  %v6790_v18 = vadd.f32 %v1455_v14, %v6761_v46  ;;  %v6793_v19 = vadd.f32 %v1528_v15, %v6765_v51  ;;  %v1457_v20 = vpop.f32.mrb[3].mxu1  ;;  %v1530_v21 = vpop.f32.mrb[11].mxu0 }
 0x2d6   : > { %v4635_v22 = vmul.f32 -1.442695, %v6782_v12  ;;  %v4637_v23 = vmul.f32 -1.442695, %v6785_v13  ;;  %v6798_v24 = vadd.f32 %v1457_v20, %v6769_v4  ;;  %v6801_v25 = vadd.f32 %v1530_v21, %v6773_v5 }
 0x2d7   : > { %5514 = vpow2.f32 %v4634_v16  ;;  %v4648_v26 = vmul.f32 -1.442695, %v6790_v18  ;;  %v4650_v27 = vmul.f32 -1.442695, %v6793_v19 }
 0x2d8   : > { %5516 = vpow2.f32 %v4636_v17  ;;  %v4649_v28 = vmul.f32 -1.442695, %v6798_v24  ;;  %v4651_v29 = vmul.f32 -1.442695, %v6801_v25 }
 0x2d9   : > { %5518 = vpow2.f32 %v4635_v22 }
 0x2da   : > { %5520 = vpow2.f32 %v4637_v23  ;;  %v1461_v30 = vpop.f32.mrb[4].mxu1  ;;  %v1534_v31 = vpop.f32.mrb[12].mxu0 }
 0x2db   : > { %5522 = vpow2.f32 %v4648_v26  ;;  %v6808_v33 = vadd.f32 %v1461_v30, %v6761_v46  ;;  %v6811_v34 = vadd.f32 %v1534_v31, %v6765_v51  ;;  %v1463_v36 = vpop.f32.mrb[5].mxu1  ;;  %v1536_v37 = vpop.f32.mrb[13].mxu0 }
 0x2dc   : > { %5524 = vpow2.f32 %v4650_v27  ;;  %v6814_v38 = vadd.f32 %v1463_v36, %v6769_v4  ;;  %v6817_v39 = vadd.f32 %v1536_v37, %v6773_v5  ;;  %v1465_v40 = vpop.f32.mrb[6].mxu1  ;;  %v1538_v41 = vpop.f32.mrb[14].mxu0 }
 0x2dd   : > { %5526 = vpow2.f32 %v4649_v28  ;;  %v4662_v42 = vmul.f32 -1.442695, %v6808_v33  ;;  %v4664_v43 = vmul.f32 -1.442695, %v6811_v34  ;;  %v6822_v44 = vadd.f32 %v1465_v40, %v6761_v46  ;;  %v1467_v45 = vpop.f32.mrb[7].mxu1  ;;  %v1540_v47 = vpop.f32.mrb[15].mxu0 }
 0x2de   : > { %5528 = vpow2.f32 %v4651_v29  ;;  %v4663_v48 = vmul.f32 -1.442695, %v6814_v38  ;;  %v4665_v49 = vmul.f32 -1.442695, %v6817_v39  ;;  %v6828_v17 = vadd.f32 %v1538_v41, %v6765_v51 }
 0x2df   : > { %5530 = vpow2.f32 %v4662_v42  ;;  %v4676_v50 = vmul.f32 -1.442695, %v6822_v44  ;;  %v6831_v23 = vadd.f32 %v1467_v45, %v6769_v4  ;;  %v6835_v37 = vadd.f32 %v1540_v47, %v6773_v5 }
 0x2e0   : > { %5532 = vpow2.f32 %v4664_v43  ;;  %v4678_v36 = vmul.f32 -1.442695, %v6828_v17 }
 0x2e1   : > { %v5515_v52 = vpop.eup %5514  ;;  %5534 = vpow2.f32 %v4663_v48  ;;  %v4677_v43 = vmul.f32 -1.442695, %v6831_v23 }
 0x2e2   : > { %v5517_v53 = vpop.eup %5516  ;;  %v2264_v55 = vadd.f32 1.0, %v5515_v52  ;;  %5536 = vpow2.f32 %v4665_v49  ;;  %v1471_v56 = vpop.f32.mrb[8].mxu1 }
 0x2e3   : > { %v1544_v57 = vpop.f32.mrb[16].mxu0  ;;  %v5519_v58 = vpop.eup %5518  ;;  %v2266_v59 = vadd.f32 1.0, %v5517_v53  ;;  %5538 = vpow2.f32 %v4676_v50  ;;  %v6839_v45 = vadd.f32 %v1471_v56, %v6761_v46 }
 0x2e4   : > { %v1473_v60 = vpop.f32.mrb[9].mxu1  ;;  %v1546_v61 = vpop.f32.mrb[17].mxu0  ;;  %5540 = vrcp.f32 %v2264_v55  ;;  %v2265_v63 = vadd.f32 1.0, %v5519_v58  ;;  %v6844_v53 = vadd.f32 %v1544_v57, %v6765_v51 }
 0x2e5   : > { %v5521_v62 = vpop.eup %5520  ;;  %v1475_v6 = vpop.f32.mrb[10].mxu1  ;;  %5542 = vrcp.f32 %v2266_v59  ;;  %v6847_v47 = vadd.f32 %v1473_v60, %v6769_v4 }
 0x2e6   : > { %v1548_v7 = vpop.f32.mrb[18].mxu0  ;;  %v5523_v10 = vpop.eup %5522  ;;  %v2267_v11 = vadd.f32 1.0, %v5521_v62  ;;  %5544 = vrcp.f32 %v2265_v63  ;;  %v6854_v62 = vadd.f32 %v1546_v61, %v6773_v5  ;;  %v6857_v63 = vadd.f32 %v1475_v6, %v6761_v46 }
 0x2e7   : > { %v1477_v14 = vpop.f32.mrb[11].mxu1  ;;  %v5525_v15 = vpop.eup %5524  ;;  %v2278_v16 = vadd.f32 1.0, %v5523_v10  ;;  %v4679_v6 = vmul.f32 -1.442695, %v6835_v37 }
 0x2e8   : > { %v1550_v20 = vpop.f32.mrb[19].mxu0  ;;  %v5527_v21 = vpop.eup %5526  ;;  %5546 = vrcp.f32 %v2267_v11  ;;  %v2280_v22 = vadd.f32 1.0, %v5525_v15  ;;  %v6864_v15 = vadd.f32 %v1548_v7, %v6765_v51  ;;  %v4691_v7 = vmul.f32 -1.442695, %v6847_v47 }
 0x2e9   : > { %v5529_v26 = vpop.eup %5528  ;;  %5548 = vrcp.f32 %v2278_v16  ;;  %v2279_v27 = vadd.f32 1.0, %v5527_v21  ;;  %v6867_v16 = vadd.f32 %v1477_v14, %v6769_v4  ;;  %v4704_v14 = vmul.f32 -1.442695, %v6857_v63 }
 0x2ea   : > { %v5531_v28 = vpop.eup %5530  ;;  %5550 = vrcp.f32 %v2280_v22  ;;  %v2281_v29 = vadd.f32 1.0, %v5529_v26  ;;  %v1481_v40 = vpop.f32.mrb[12].mxu1  ;;  %8041 = vst [vmem:[#allocation28_spill] sm:$0xff] %v6864_v15  ;;  %v4690_v26 = vmul.f32 -1.442695, %v6839_v45 }
 0x2eb   : > { %v5533_v30 = vpop.eup %5532  ;;  %5552 = vrcp.f32 %v2279_v27  ;;  %v2292_v31 = vadd.f32 1.0, %v5531_v28  ;;  %v1554_v48 = vpop.f32.mrb[20].mxu0  ;;  %8042 = vst [vmem:[#allocation29_spill] sm:$0xff] %v6867_v16  ;;  %v4692_v27 = vmul.f32 -1.442695, %v6844_v53 }
 0x2ec   : > { %v5535_v41 = vpop.eup %5534  ;;  %5554 = vrcp.f32 %v2281_v29  ;;  %v2294_v42 = vadd.f32 1.0, %v5533_v30  ;;  %v6841_v49 = vpop.f32.mrb[13].mxu1  ;;  %v4693_v29 = vmul.f32 -1.442695, %v6854_v62  ;;  %v6898_v35 = vadd.f32 %v1554_v48, %v6765_v51 }
 0x2ed   : > { %v5537_v50 = vpop.eup %5536  ;;  %5556 = vrcp.f32 %v2292_v31  ;;  %v2293_v52 = vadd.f32 1.0, %v5535_v41  ;;  %v6849_v55 = vpop.f32.mrb[21].mxu0  ;;  %v4706_v31 = vmul.f32 -1.442695, %v6864_v15  ;;  %v4705_v41 = vmul.f32 -1.442695, %v6867_v16 }
 0x2ee   : > { %v6851_v58 = vpop.f32.mrb[14].mxu1  ;;  %v5539_v59 = vpop.eup %5538  ;;  %5558 = vrcp.f32 %v2294_v42  ;;  %v2295_v56 = vadd.f32 1.0, %v5537_v50  ;;  %v6880_v42 = vadd.f32 %v1550_v20, %v6773_v5 }
 0x2ef   : > { %v6859_v10 = vpop.f32.mrb[22].mxu0  ;;  %v6861_v57 = vpop.f32.mrb[15].mxu1  ;;  %5560 = vrcp.f32 %v2293_v52  ;;  %v2306_v60 = vadd.f32 1.0, %v5539_v59 }
 0x2f0   : > { %v5541_v11 = vpop.eup %5540  ;;  %v6869_v21 = vpop.f32.mrb[23].mxu0  ;;  %5562 = vrcp.f32 %v2295_v56 }
 0x2f1   : > { %v5543_v61 = vpop.eup %5542  ;;  %5564 = vrcp.f32 %v2306_v60  ;;  %v2600_v59 = vmul.f32 %v5541_v11, %v6776_v8  ;;  %v6889_v60 = vadd.f32 %v1481_v40, %v6761_v46 }
 0x2f2   : > { %v5545_v22 = vpop.eup %5544  ;;  %5566 = vpow2.f32 %v4678_v36  ;;  %v6882_v50 = vpop.f32.mrb[16].mxu1  ;;  %v2602_v20 = vmul.f32 %v5543_v61, %v6779_v9 }
 0x2f3   : > { %v5547_v28 = vpop.eup %5546  ;;  %5568 = vpow2.f32 %v4677_v43  ;;  %v6884_v52 = vpop.f32.mrb[24].mxu0  ;;  %v2601_v40 = vmul.f32 %v5545_v22, %v6782_v12  ;;  %v4707_v12 = vmul.f32 -1.442695, %v6880_v42 }
 0x2f4   : > { %v5549_v30 = vpop.eup %5548  ;;  %5570 = vpow2.f32 %v4679_v6  ;;  %v6891_v43 = vpop.f32.mrb[17].mxu1  ;;  %v2603_v61 = vmul.f32 %v5547_v28, %v6785_v13 }
 0x2f5   : > { %v5551_v36 = vpop.eup %5550  ;;  %v2614_v56 = vmul.f32 %v5549_v30, %v6790_v18  ;;  %v6893_v0 = vpop.f32.mrb[25].mxu0  ;;  %5572 = vpow2.f32 %v4690_v26 }
 0x2f6   : > { %v5553_v54 = vpop.eup %5552  ;;  %v2616_v32 = vmul.f32 %v5551_v36, %v6793_v19  ;;  %v6900_v8 = vpop.f32.mrb[18].mxu1  ;;  %5574 = vpow2.f32 %v4692_v27  ;;  %v4718_v27 = vmul.f32 -1.442695, %v6889_v60 }
 0x2f7   : > { %v6902_v18 = vpop.f32.mrb[26].mxu0  ;;  %v5555_v11 = vpop.eup %5554  ;;  %v2714_v6 = vadd.f32 %v2614_v56, %v2600_v59  ;;  %v2615_v30 = vmul.f32 %v5553_v54, %v6798_v24  ;;  %5576 = vpow2.f32 %v4691_v7 }
 0x2f8   : > { %v6906_v2 = vpop.f32.mrb[19].mxu1  ;;  %v6908_v9 = vpop.f32.mrb[27].mxu0  ;;  %v2740_v48 = vadd.f32 %v2616_v32, %v2602_v20  ;;  %v2617_v26 = vmul.f32 %v5555_v11, %v6801_v25  ;;  %5578 = vpow2.f32 %v4693_v29  ;;  %v4720_v25 = vmul.f32 -1.442695, %v6898_v35 }
 0x2f9   : > { %v5557_v19 = vpop.eup %5556  ;;  %v2727_v16 = vadd.f32 %v2615_v30, %v2601_v40  ;;  %5580 = vpow2.f32 %v4704_v14  ;;  %v7995_v40 = vsub.s32 6, %v6743_v1 }
 0x2fa   : > { %v5559_v36 = vpop.eup %5558  ;;  %v2628_v15 = vmul.f32 %v5557_v19, %v6808_v33  ;;  %v2753_v24 = vadd.f32 %v2617_v26, %v2603_v61  ;;  %5582 = vpow2.f32 %v4706_v31  ;;  %v6921_v29 = vpop.f32.mrb[20].mxu1  ;;  %v6945_v61 = vsub.s32 5, %v6743_v1 }
 0x2fb   : > { %v5561_v54 = vpop.eup %5560  ;;  %v2630_v22 = vmul.f32 %v5559_v36, %v6811_v34  ;;  %5584 = vpow2.f32 %v4705_v41  ;;  %v6923_v56 = vpop.f32.mrb[28].mxu0 }
 0x2fc   : > { %v5563_v59 = vpop.eup %5562  ;;  %v2715_v13 = vadd.f32 %v2714_v6, %v2628_v15  ;;  %v2629_v32 = vmul.f32 %v5561_v54, %v6814_v38  ;;  %5586 = vpow2.f32 %v4707_v12  ;;  %v6929_v38 = vsub.s32 4, %v6743_v1  ;;  %v6931_v31 = vpop.f32.mrb[21].mxu1  ;;  %8044 = vst [vmem:[#allocation31_spill] sm:$0xff] %v6945_v61 }
 0x2fd   : > { %v5565_v28 = vpop.eup %5564  ;;  %v6918_v7 = vadd.f32 %v2740_v48, %v2630_v22  ;;  %v2631_v33 = vmul.f32 %v5563_v59, %v6817_v39  ;;  %v6933_v20 = vpop.f32.mrb[29].mxu0  ;;  %5588 = vpow2.f32 %v4718_v27  ;;  %v7996_v54 = vsub.s32 7, %v6743_v1 }
 0x2fe   : > { %v5567_v34 = vpop.eup %5566  ;;  %v6925_v14 = vadd.f32 %v2727_v16, %v2629_v32  ;;  %v2642_v15 = vmul.f32 %v5565_v28, %v6822_v44  ;;  %8043 = vst [vmem:[#allocation30_spill] sm:$0xff] %v6929_v38  ;;  %v6938_v6 = vpop.f32.mrb[22].mxu1  ;;  %5590 = vpow2.f32 %v4720_v25  ;;  %v6954_v27 = vadd.f32 %v6841_v49, %v6769_v4 }
 0x2ff   : > { %v5569_v11 = vpop.eup %5568  ;;  %v6935_v39 = vadd.f32 %v2753_v24, %v2631_v33  ;;  %v2308_v41 = vadd.f32 1.0, %v5567_v34  ;;  %v6940_v16 = vpop.f32.mrb[30].mxu0  ;;  %v6958_v32 = vrot.slane %v6751_v3, %v6929_v38  ;;  %v6963_v33 = vrot.slane %v6751_v3, %v7995_v40 }
 0x300   : > { %v5571_v44 = vpop.eup %5570  ;;  %v6942_v30 = vadd.f32 %v2715_v13, %v2642_v15  ;;  %v2307_v19 = vadd.f32 1.0, %v5569_v11  ;;  %v6947_v48 = vpop.f32.mrb[23].mxu1  ;;  %v6967_v34 = vrot.slane %v6751_v3, %v6945_v61  ;;  %v6300_v11 = vmov 1966171168  }
 0x301   : > { %v6949_v26 = vpop.f32.mrb[31].mxu0  ;;  %v5573_v36 = vpop.eup %5572  ;;  %5592 = vrcp.f32 %v2308_v41  ;;  %v2309_v12 = vadd.f32 1.0, %v5571_v44  ;;  %v6969_v41 = vunpack.c.l.s4 %v6300_v11  ;;  %v6974_v44 = vrot.slane %v6751_v3, %v7996_v54 }
 0x302   : > { %v5575_v24 = vpop.eup %5574  ;;  %5594 = vrcp.f32 %v2307_v19  ;;  %v2320_v22 = vadd.f32 1.0, %v5573_v36  ;;  %v6976_v19 = vpop.f32.mrb[24].mxu1  ;;  %v6991_v40 = vadd.f32 %v6851_v58, %v6761_v46  ;;  %v7003_v38 = vadd.f32 %v6861_v57, %v6769_v4 }
 0x303   : > { %v5577_v59 = vpop.eup %5576  ;;  %5596 = vrcp.f32 %v2309_v12  ;;  %v2322_v13 = vadd.f32 1.0, %v5575_v24  ;;  %v6978_v36 = vpop.f32.mrb[32].mxu0 }
 0x304   : > { %v5579_v25 = vpop.eup %5578  ;;  %5598 = vrcp.f32 %v2320_v22  ;;  %v2321_v28 = vadd.f32 1.0, %v5577_v59  ;;  %v4719_v22 = vmul.f32 -1.442695, %v6954_v27  ;;  %v6983_v59 = vadd.f32 %v6849_v55, %v6773_v5 }
 0x305   : > { %v5581_v49 = vpop.eup %5580  ;;  %5600 = vrcp.f32 %v2322_v13  ;;  %v2323_v15 = vadd.f32 1.0, %v5579_v25  ;;  %v6985_v13 = vpop.f32.mrb[25].mxu1 }
 0x306   : > { %v5583_v12 = vpop.eup %5582  ;;  %5602 = vrcp.f32 %v2321_v28  ;;  %v2334_v24 = vadd.f32 1.0, %v5581_v49  ;;  %v6987_v25 = vpop.f32.mrb[33].mxu0  ;;  %v6995_v28 = vadd.f32 %v6859_v10, %v6765_v51 }
 0x307   : > { %v5585_v11 = vpop.eup %5584  ;;  %5604 = vrcp.f32 %v2323_v15  ;;  %v2336_v3 = vadd.f32 1.0, %v5583_v12  ;;  %v6997_v49 = vpop.f32.mrb[26].mxu1  ;;  %v7007_v15 = vadd.f32 %v6869_v21, %v6773_v5  ;;  %v7015_v12 = vadd.f32 %v6882_v50, %v6958_v32 }
 0x308   : > { %8045 = vst [vmem:[#allocation32_spill] sm:$0xff] %v6995_v28  ;;  %8046 = vst [vmem:[#allocation33_spill] sm:$0xff] %v6997_v49  ;;  %v6999_v54 = vpop.f32.mrb[34].mxu0  ;;  %v5587_v55 = vpop.eup %5586  ;;  %5606 = vrcp.f32 %v2334_v24  ;;  %v2335_v61 = vadd.f32 1.0, %v5585_v11  ;;  %v7019_v24 = vadd.f32 %v6884_v52, %v6963_v33  ;;  %v4721_v5 = vmul.f32 -1.442695, %v6983_v59 }
 0x309   : > { %8047 = vst [vmem:[#allocation34_spill] sm:$0xff] %v6999_v54  ;;  %8048 = vst [vmem:[#allocation35_spill] sm:$0xff] %v7007_v15  ;;  %v7009_v46 = vpop.f32.mrb[27].mxu1  ;;  %v7011_v58 = vpop.f32.mrb[35].mxu0  ;;  %5608 = vrcp.f32 %v2336_v3  ;;  %v2337_v10 = vadd.f32 1.0, %v5587_v55  ;;  %v7024_v21 = vadd.f32 %v6891_v43, %v6967_v34 }
 0x30a   : > { %8049 = vst [vmem:[#allocation36_spill] sm:$0xff] %v7009_v46  ;;  %8050 = vst [vmem:[#allocation37_spill] sm:$0xff] %v7011_v58  ;;  %v5589_v51 = vpop.eup %5588  ;;  %5610 = vrcp.f32 %v2335_v61  ;;  %v4732_v55 = vmul.f32 -1.442695, %v6991_v40  ;;  %v4734_v50 = vmul.f32 -1.442695, %v6995_v28 }
 0x30b   : > { %8051 = vst [vmem:[#allocation38_spill] sm:$0xff] %v7019_v24  ;;  %v5591_v4 = vpop.eup %5590  ;;  %v2348_v57 = vadd.f32 1.0, %v5589_v51  ;;  %5612 = vrcp.f32 %v2337_v10  ;;  %v4733_v61 = vmul.f32 -1.442695, %v7003_v38  ;;  %v4735_v51 = vmul.f32 -1.442695, %v7007_v15 }
 0x30c   : > { %v5593_v11 = vpop.eup %5592  ;;  %v2350_v3 = vadd.f32 1.0, %v5591_v4  ;;  %v4638_v43 = vmul.f32 -1.442695, %v7015_v12  ;;  %v4640_v10 = vmul.f32 -1.442695, %v7019_v24  ;;  %v7034_v4 = vpop.f32.mrb[28].mxu1 }
 0x30d   : > { %v5595_v58 = vpop.eup %5594  ;;  %v2644_v52 = vmul.f32 %v5593_v11, %v6828_v17  ;;  %5614 = vrcp.f32 %v2348_v57  ;;  %v7036_v49 = vpop.f32.mrb[36].mxu0  ;;  %v4639_v11 = vmul.f32 -1.442695, %v7024_v21 }
 0x30e   : > { %v5597_v46 = vpop.eup %5596  ;;  %v2643_v54 = vmul.f32 %v5595_v58, %v6831_v23  ;;  %5616 = vrcp.f32 %v2350_v3  ;;  %8052 = vst [vmem:[#allocation39_spill] sm:$0xff] %v7036_v49  ;;  %v7041_v15 = vpop.f32.mrb[29].mxu1  ;;  %v7049_v49 = vadd.f32 %v6893_v0, %v6974_v44 }
 0x30f   : > { %v5599_v28 = vpop.eup %5598  ;;  %v2742_v17 = vadd.f32 %v6918_v7, %v2644_v52  ;;  %v2645_v57 = vmul.f32 %v5597_v46, %v6835_v37  ;;  %5618 = vpow2.f32 %v4719_v22  ;;  %v7043_v23 = vpop.f32.mrb[37].mxu0 }
 0x310   : > { %v5601_v58 = vpop.eup %5600  ;;  %v2729_v3 = vadd.f32 %v6925_v14, %v2643_v54  ;;  %v2656_v24 = vmul.f32 %v5599_v28, %v6839_v45  ;;  %5620 = vpow2.f32 %v4721_v5  ;;  %v7051_v7 = vpop.f32.mrb[30].mxu1  ;;  %v7059_v14 = vadd.f32 %v6900_v8, %v6958_v32 }
 0x311   : > { %v7053_v37 = vpop.f32.mrb[38].mxu0  ;;  %v5603_v22 = vpop.eup %5602  ;;  %v2755_v46 = vadd.f32 %v6935_v39, %v2645_v57  ;;  %v2658_v52 = vmul.f32 %v5601_v58, %v6844_v53  ;;  %5622 = vpow2.f32 %v4732_v55  ;;  %v7069_v39 = vadd.f32 %v6902_v18, %v6963_v33  ;;  %v8055_v18 = vld [vmem:[#allocation28_spill] sm:$0xff] }
 0x312   : > { %v7061_v45 = vpop.f32.mrb[31].mxu1  ;;  %v7063_v54 = vpop.f32.mrb[39].mxu0  ;;  %v2717_v28 = vadd.f32 %v6942_v30, %v2656_v24  ;;  %v2657_v5 = vmul.f32 %v5603_v22, %v6847_v47  ;;  %5624 = vpow2.f32 %v4734_v50  ;;  %v7074_v8 = vadd.f32 %v6906_v2, %v6967_v34  ;;  %v8056_v2 = vld [vmem:[#allocation29_spill] sm:$0xff] }
 0x313   : > { %8053 = vst [vmem:[#allocation40_spill] sm:$0xff] %v7061_v45  ;;  %8054 = vst [vmem:[#allocation41_spill] sm:$0xff] %v7063_v54  ;;  %v5605_v0 = vpop.eup %5604  ;;  %v2743_v55 = vadd.f32 %v2742_v17, %v2658_v52  ;;  %5626 = vpow2.f32 %v4733_v61  ;;  %v4641_v47 = vmul.f32 -1.442695, %v7049_v49  ;;  %v4652_v17 = vmul.f32 -1.442695, %v7059_v14 }
 0x314   : > { %v5607_v53 = vpop.eup %5606  ;;  %v2659_v57 = vmul.f32 %v5605_v0, %v6854_v62  ;;  %v2730_v54 = vadd.f32 %v2729_v3, %v2657_v5  ;;  %5628 = vpow2.f32 %v4735_v51  ;;  %v5370_v62 = vld [vmem:[#allocation11 + $0x40] sm:$0xff]   ;;  %v4654_v3 = vmul.f32 -1.442695, %v7069_v39  ;;  %v7084_v51 = vpop.f32.mrb[40].mxu0 }
 0x315   : > { %v5609_v58 = vpop.eup %5608  ;;  %v2670_v30 = vmul.f32 %v5607_v53, %v6857_v63  ;;  %5630 = vpow2.f32 %v4638_v43  ;;  %v5371_v61 = vld [vmem:[#allocation11 + $0xc0] sm:$0xff]   ;;  %v7082_v63 = vpop.f32.mrb[32].mxu1  ;;  %4875 = vmatprep.subr.bf16.mxu0 %v5370_v62 }
 0x316   : > { %v5611_v24 = vpop.eup %5610  ;;  %v2756_v50 = vadd.f32 %v2755_v46, %v2659_v57  ;;  %v2672_v22 = vmul.f32 %v5609_v58, %v8055_v18  ;;  %5632 = vpow2.f32 %v4640_v10  ;;  %v5372_v5 = vld [vmem:[#allocation11] sm:$0xff]   ;;  %v4653_v58 = vmul.f32 -1.442695, %v7074_v8  ;;  %v7088_v18 = vpop.f32.mrb[33].mxu1  ;;  %4897 = vmatprep.subr.bf16.mxu1 %v5371_v61 }
 0x317   : > { %v5613_v52 = vpop.eup %5612  ;;  %v2718_v0 = vadd.f32 %v2717_v28, %v2670_v30  ;;  %v2671_v45 = vmul.f32 %v5611_v24, %v8056_v2  ;;  %v5373_v46 = vld [vmem:[#allocation11 + $0x80] sm:$0xff]   ;;  %5634 = vpow2.f32 %v4639_v11  ;;  %v7090_v28 = vpop.f32.mrb[41].mxu0  ;;  %4876 = vmatpush3.bf16.msra.mxu0 %v5372_v5  ;;  %v5377_v5 = vld [vmem:[#allocation11 + $0x88] sm:$0xff]  }
 0x318   : > { %v5615_v53 = vpop.eup %5614  ;;  %v2744_v57 = vadd.f32 %v2743_v55, %v2672_v22  ;;  %v2673_v43 = vmul.f32 %v5613_v52, %v6880_v42  ;;  %5636 = vpow2.f32 %v4641_v47  ;;  %v7095_v2 = vpop.f32.mrb[34].mxu1  ;;  %4898 = vmatpush3.bf16.msra.mxu1 %v5373_v46 }
 0x319   : > { %v5617_v10 = vpop.eup %5616  ;;  %v7092_v30 = vadd.f32 %v2730_v54, %v2671_v45  ;;  %v2684_v24 = vmul.f32 %v5615_v53, %v6889_v60  ;;  %8057 = vst [vmem:[#allocation28_spill] sm:$0xff] %v7095_v2  ;;  %v7097_v55 = vpop.f32.mrb[42].mxu0  ;;  %5638 = vpow2.f32 %v4652_v17  ;;  %v5374_v45 = vld [vmem:[#allocation11 + $0x48] sm:$0xff]  }
 0x31a   : > { %8058 = vst [vmem:[#allocation29_spill] sm:$0xff] %v7097_v55  ;;  %v5619_v42 = vpop.eup %5618  ;;  %v7099_v11 = vadd.f32 %v2756_v50, %v2673_v43  ;;  %v2686_v22 = vmul.f32 %v5617_v10, %v6898_v35  ;;  %v7102_v62 = vpop.f32.mrb[35].mxu1  ;;  %v5375_v54 = vld [vmem:[#allocation11 + $0xc8] sm:$0xff]   ;;  %5640 = vpow2.f32 %v4654_v3  ;;  %v2916_v35 = vunpack.c.0.s8 %v6969_v41  ;;  %4877 = vmatprep.subr.bf16.mxu0 %v5374_v45 }
 0x31b   : > { %8059 = vst [vmem:[#allocation42_spill] sm:$0xff] %v7102_v62  ;;  %v7104_v61 = vpop.f32.mrb[43].mxu0  ;;  %v5621_v60 = vpop.eup %5620  ;;  %v7106_v47 = vadd.f32 %v2718_v0, %v2684_v24  ;;  %v2349_v52 = vadd.f32 1.0, %v5619_v42  ;;  %v5376_v53 = vld [vmem:[#allocation11 + $0x8] sm:$0xff]   ;;  %5642 = vpow2.f32 %v4653_v58  ;;  %4899 = vmatprep.subr.bf16.mxu1 %v5375_v54  ;;  %v7113_v0 = vadd.f32 %v6908_v9, %v6974_v44 }
 0x31c   : > { %8060 = vst [vmem:[#allocation43_spill] sm:$0xff] %v7104_v61  ;;  %v5623_v46 = vpop.eup %5622  ;;  %v7108_v55 = vadd.f32 %v2744_v57, %v2686_v22  ;;  %v2351_v50 = vadd.f32 1.0, %v5621_v60  ;;  %4878 = vmatpush3.bf16.msra.mxu0 %v5376_v53  ;;  %4900 = vmatpush3.bf16.msra.mxu1 %v5377_v5  ;;  %v7117_v57 = vadd.f32 %v6921_v29, %v6958_v32  ;;  %v7123_v42 = vpop.f32.mrb[36].mxu1 }
 0x31d   : > { %v5625_v17 = vpop.eup %5624  ;;  %5644 = vrcp.f32 %v2349_v52  ;;  %v2362_v43 = vadd.f32 1.0, %v5623_v46  ;;  %v7121_v24 = vadd.f32 %v6923_v56, %v6963_v33  ;;  %8061 = vst [vmem:[#allocation44_spill] sm:$0xff] %v7123_v42  ;;  %v7125_v9 = vpop.f32.mrb[44].mxu0  ;;  %v7128_v45 = vsub.s32 %v2916_v35, %v6743_v1  ;;  %v5379_v1 = vld [vmem:[#allocation11 + $0xd0] sm:$0xff]  }
 0x31e   : > { %v5627_v3 = vpop.eup %5626  ;;  %5646 = vrcp.f32 %v2351_v50  ;;  %v2364_v10 = vadd.f32 1.0, %v5625_v17  ;;  %8062 = vst [vmem:[#allocation45_spill] sm:$0xff] %v7125_v9  ;;  %v7132_v29 = vadd.f32 %v6931_v31, %v6967_v34  ;;  %v7134_v60 = vpop.f32.mrb[37].mxu1  ;;  %v7137_v53 = vmul.f32 -1.442695, %v7113_v0  ;;  %4901 = vmatprep.subr.bf16.mxu1 %v5379_v1 }
 0x31f   : > { %v5629_v41 = vpop.eup %5628  ;;  %5648 = vrcp.f32 %v2362_v43  ;;  %v2363_v58 = vadd.f32 1.0, %v5627_v3  ;;  %8063 = vst [vmem:[#allocation46_spill] sm:$0xff] %v7134_v60  ;;  %v7141_v5 = vadd.f32 %v6933_v20, %v6974_v44  ;;  %v7143_v46 = vpop.f32.mrb[45].mxu0  ;;  %v7148_v17 = vmul.f32 -1.442695, %v7117_v57 }
 0x320   : > { %v5631_v22 = vpop.eup %5630  ;;  %5650 = vrcp.f32 %v2364_v10  ;;  %v2365_v54 = vadd.f32 1.0, %v5629_v41  ;;  %8064 = vst [vmem:[#allocation47_spill] sm:$0xff] %v7143_v46  ;;  %v7145_v50 = vpop.f32.mrb[38].mxu1  ;;  %v7152_v43 = vadd.f32 %v6938_v6, %v6958_v32  ;;  %v7186_v9 = vadd.f32 %v6976_v19, %v6958_v32 }
 0x321   : > { %v5633_v52 = vpop.eup %5632  ;;  %5652 = vrcp.f32 %v2363_v58  ;;  %v2268_v56 = vadd.f32 1.0, %v5631_v22  ;;  %8065 = vst [vmem:[#allocation48_spill] sm:$0xff] %v7145_v50  ;;  %v7154_v3 = vpop.f32.mrb[46].mxu0  ;;  %v7159_v58 = vmul.f32 -1.442695, %v7121_v24  ;;  %v7163_v22 = vadd.f32 %v6940_v16, %v6963_v33 }
 0x322   : > { %v5635_v35 = vpop.eup %5634  ;;  %5654 = vrcp.f32 %v2365_v54  ;;  %v2270_v31 = vadd.f32 1.0, %v5633_v52  ;;  %8066 = vst [vmem:[#allocation49_spill] sm:$0xff] %v7154_v3  ;;  %v7156_v10 = vpop.f32.mrb[39].mxu1  ;;  %v5378_v52 = vld [vmem:[#allocation11 + $0x50] sm:$0xff]   ;;  %v7168_v3 = vmul.f32 -1.442695, %v7132_v29  ;;  %v7193_v1 = vadd.f32 %v6978_v36, %v6963_v33 }
 0x323   : > { %8067 = vst [vmem:[#allocation50_spill] sm:$0xff] %v7156_v10  ;;  %v5637_v20 = vpop.eup %5636  ;;  %5656 = vrcp.f32 %v2268_v56  ;;  %v2269_v41 = vadd.f32 1.0, %v5635_v35  ;;  %v7165_v54 = vpop.f32.mrb[47].mxu0  ;;  %v7172_v56 = vadd.f32 %v6947_v48, %v6967_v34  ;;  %v5380_v35 = vld [vmem:[#allocation11 + $0x10] sm:$0xff]   ;;  %v7175_v60 = vmul.f32 -1.442695, %v7141_v5  ;;  %4879 = vmatprep.subr.bf16.mxu0 %v5378_v52 }
 0x324   : > { %8068 = vst [vmem:[#allocation51_spill] sm:$0xff] %v7165_v54  ;;  %v5639_v6 = vpop.eup %5638  ;;  %5658 = vrcp.f32 %v2270_v31  ;;  %v2271_v50 = vadd.f32 1.0, %v5637_v20  ;;  %v5381_v10 = vld [vmem:[#allocation11 + $0x90] sm:$0xff]   ;;  %v7179_v54 = vadd.f32 %v6949_v26, %v6974_v44  ;;  %v7182_v48 = vmul.f32 -1.442695, %v7152_v43  ;;  %4880 = vmatpush3.bf16.msra.mxu0 %v5380_v35  ;;  %v5382_v52 = vld [vmem:[#allocation11 + $0x58] sm:$0xff]  }
 0x325   : > { %v5641_v46 = vpop.eup %5640  ;;  %5660 = vrcp.f32 %v2269_v41  ;;  %v2282_v16 = vadd.f32 1.0, %v5639_v6  ;;  %4902 = vmatpush3.bf16.msra.mxu1 %v5381_v10  ;;  %v7189_v26 = vmul.f32 -1.442695, %v7163_v22  ;;  %v7201_v10 = vmul.f32 -1.442695, %v7172_v56  ;;  %4881 = vmatprep.subr.bf16.mxu0 %v5382_v52 }
 0x326   : > { %v5643_v31 = vpop.eup %5642  ;;  %5662 = vrcp.f32 %v2271_v50  ;;  %v2284_v20 = vadd.f32 1.0, %v5641_v46  ;;  %v7195_v46 = vpop.f32.mrb[40].mxu1  ;;  %v7205_v35 = vadd.f32 %v6985_v13, %v6967_v34 }
 0x327   : > { %v5645_v41 = vpop.eup %5644  ;;  %5664 = vrcp.f32 %v2282_v16  ;;  %v2283_v6 = vadd.f32 1.0, %v5643_v31  ;;  %8069 = vst [vmem:[#allocation52_spill] sm:$0xff] %v7195_v46  ;;  %v7197_v50 = vpop.f32.mrb[48].mxu0  ;;  %v5383_v31 = vld [vmem:[#allocation11 + $0xd8] sm:$0xff]  }
 0x328   : > { %8070 = vst [vmem:[#allocation53_spill] sm:$0xff] %v7197_v50  ;;  %v5647_v42 = vpop.eup %5646  ;;  %v2685_v19 = vmul.f32 %v5645_v41, %v6954_v27  ;;  %5666 = vrcp.f32 %v2284_v20  ;;  %v7207_v16 = vpop.f32.mrb[41].mxu1  ;;  %v5384_v46 = vld [vmem:[#allocation11 + $0x18] sm:$0xff]   ;;  %v7213_v27 = vmul.f32 -1.442695, %v7179_v54  ;;  %v7217_v20 = vadd.f32 %v6987_v25, %v6974_v44  ;;  %4903 = vmatprep.subr.bf16.mxu1 %v5383_v31  ;;  %v8079_v31 = vld [vmem:[#allocation35_spill] sm:$0xff] }
 0x329   : > { %8071 = vst [vmem:[#allocation54_spill] sm:$0xff] %v7207_v16  ;;  %v7209_v36 = vpop.f32.mrb[49].mxu0  ;;  %v5649_v61 = vpop.eup %5648  ;;  %v2687_v50 = vmul.f32 %v5647_v42, %v6983_v59  ;;  %5668 = vrcp.f32 %v2283_v6  ;;  %v5385_v16 = vld [vmem:[#allocation11 + $0x98] sm:$0xff]   ;;  %v7227_v59 = vmul.f32 -1.442695, %v7186_v9  ;;  %4882 = vmatpush3.bf16.msra.mxu0 %v5384_v46 }
 0x32a   : > { %8072 = vst [vmem:[#allocation55_spill] sm:$0xff] %v7209_v36  ;;  %8073 = vst [vmem:[#allocation56_spill] sm:$0xff] %v7217_v20  ;;  %v7219_v41 = vpop.f32.mrb[42].mxu1  ;;  %v7221_v13 = vpop.f32.mrb[50].mxu0  ;;  %v2732_v62 = vadd.f32 %v7092_v30, %v2685_v19  ;;  %v2698_v2 = vmul.f32 %v5649_v61, %v6991_v40  ;;  %5670 = vpow2.f32 %v7137_v53  ;;  %v7237_v40 = vmul.f32 -1.442695, %v7193_v1  ;;  %4904 = vmatpush3.bf16.msra.mxu1 %v5385_v16 }
 0x32b   : > { %8074 = vst [vmem:[#allocation57_spill] sm:$0xff] %v7219_v41  ;;  %8075 = vst [vmem:[#allocation58_spill] sm:$0xff] %v7221_v13  ;;  %v5651_v36 = vpop.eup %5650  ;;  %v7229_v42 = vpop.f32.mrb[43].mxu1  ;;  %v2758_v52 = vadd.f32 %v7099_v11, %v2687_v50  ;;  %v8078_v13 = vld [vmem:[#allocation32_spill] sm:$0xff]  ;;  %5672 = vpow2.f32 %v7148_v17  ;;  %v5386_v30 = vld [vmem:[#allocation11 + $0x60] sm:$0xff]  }
 0x32c   : > { %8076 = vst [vmem:[#allocation59_spill] sm:$0xff] %v7229_v42  ;;  %v7231_v25 = vpop.f32.mrb[51].mxu0  ;;  %v5653_v6 = vpop.eup %5652  ;;  %v2700_v41 = vmul.f32 %v5651_v36, %v8078_v13  ;;  %v5387_v61 = vld [vmem:[#allocation11 + $0xe0] sm:$0xff]   ;;  %v2720_v19 = vadd.f32 %v7106_v47, %v2698_v2  ;;  %5674 = vpow2.f32 %v7159_v58  ;;  %v7243_v46 = vmul.f32 -1.442695, %v7205_v35  ;;  %4883 = vmatprep.subr.bf16.mxu0 %v5386_v30  ;;  %v8080_v58 = vld [vmem:[#allocation33_spill] sm:$0xff] }
 0x32d   : > { %8077 = vst [vmem:[#allocation60_spill] sm:$0xff] %v7231_v25  ;;  %v5655_v53 = vpop.eup %5654  ;;  %v2699_v25 = vmul.f32 %v5653_v6, %v7003_v38  ;;  %v5388_v11 = vld [vmem:[#allocation11 + $0x20] sm:$0xff]   ;;  %5676 = vpow2.f32 %v7168_v3  ;;  %v7249_v16 = vmul.f32 -1.442695, %v7217_v20  ;;  %4905 = vmatprep.subr.bf16.mxu1 %v5387_v61  ;;  %v7254_v6 = vadd.f32 %v8080_v58, %v6958_v32  ;;  %v7260_v30 = vpop.f32.mrb[52].mxu0  ;;  %v8083_v42 = vld [vmem:[#allocation38_spill] sm:$0xff] }
 0x32e   : > { %v5389_v50 = vld [vmem:[#allocation11 + $0xa0] sm:$0xff]   ;;  %v5657_v36 = vpop.eup %5656  ;;  %v2746_v17 = vadd.f32 %v7108_v55, %v2700_v41  ;;  %v2701_v13 = vmul.f32 %v5655_v53, %v8079_v31  ;;  %v2721_v2 = vrot.slane %v2720_v19, 4  ;;  %5678 = vpow2.f32 %v7175_v60  ;;  %4884 = vmatpush3.bf16.msra.mxu0 %v5388_v11  ;;  %v7258_v31 = vpop.f32.mrb[44].mxu1  ;;  %8082 = vst [vmem:[#allocation35_spill] sm:$0xff] %v7260_v30 }
 0x32f   : > { %v5659_v38 = vpop.eup %5658  ;;  %v2733_v47 = vadd.f32 %v2732_v62, %v2699_v25  ;;  %v2604_v3 = vmul.f32 %v5657_v36, %v7015_v12  ;;  %5680 = vpow2.f32 %v7182_v48  ;;  %8081 = vst [vmem:[#allocation32_spill] sm:$0xff] %v7258_v31  ;;  %4906 = vmatpush3.bf16.msra.mxu1 %v5389_v50  ;;  %v5390_v62 = vld [vmem:[#allocation11 + $0x68] sm:$0xff]   ;;  %v7268_v12 = vpop.f32.mrb[53].mxu0 }
 0x330   : > { %v5661_v55 = vpop.eup %5660  ;;  %v2747_v41 = vrot.slane %v2746_v17, 4  ;;  %v2759_v53 = vadd.f32 %v2758_v52, %v2701_v13  ;;  %v5391_v25 = vld [vmem:[#allocation11 + $0xe8] sm:$0xff]   ;;  %v2722_v61 = vadd.f32 %v2721_v2, %v2720_v19  ;;  %v2606_v11 = vmul.f32 %v5659_v38, %v8083_v42  ;;  %v7266_v52 = vpop.f32.mrb[45].mxu1  ;;  %8084 = vst [vmem:[#allocation33_spill] sm:$0xff] %v7268_v12  ;;  %4885 = vmatprep.subr.bf16.mxu0 %v5390_v62  ;;  %v5394_v62 = vld [vmem:[#allocation11 + $0x70] sm:$0xff]  }
 0x331   : > { %v7262_v60 = vpop.eup %5662  ;;  %v2734_v58 = vrot.slane %v2733_v47, 4  ;;  %5682 = vpow2.f32 %v7189_v26  ;;  %v5392_v48 = vld [vmem:[#allocation11 + $0x28] sm:$0xff]   ;;  %v2605_v50 = vmul.f32 %v5661_v55, %v7024_v21  ;;  %v7272_v20 = vpop.f32.mrb[46].mxu1  ;;  %4907 = vmatprep.subr.bf16.mxu1 %v5391_v25  ;;  %v5395_v25 = vld [vmem:[#allocation11 + $0xf0] sm:$0xff]  }
 0x332   : > { %v5393_v36 = vld [vmem:[#allocation11 + $0xa8] sm:$0xff]   ;;  %v5665_v13 = vpop.eup %5664  ;;  %v2748_v31 = vadd.f32 %v2747_v41, %v2746_v17  ;;  %v2760_v30 = vrot.slane %v2759_v53, 4  ;;  %5684 = vpow2.f32 %v7201_v10  ;;  %v7274_v19 = vpop.f32.mrb[54].mxu0  ;;  %v2723_v42 = vrot.slane %v2722_v61, 2  ;;  %4886 = vmatpush3.bf16.msra.mxu0 %v5392_v48 }
 0x333   : > { %8085 = vst [vmem:[#allocation38_spill] sm:$0xff] %v7274_v19  ;;  %v5667_v26 = vpop.eup %5666  ;;  %v2735_v38 = vadd.f32 %v2734_v58, %v2733_v47  ;;  %v2618_v2 = vmul.f32 %v5665_v13, %v7059_v14  ;;  %5686 = vpow2.f32 %v7213_v27  ;;  %v7278_v12 = vpop.f32.mrb[47].mxu1  ;;  %4908 = vmatpush3.bf16.msra.mxu1 %v5393_v36  ;;  %4887 = vmatprep.subr.bf16.mxu0 %v5394_v62 }
 0x334   : > { %8086 = vst [vmem:[#allocation61_spill] sm:$0xff] %v7278_v12  ;;  %v7280_v17 = vpop.f32.mrb[55].mxu0  ;;  %v5669_v21 = vpop.eup %5668  ;;  %v2749_v10 = vrot.slane %v2748_v31, 2  ;;  %v2761_v55 = vadd.f32 %v2760_v30, %v2759_v53  ;;  %v2620_v41 = vmul.f32 %v5667_v26, %v7069_v39  ;;  %5688 = vpow2.f32 %v7227_v59  ;;  %4909 = vmatprep.subr.bf16.mxu1 %v5395_v25 }
 0x335   : > { %8087 = vst [vmem:[#allocation62_spill] sm:$0xff] %v7280_v17  ;;  %v5671_v47 = vpop.eup %5670  ;;  %v2724_v58 = vadd.f32 %v2723_v42, %v2722_v61  ;;  %v2736_v14 = vrot.slane %v2735_v38, 2  ;;  %v7284_v13 = vadd.f32 %v2618_v2, %v2604_v3  ;;  %v2619_v27 = vmul.f32 %v5669_v21, %v7074_v8  ;;  %v7291_v8 = vpop.f32.mrb[48].mxu1 }
 0x336   : > { %v5673_v12 = vpop.eup %5672  ;;  %v2750_v17 = vadd.f32 %v2749_v10, %v2748_v31  ;;  %v2762_v48 = vrot.slane %v2761_v55, 2  ;;  %v7287_v19 = vadd.f32 %v2620_v41, %v2606_v11  ;;  %v2285_v53 = vadd.f32 1.0, %v5671_v47  ;;  %v7293_v41 = vpop.f32.mrb[49].mxu1  ;;  %v5396_v47 = vld [vmem:[#allocation11 + $0x30] sm:$0xff]  }
 0x337   : > { %v5675_v39 = vpop.eup %5674  ;;  %v2725_v59 = vrot.slane %v2724_v58, 1  ;;  %v2737_v30 = vadd.f32 %v2736_v14, %v2735_v38  ;;  %v7289_v36 = vadd.f32 %v2619_v27, %v2605_v50  ;;  %v2296_v26 = vadd.f32 1.0, %v5673_v12  ;;  %v7295_v12 = vpop.f32.mrb[50].mxu1  ;;  %4888 = vmatpush3.bf16.msra.mxu0 %v5396_v47  ;;  %v5400_v47 = vld [vmem:[#allocation11 + $0x38] sm:$0xff]  }
 0x338   : > { %v5677_v61 = vpop.eup %5676  ;;  %v2751_v42 = vrot.slane %v2750_v17, 1  ;;  %v2763_v3 = vadd.f32 %v2762_v48, %v2761_v55  ;;  %5690 = vrcp.f32 %v2285_v53  ;;  %v2298_v2 = vadd.f32 1.0, %v5675_v39  ;;  %v5397_v55 = vld [vmem:[#allocation11 + $0xb0] sm:$0xff]   ;;  %v7301_v39 = vpop.f32.mrb[51].mxu1 }
 0x339   : > { %v5679_v31 = vpop.eup %5678  ;;  %v2726_v21 = vadd.f32 %v2725_v59, %v2724_v58  ;;  %v2738_v11 = vrot.slane %v2737_v30, 1  ;;  %5692 = vrcp.f32 %v2296_v26  ;;  %v2297_v10 = vadd.f32 1.0, %v5677_v61  ;;  %v8088_v58 = vld [vmem:[#allocation34_spill] sm:$0xff]  ;;  %v8090_v61 = vld [vmem:[#allocation36_spill] sm:$0xff]  ;;  %4910 = vmatpush3.bf16.msra.mxu1 %v5397_v55 }
 0x33a   : > { %v5681_v62 = vpop.eup %5680  ;;  %v2752_v25 = vadd.f32 %v2751_v42, %v2750_v17  ;;  %v2764_v38 = vrot.slane %v2763_v3, 1  ;;  %5694 = vrcp.f32 %v2298_v2  ;;  %v2299_v50 = vadd.f32 1.0, %v5679_v31  ;;  %8089 = vst [vmem:[#allocation34_spill] sm:$0xff] %v7301_v39  ;;  %v5401_v55 = vld [vmem:[#allocation11 + $0xb8] sm:$0xff]  }
 0x33b   : > { %v5683_v14 = vpop.eup %5682  ;;  %v2739_v27 = vadd.f32 %v2738_v11, %v2737_v30  ;;  %5696 = vrcp.f32 %v2297_v10  ;;  %v2310_v48 = vadd.f32 1.0, %v5681_v62  ;;  %v7299_v53 = vadd.f32 %v8088_v58, %v6963_v33  ;;  %v8091_v11 = vld [vmem:[#allocation37_spill] sm:$0xff]  ;;  %v5398_v62 = vld [vmem:[#allocation11 + $0x78] sm:$0xff]  }
 0x33c   : > { %v5685_v59 = vpop.eup %5684  ;;  %v2765_v26 = vadd.f32 %v2764_v38, %v2763_v3  ;;  %5698 = vrcp.f32 %v2299_v50  ;;  %v2312_v17 = vadd.f32 1.0, %v5683_v14  ;;  %v7305_v42 = vadd.f32 %v8090_v61, %v6967_v34  ;;  %v5399_v58 = vld [vmem:[#allocation11 + $0xf8] sm:$0xff]   ;;  %4889 = vmatprep.subr.bf16.mxu0 %v5398_v62  ;;  %v5402_v61 = vld [vmem:[#allocation11 + $0x140] sm:$0xff]  }
 0x33d   : > { %v5687_v2 = vpop.eup %5686  ;;  %v2910_v30 = vcombine.low %v2726_v21, %v2739_v27  ;;  %5700 = vrcp.f32 %v2310_v48  ;;  %v2311_v31 = vadd.f32 1.0, %v5685_v59  ;;  %v7309_v10 = vadd.f32 %v8091_v11, %v6974_v44  ;;  %4911 = vmatprep.subr.bf16.mxu1 %v5399_v58  ;;  %4890 = vmatpush3.bf16.msra.mxu0 %v5400_v47 }
 0x33e   : > { %v5689_v39 = vpop.eup %5688  ;;  %v2911_v3 = vcombine.low %v2752_v25, %v2765_v26  ;;  %5702 = vrcp.f32 %v2312_v17  ;;  %v2313_v38 = vadd.f32 1.0, %v5687_v2  ;;  %v7313_v50 = vadd.f32 %v7034_v4, %v6958_v32  ;;  %v8092_v4 = vld [vmem:[#allocation39_spill] sm:$0xff]  ;;  %v7327_v26 = vpop.f32.mrb[52].mxu1  ;;  %4912 = vmatpush3.bf16.msra.mxu1 %v5401_v55  ;;  %4919 = vmatprep.subr.bf16.mxu0 %v5402_v61 }
 0x33f   : > { %v7316_v21 = vrot.slane %v2910_v30, %v7128_v45  ;;  %5704 = vrcp.f32 %v2311_v31  ;;  %v2324_v14 = vadd.f32 1.0, %v5689_v39  ;;  %v4708_v27 = vmul.f32 -1.442695, %v7254_v6  ;;  %8093 = vst [vmem:[#allocation36_spill] sm:$0xff] %v7327_v26  ;;  %v7330_v17 = vpop.f32.mrb[53].mxu1  ;;  %v5403_v2 = vld [vmem:[#allocation11 + $0x1c0] sm:$0xff]  }
 0x340   : > { %v7320_v48 = vrot.slane %v2911_v3, %v7128_v45  ;;  %5706 = vrcp.f32 %v2313_v38  ;;  %v4710_v25 = vmul.f32 -1.442695, %v7299_v53  ;;  %v7325_v59 = vadd.f32 %v8092_v4, %v6963_v33  ;;  %8094 = vst [vmem:[#allocation37_spill] sm:$0xff] %v7330_v17  ;;  %v7337_v58 = vpop.f32.mrb[54].mxu1  ;;  %4941 = vmatprep.subr.bf16.mxu1 %v5403_v2 }
 0x341   : > { %5708 = vrcp.f32 %v2324_v14  ;;  %v4709_v39 = vmul.f32 -1.442695, %v7305_v42  ;;  %v4711_v11 = vmul.f32 -1.442695, %v7309_v10  ;;  %v4722_v62 = vmul.f32 -1.442695, %v7313_v50 }
 0x342   : > { %v5691_v30 = vpop.eup %5690  ;;  %5710 = vpow2.f32 %v7237_v40  ;;  %8095 = vst [vmem:[#allocation39_spill] sm:$0xff] %v7337_v58  ;;  %v2607_v38 = vmul.f32 %v7262_v60, %v7049_v49  ;;  %v7345_v55 = vadd.f32 %v7041_v15, %v6967_v34  ;;  %v7347_v14 = vpop.f32.mrb[55].mxu1  ;;  %v4724_v31 = vmul.f32 -1.442695, %v7325_v59 }
 0x343   : > { %v5693_v3 = vpop.eup %5692  ;;  %v2621_v47 = vmul.f32 %v5691_v30, %v7113_v0  ;;  %5712 = vpow2.f32 %v7243_v46  ;;  %8096 = vst [vmem:[#allocation63_spill] sm:$0xff] %v7347_v14  ;;  %v7354_v49 = vadd.f32 %v7043_v23, %v6974_v44  ;;  %v7359_v60 = vadd.f32 %v7051_v7, %v6958_v32 }
 0x344   : > { %v5695_v40 = vpop.eup %5694  ;;  %v2632_v4 = vmul.f32 %v5693_v3, %v7117_v57  ;;  %5714 = vpow2.f32 %v7249_v16  ;;  %v7365_v2 = vadd.f32 %v7053_v37, %v6963_v33 }
 0x345   : > { %v5697_v0 = vpop.eup %5696  ;;  %v2805_v46 = vadd.f32 %v2621_v47, %v2607_v38  ;;  %v2634_v15 = vmul.f32 %v5695_v40, %v7121_v24  ;;  %5716 = vpow2.f32 %v4708_v27  ;;  %v4723_v27 = vmul.f32 -1.442695, %v7345_v55 }
 0x346   : > { %v5699_v61 = vpop.eup %5698  ;;  %v2767_v57 = vadd.f32 %v7284_v13, %v2632_v4  ;;  %v2633_v16 = vmul.f32 %v5697_v0, %v7132_v29  ;;  %5718 = vpow2.f32 %v4710_v25  ;;  %v4725_v29 = vmul.f32 -1.442695, %v7354_v49  ;;  %v7373_v25 = vpop.f32.mrb[56].mxu1 }
 0x347   : > { %v5701_v23 = vpop.eup %5700  ;;  %v2793_v30 = vadd.f32 %v7287_v19, %v2634_v15  ;;  %v2635_v24 = vmul.f32 %v5699_v61, %v7141_v5  ;;  %5720 = vpow2.f32 %v4709_v39  ;;  %8097 = vst [vmem:[#allocation64_spill] sm:$0xff] %v7373_v25  ;;  %v4736_v5 = vmul.f32 -1.442695, %v7359_v60  ;;  %v7377_v19 = vld [vmem:[#allocation10 + $0x8] sm:$0x3f]  ;;  %v7379_v39 = vpop.f32.mrb[57].mxu1 }
 0x348   : > { %v5703_v32 = vpop.eup %5702  ;;  %v2780_v7 = vadd.f32 %v7289_v36, %v2633_v16  ;;  %v2646_v13 = vmul.f32 %v5701_v23, %v7152_v43  ;;  %5722 = vpow2.f32 %v4711_v11  ;;  %8098 = vst [vmem:[#allocation65_spill] sm:$0xff] %v7379_v39  ;;  %v4738_v11 = vmul.f32 -1.442695, %v7365_v2  ;;  %v7383_v47 = vpop.f32.mrb[58].mxu1  ;;  %v8102_v23 = vld [vmem:[#allocation25_spill] sm:$0xff] }
 0x349   : > { %v5705_v33 = vpop.eup %5704  ;;  %v2806_v37 = vadd.f32 %v2805_v46, %v2635_v24  ;;  %v2648_v3 = vmul.f32 %v5703_v32, %v7163_v22  ;;  %5724 = vpow2.f32 %v4722_v62  ;;  %8099 = vst [vmem:[#allocation66_spill] sm:$0xff] %v7383_v47  ;;  %v7388_v62 = vpop.f32.mrb[59].mxu1 }
 0x34a   : > { %v5707_v38 = vpop.eup %5706  ;;  %v2768_v36 = vadd.f32 %v2767_v57, %v2646_v13  ;;  %v2647_v43 = vmul.f32 %v5705_v33, %v7172_v56  ;;  %5726 = vpow2.f32 %v4724_v31  ;;  %8100 = vst [vmem:[#allocation67_spill] sm:$0xff] %v7388_v62  ;;  %v8101_v56 = vld [vmem:[#allocation24_spill] sm:$0xff] }
 0x34b   : > { %v5709_v40 = vpop.eup %5708  ;;  %v7385_v4 = vadd.f32 %v2793_v30, %v2648_v3  ;;  %v2649_v22 = vmul.f32 %v5707_v38, %v7179_v54  ;;  %5728 = vpow2.f32 %v4723_v27  ;;  %v7395_v31 = vrot.slane %v7377_v19, %v8101_v56 }
 0x34c   : > { %v5711_v0 = vpop.eup %5710  ;;  %v7390_v46 = vadd.f32 %v2780_v7, %v2647_v43  ;;  %v2660_v15 = vmul.f32 %v5709_v40, %v7186_v9  ;;  %5730 = vpow2.f32 %v4725_v29  ;;  %v7401_v54 = vrot.slane %v7377_v19, %v8102_v23  ;;  %v8103_v9 = vld [vmem:[#allocation40_spill] sm:$0xff]  ;;  %v8104_v29 = vld [vmem:[#allocation26_spill] sm:$0xff] }
 0x34d   : > { %v5713_v61 = vpop.eup %5712  ;;  %v7397_v57 = vadd.f32 %v2806_v37, %v2649_v22  ;;  %v2326_v16 = vadd.f32 1.0, %v5711_v0  ;;  %5732 = vpow2.f32 %v4736_v5  ;;  %v7407_v32 = vadd.f32 %v8103_v9, %v6967_v34  ;;  %v8105_v37 = vld [vmem:[#allocation27_spill] sm:$0xff]  ;;  %v7421_v34 = vpop.f32.mrb[60].mxu1 }
 0x34e   : > { %v5715_v30 = vpop.eup %5714  ;;  %v7403_v24 = vadd.f32 %v2768_v36, %v2660_v15  ;;  %v2325_v27 = vadd.f32 1.0, %v5713_v61  ;;  %5734 = vpow2.f32 %v4738_v11  ;;  %v7411_v33 = vrot.slane %v7377_v19, %v8104_v29  ;;  %v8106_v36 = vld [vmem:[#allocation41_spill] sm:$0xff]  ;;  %8107 = vst [vmem:[#allocation40_spill] sm:$0xff] %v7421_v34  ;;  %v7427_v0 = vpop.f32.mrb[61].mxu1 }
 0x34f   : > { %v5717_v7 = vpop.eup %5716  ;;  %5736 = vrcp.f32 %v2326_v16  ;;  %v2327_v13 = vadd.f32 1.0, %v5715_v30  ;;  %v7415_v3 = vrot.slane %v7377_v19, %v8105_v37  ;;  %v7419_v43 = vadd.f32 %v8106_v36, %v6974_v44  ;;  %8108 = vst [vmem:[#allocation41_spill] sm:$0xff] %v7427_v0  ;;  %v7434_v30 = vpop.f32.mrb[62].mxu1  ;;  %v8111_v36 = vld [vmem:[#allocation28_spill] sm:$0xff]  ;;  %v8113_v0 = vld [vmem:[#allocation42_spill] sm:$0xff] }
 0x350   : > { %v5719_v5 = vpop.eup %5718  ;;  %5738 = vrcp.f32 %v2325_v27  ;;  %v2338_v38 = vadd.f32 1.0, %v5717_v7  ;;  %v7425_v22 = vadd.f32 %v7082_v63, %v7395_v31  ;;  %v4737_v16 = vmul.f32 -1.442695, %v7407_v32  ;;  %8109 = vst [vmem:[#allocation68_spill] sm:$0xff] %v7434_v30 }
 0x351   : > { %v5721_v11 = vpop.eup %5720  ;;  %5740 = vrcp.f32 %v2327_v13  ;;  %v2340_v40 = vadd.f32 1.0, %v5719_v5  ;;  %v7432_v44 = vadd.f32 %v7084_v51, %v7401_v54  ;;  %v7438_v63 = vadd.f32 %v7088_v18, %v7411_v33  ;;  %v7444_v13 = vpop.f32.mrb[63].mxu1 }
 0x352   : > { %v5723_v15 = vpop.eup %5722  ;;  %5742 = vrcp.f32 %v2338_v38  ;;  %v2339_v61 = vadd.f32 1.0, %v5721_v11  ;;  %v7442_v7 = vadd.f32 %v7090_v28, %v7415_v3  ;;  %8110 = vst [vmem:[#allocation69_spill] sm:$0xff] %v7444_v13  ;;  %v4739_v51 = vmul.f32 -1.442695, %v7419_v43  ;;  %v8112_v28 = vld [vmem:[#allocation29_spill] sm:$0xff] }
 0x353   : > { %v5725_v27 = vpop.eup %5724  ;;  %5744 = vrcp.f32 %v2340_v40  ;;  %v2341_v9 = vadd.f32 1.0, %v5723_v15  ;;  %v7449_v11 = vadd.f32 %v8111_v36, %v7395_v31  ;;  %v4642_v15 = vmul.f32 -1.442695, %v7425_v22 }
 0x354   : > { %v5727_v5 = vpop.eup %5726  ;;  %5746 = vrcp.f32 %v2339_v61  ;;  %v2352_v38 = vadd.f32 1.0, %v5725_v27  ;;  %v7454_v30 = vadd.f32 %v8112_v28, %v7401_v54  ;;  %v4644_v27 = vmul.f32 -1.442695, %v7432_v44 }
 0x355   : > { %v5729_v40 = vpop.eup %5728  ;;  %5748 = vrcp.f32 %v2341_v9  ;;  %v2354_v18 = vadd.f32 1.0, %v5727_v5  ;;  %v7459_v34 = vadd.f32 %v8113_v0, %v7411_v33  ;;  %v4643_v9 = vmul.f32 -1.442695, %v7438_v63 }
 0x356   : > { %v5731_v13 = vpop.eup %5730  ;;  %5750 = vrcp.f32 %v2352_v38  ;;  %v2353_v61 = vadd.f32 1.0, %v5729_v40  ;;  %v4645_v5 = vmul.f32 -1.442695, %v7442_v7  ;;  %v4656_v38 = vmul.f32 -1.442695, %v7449_v11  ;;  %v8114_v40 = vld [vmem:[#allocation43_spill] sm:$0xff] }
 0x357   : > { %v5733_v36 = vpop.eup %5732  ;;  %5752 = vrcp.f32 %v2354_v18  ;;  %v2355_v62 = vadd.f32 1.0, %v5731_v13  ;;  %v7467_v39 = vadd.f32 %v8114_v40, %v7415_v3  ;;  %v4658_v18 = vmul.f32 -1.442695, %v7454_v30  ;;  %v8115_v13 = vld [vmem:[#allocation44_spill] sm:$0xff] }
 0x358   : > { %v5735_v47 = vpop.eup %5734  ;;  %5754 = vrcp.f32 %v2353_v61  ;;  %v2366_v28 = vadd.f32 1.0, %v5733_v36  ;;  %v7472_v14 = vadd.f32 %v8115_v13, %v7395_v31  ;;  %v4657_v61 = vmul.f32 -1.442695, %v7459_v34  ;;  %v8116_v36 = vld [vmem:[#allocation45_spill] sm:$0xff] }
 0x359   : > { %v5737_v25 = vpop.eup %5736  ;;  %5756 = vrcp.f32 %v2355_v62  ;;  %v2368_v0 = vadd.f32 1.0, %v5735_v47  ;;  %v7478_v56 = vadd.f32 %v8116_v36, %v7401_v54  ;;  %v8117_v47 = vld [vmem:[#allocation46_spill] sm:$0xff]  ;;  %v8118_v13 = vlaneseq }
 0x35a   : > { %v5739_v58 = vpop.eup %5738  ;;  %v2662_v23 = vmul.f32 %v5737_v25, %v7193_v1  ;;  %5758 = vrcp.f32 %v2366_v28  ;;  %v7483_v37 = vadd.f32 %v8117_v47, %v7411_v33  ;;  %v8119_v29 = vmov 0  ;;  %v8122_v28 = vld [vmem:[#allocation56_spill] sm:$0xff] }
 0x35b   : > { %v5741_v40 = vpop.eup %5740  ;;  %v2661_v62 = vmul.f32 %v5739_v58, %v7205_v35  ;;  %5760 = vrcp.f32 %v2368_v0  ;;  %vm7486_vm0 = vcmp.lt.s32.totalorder %v8118_v13, 768  ;;  %v4659_v36 = vmul.f32 -1.442695, %v7467_v39 }
 0x35c   : > { %v8120_v29 = vsel %vm7486_vm0, 4294967295, %v8119_v29  ;;  %v5743_v1 = vpop.eup %5742  ;;  %v2795_v25 = vadd.f32 %v7385_v4, %v2662_v23  ;;  %v2663_v17 = vmul.f32 %v5741_v40, %v8122_v28  ;;  %5762 = vpow2.f32 %v4737_v16 }
 0x35d   : > { %8121 = vst [vmem:[#allocation28_spill] sm:$0xff] %v8120_v29  ;;  %v6301_v35 = vmov 0.0   ;;  %v5745_v58 = vpop.eup %5744  ;;  %v2782_v0 = vadd.f32 %v7390_v46, %v2661_v62  ;;  %v2674_v47 = vmul.f32 %v5743_v1, %v7254_v6  ;;  %5764 = vpow2.f32 %v4739_v51 }
 0x35e   : > { %442 = vst.msk [vmem:[%s7493_s3 + $0x8] sm:$0x3f] %vm7486_vm0, %v6301_v35  ;;  %v4670_v4 = vmul.f32 -1.442695, %v7472_v14  ;;  %v5747_v23 = vpop.eup %5746  ;;  %v2808_v16 = vadd.f32 %v7397_v57, %v2663_v17  ;;  %v2676_v40 = vmul.f32 %v5745_v58, %v7299_v53  ;;  %5766 = vpow2.f32 %v4642_v15  ;;  %v8123_v17 = vld [vmem:[#allocation47_spill] sm:$0xff] }
 0x35f   : > { %v4672_v13 = vmul.f32 -1.442695, %v7478_v56  ;;  %v5749_v28 = vpop.eup %5748  ;;  %v2770_v29 = vadd.f32 %v7403_v24, %v2674_v47  ;;  %v2675_v35 = vmul.f32 %v5747_v23, %v7305_v42  ;;  %5768 = vpow2.f32 %v4644_v27  ;;  %v8124_v24 = vld [vmem:[#allocation48_spill] sm:$0xff] }
 0x360   : > { %v4671_v46 = vmul.f32 -1.442695, %v7483_v37  ;;  %v5751_v6 = vpop.eup %5750  ;;  %v2796_v51 = vadd.f32 %v2795_v25, %v2676_v40  ;;  %v2677_v62 = vmul.f32 %v5749_v28, %v7309_v10  ;;  %5770 = vpow2.f32 %v4643_v9  ;;  %v8125_v10 = vld [vmem:[#allocation49_spill] sm:$0xff] }
 0x361   : > { %v7510_v57 = vadd.f32 %v8123_v17, %v7415_v3  ;;  %v5753_v53 = vpop.eup %5752  ;;  %v2783_v15 = vadd.f32 %v2782_v0, %v2675_v35  ;;  %v2688_v1 = vmul.f32 %v5751_v6, %v7313_v50  ;;  %5772 = vpow2.f32 %v4645_v5  ;;  %v8126_v50 = vld [vmem:[#allocation50_spill] sm:$0xff] }
 0x362   : > { %v7515_v42 = vadd.f32 %v8124_v24, %v7395_v31  ;;  %v5755_v27 = vpop.eup %5754  ;;  %v2809_v58 = vadd.f32 %v2808_v16, %v2677_v62  ;;  %v2690_v25 = vmul.f32 %v5753_v53, %v7325_v59  ;;  %5774 = vpow2.f32 %v4656_v38 }
 0x363   : > { %v7520_v9 = vadd.f32 %v8125_v10, %v7401_v54  ;;  %v5757_v47 = vpop.eup %5756  ;;  %v2771_v23 = vadd.f32 %v2770_v29, %v2688_v1  ;;  %v2689_v0 = vmul.f32 %v5755_v27, %v7345_v55  ;;  %5776 = vpow2.f32 %v4658_v18  ;;  %v8127_v55 = vld [vmem:[#allocation51_spill] sm:$0xff] }
 0x364   : > { %v7525_v5 = vadd.f32 %v8126_v50, %v7411_v33  ;;  %v5759_v40 = vpop.eup %5758  ;;  %v2797_v28 = vadd.f32 %v2796_v51, %v2690_v25  ;;  %v2691_v16 = vmul.f32 %v5757_v47, %v7354_v49  ;;  %5778 = vpow2.f32 %v4657_v61  ;;  %v8129_v25 = vld [vmem:[#allocation52_spill] sm:$0xff] }
 0x365   : > { %v7529_v59 = vmul.f32 -1.442695, %v7510_v57  ;;  %v5761_v38 = vpop.eup %5760  ;;  %v7531_v35 = vadd.f32 %v2783_v15, %v2689_v0  ;;  %v2702_v29 = vmul.f32 %v5759_v40, %v7359_v60  ;;  %5780 = vpow2.f32 %v4659_v36  ;;  %v8130_v0 = vld [vmem:[#allocation53_spill] sm:$0xff] }
 0x366   : > { %v7536_v18 = vadd.f32 %v8127_v55, %v7415_v3  ;;  %v5763_v6 = vpop.eup %5762  ;;  %v7538_v62 = vadd.f32 %v2809_v58, %v2691_v16  ;;  %v2704_v51 = vmul.f32 %v5761_v38, %v7365_v2  ;;  %5782 = vpow2.f32 %v4670_v4 }
 0x367   : > { %v7542_v49 = vmul.f32 -1.442695, %v7515_v42  ;;  %v5765_v61 = vpop.eup %5764  ;;  %v2772_v17 = vadd.f32 %v2771_v23, %v2702_v29  ;;  %v2367_v53 = vadd.f32 1.0, %v5763_v6  ;;  %5784 = vpow2.f32 %v4672_v13 }
 0x368   : > { %v7545_v60 = vmul.f32 -1.442695, %v7520_v9  ;;  %v5767_v36 = vpop.eup %5766  ;;  %v8128_v15 = vcombine.low %v7316_v21, %v7320_v48  ;;  %v2798_v24 = vadd.f32 %v2797_v28, %v2704_v51  ;;  %v2369_v2 = vadd.f32 1.0, %v5765_v61 }
 0x369   : > { %5786 = vpow2.f32 %v4671_v46  ;;  %v5769_v4 = vpop.eup %5768  ;;  %v2773_v27 = vrot.slane %v2772_v17, 4  ;;  %v2272_v58 = vadd.f32 1.0, %v5767_v36  ;;  %v7555_v13 = vadd.f32 %v8129_v25, %v7395_v31 }
 0x36a   : > { %v7551_v1 = vrot.slane %v8128_v15, %v7128_v45  ;;  %5788 = vrcp.f32 %v2367_v53  ;;  %v5771_v10 = vpop.eup %5770  ;;  %v2799_v47 = vrot.slane %v2798_v24, 4  ;;  %v2274_v23 = vadd.f32 1.0, %v5769_v4  ;;  %v8132_v4 = vld [vmem:[#allocation54_spill] sm:$0xff] }
 0x36b   : > { %5790 = vrcp.f32 %v2369_v2  ;;  %v7559_v21 = vadd.f32 %v8130_v0, %v7401_v54  ;;  %v5773_v48 = vpop.eup %5772  ;;  %v2774_v50 = vadd.f32 %v2773_v27, %v2772_v17  ;;  %v2273_v46 = vadd.f32 1.0, %v5771_v10 }
 0x36c   : > { %5792 = vrcp.f32 %v2272_v58  ;;  %v7562_v40 = vmul.f32 -1.442695, %v7525_v5  ;;  %v5775_v28 = vpop.eup %5774  ;;  %v2800_v16 = vadd.f32 %v2799_v47, %v2798_v24  ;;  %v2275_v38 = vadd.f32 1.0, %v5773_v48  ;;  %v8134_v58 = vld [vmem:[#allocation55_spill] sm:$0xff] }
 0x36d   : > { %8131 = vst [vmem:[#allocation29_spill] sm:$0xff] %v7559_v21  ;;  %5794 = vrcp.f32 %v2274_v23  ;;  %v7565_v29 = vmul.f32 -1.442695, %v7536_v18  ;;  %v5777_v55 = vpop.eup %5776  ;;  %v2775_v6 = vrot.slane %v2774_v50, 2  ;;  %v2286_v51 = vadd.f32 1.0, %v5775_v28  ;;  %v8136_v28 = vld [vmem:[#allocation57_spill] sm:$0xff] }
 0x36e   : > { %5796 = vrcp.f32 %v2273_v46  ;;  %v7568_v61 = vmul.f32 -1.442695, %v7555_v13  ;;  %v5779_v17 = vpop.eup %5778  ;;  %v2801_v53 = vrot.slane %v2800_v16, 2  ;;  %v2288_v36 = vadd.f32 1.0, %v5777_v55  ;;  %v8137_v55 = vld [vmem:[#allocation58_spill] sm:$0xff] }
 0x36f   : > { %5798 = vrcp.f32 %v2275_v38  ;;  %v7571_v15 = vmul.f32 -1.442695, %v7559_v21  ;;  %v5781_v24 = vpop.eup %5780  ;;  %v2287_v2 = vadd.f32 1.0, %v5779_v17  ;;  %v7575_v27 = vadd.f32 %v8132_v4, %v7411_v33 }
 0x370   : > { %5800 = vrcp.f32 %v2286_v51  ;;  %v7579_v25 = vadd.f32 %v8134_v58, %v7415_v3  ;;  %v5783_v10 = vpop.eup %5782  ;;  %v2776_v47 = vadd.f32 %v2775_v6, %v2774_v50  ;;  %v2802_v23 = vadd.f32 %v2801_v53, %v2800_v16  ;;  %v8138_v58 = vld [vmem:[#allocation59_spill] sm:$0xff]  ;;  %v8140_v16 = vld [vmem:[#allocation60_spill] sm:$0xff] }
 0x371   : > { %8133 = vst [vmem:[#allocation42_spill] sm:$0xff] %v7575_v27  ;;  %5802 = vrcp.f32 %v2288_v36  ;;  %v2289_v0 = vadd.f32 1.0, %v5781_v24  ;;  %v5785_v48 = vpop.eup %5784  ;;  %v2300_v46 = vadd.f32 1.0, %v5783_v10  ;;  %v7583_v38 = vadd.f32 %v8136_v28, %v7395_v31 }
 0x372   : > { %8135 = vst [vmem:[#allocation43_spill] sm:$0xff] %v7579_v25  ;;  %5804 = vrcp.f32 %v2287_v2  ;;  %v7587_v51 = vadd.f32 %v8137_v55, %v7401_v54  ;;  %v2302_v4 = vadd.f32 1.0, %v5785_v48  ;;  %v7591_v50 = vadd.f32 %v8138_v58, %v7411_v33 }
 0x373   : > { %v5787_v17 = vpop.eup %5786  ;;  %5806 = vrcp.f32 %v2289_v0  ;;  %v7595_v6 = vadd.f32 %v8140_v16, %v7415_v3  ;;  %v4699_v24 = vmul.f32 -1.442695, %v7575_v27  ;;  %v4701_v2 = vmul.f32 -1.442695, %v7579_v25 }
 0x374   : > { %8139 = vst [vmem:[#allocation44_spill] sm:$0xff] %v7591_v50  ;;  %v5789_v53 = vpop.eup %5788  ;;  %5808 = vrcp.f32 %v2300_v46  ;;  %v2301_v36 = vadd.f32 1.0, %v5787_v17  ;;  %v2777_v28 = vrot.slane %v2776_v47, 1  ;;  %v2803_v55 = vrot.slane %v2802_v23, 1 }
 0x375   : > { %8141 = vst [vmem:[#allocation45_spill] sm:$0xff] %v7595_v6  ;;  %v5791_v10 = vpop.eup %5790  ;;  %v2703_v0 = vmul.f32 %v5789_v53, %v7407_v32  ;;  %5810 = vrcp.f32 %v2302_v4  ;;  %v4712_v16 = vmul.f32 -1.442695, %v7583_v38  ;;  %v4714_v26 = vmul.f32 -1.442695, %v7587_v51  ;;  %v8143_v53 = vld [vmem:[#allocation35_spill] sm:$0xff] }
 0x376   : > { %v5793_v48 = vpop.eup %5792  ;;  %v2705_v58 = vmul.f32 %v5791_v10, %v7419_v43  ;;  %5812 = vrcp.f32 %v2301_v36  ;;  %v4713_v25 = vmul.f32 -1.442695, %v7591_v50  ;;  %v4715_v27 = vmul.f32 -1.442695, %v7595_v6  ;;  %v8142_v43 = vld [vmem:[#allocation32_spill] sm:$0xff] }
 0x377   : > { %v5795_v46 = vpop.eup %5794  ;;  %v2785_v17 = vadd.f32 %v7531_v35, %v2703_v0  ;;  %5814 = vpow2.f32 %v7529_v59  ;;  %v7611_v4 = vadd.f32 %v8142_v43, %v7395_v31  ;;  %v7615_v36 = vadd.f32 %v8143_v53, %v7401_v54 }
 0x378   : > { %v5797_v21 = vpop.eup %5796  ;;  %v2811_v32 = vadd.f32 %v7538_v62, %v2705_v58  ;;  %5816 = vpow2.f32 %v7542_v49  ;;  %v7617_v10 = vadd.f32 %v2777_v28, %v2776_v47  ;;  %v7619_v59 = vadd.f32 %v2803_v55, %v2802_v23 }
 0x379   : > { %v5799_v35 = vpop.eup %5798  ;;  %v2786_v0 = vrot.slane %v2785_v17, 4  ;;  %5818 = vpow2.f32 %v7545_v60  ;;  %v2608_v49 = vmul.f32 %v5793_v48, %v7425_v22  ;;  %v2610_v58 = vmul.f32 %v5795_v46, %v7432_v44 }
 0x37a   : > { %v5801_v6 = vpop.eup %5800  ;;  %v2812_v62 = vrot.slane %v2811_v32, 4  ;;  %5820 = vpow2.f32 %v7562_v40  ;;  %v2609_v53 = vmul.f32 %v5797_v21, %v7438_v63  ;;  %v2611_v60 = vmul.f32 %v5799_v35, %v7442_v7 }
 0x37b   : > { %v5803_v43 = vpop.eup %5802  ;;  %v2787_v50 = vadd.f32 %v2786_v0, %v2785_v17  ;;  %v2622_v47 = vmul.f32 %v5801_v6, %v7449_v11  ;;  %5822 = vpow2.f32 %v7565_v29 }
 0x37c   : > { %v5805_v23 = vpop.eup %5804  ;;  %v2813_v28 = vadd.f32 %v2812_v62, %v2811_v32  ;;  %v2624_v55 = vmul.f32 %v5803_v43, %v7454_v30  ;;  %5824 = vpow2.f32 %v7568_v61 }
 0x37d   : > { %v5807_v22 = vpop.eup %5806  ;;  %v2788_v44 = vrot.slane %v2787_v50, 2  ;;  %v2818_v48 = vadd.f32 %v2622_v47, %v2608_v49  ;;  %v2623_v40 = vmul.f32 %v5805_v23, %v7459_v34  ;;  %5826 = vpow2.f32 %v7571_v15 }
 0x37e   : > { %v5809_v63 = vpop.eup %5808  ;;  %v2814_v21 = vrot.slane %v2813_v28, 2  ;;  %v2844_v11 = vadd.f32 %v2624_v55, %v2610_v58  ;;  %v2625_v29 = vmul.f32 %v5807_v22, %v7467_v39  ;;  %5828 = vpow2.f32 %v4699_v24 }
 0x37f   : > { %v5811_v6 = vpop.eup %5810  ;;  %v2789_v46 = vadd.f32 %v2788_v44, %v2787_v50  ;;  %v2831_v7 = vadd.f32 %v2623_v40, %v2609_v53  ;;  %v2636_v30 = vmul.f32 %v5809_v63, %v7472_v14  ;;  %5830 = vpow2.f32 %v4701_v2 }
 0x380   : > { %v5813_v61 = vpop.eup %5812  ;;  %v2815_v17 = vadd.f32 %v2814_v21, %v2813_v28  ;;  %v7635_v32 = vadd.f32 %v2625_v29, %v2611_v60  ;;  %v2638_v34 = vmul.f32 %v5811_v6, %v7478_v56  ;;  %5832 = vpow2.f32 %v4712_v16 }
 0x381   : > { %v5815_v15 = vpop.eup %5814  ;;  %v2790_v35 = vrot.slane %v2789_v46, 1  ;;  %v7638_v0 = vadd.f32 %v2818_v48, %v2636_v30  ;;  %v2637_v39 = vmul.f32 %v5813_v61, %v7483_v37  ;;  %5834 = vpow2.f32 %v4714_v26 }
 0x382   : > { %v5817_v24 = vpop.eup %5816  ;;  %v2816_v50 = vrot.slane %v2815_v17, 1  ;;  %v7641_v62 = vadd.f32 %v2844_v11, %v2638_v34  ;;  %v2303_v14 = vadd.f32 1.0, %v5815_v15  ;;  %5836 = vpow2.f32 %v4713_v25  ;;  %v8144_v25 = vld [vmem:[#allocation33_spill] sm:$0xff] }
 0x383   : > { %v5819_v2 = vpop.eup %5818  ;;  %v2791_v49 = vadd.f32 %v2790_v35, %v2789_v46  ;;  %v7643_v58 = vadd.f32 %v2831_v7, %v2637_v39  ;;  %v2314_v43 = vadd.f32 1.0, %v5817_v24  ;;  %5838 = vpow2.f32 %v4715_v27  ;;  %v8146_v39 = vld [vmem:[#allocation38_spill] sm:$0xff] }
 0x384   : > { %v5821_v56 = vpop.eup %5820  ;;  %v2817_v16 = vadd.f32 %v2816_v50, %v2815_v17  ;;  %5840 = vrcp.f32 %v2303_v14  ;;  %v2316_v53 = vadd.f32 1.0, %v5819_v2  ;;  %v7647_v37 = vadd.f32 %v7266_v52, %v7411_v33  ;;  %v8145_v17 = vld [vmem:[#allocation30_spill] sm:$0xff]  ;;  %v8147_v50 = vld [vmem:[#allocation61_spill] sm:$0xff] }
 0x385   : > { %v5823_v26 = vpop.eup %5822  ;;  %v2912_v47 = vcombine.low %v7617_v10, %v2791_v49  ;;  %5842 = vrcp.f32 %v2314_v43  ;;  %v2315_v23 = vadd.f32 1.0, %v5821_v56  ;;  %v7652_v28 = vadd.f32 %v8144_v25, %v7415_v3  ;;  %v8148_v49 = vld [vmem:[#allocation62_spill] sm:$0xff] }
 0x386   : > { %v5825_v60 = vpop.eup %5824  ;;  %v2913_v27 = vcombine.low %v7619_v59, %v2817_v16  ;;  %5844 = vrcp.f32 %v2316_v53  ;;  %v2317_v55 = vadd.f32 1.0, %v5823_v26  ;;  %v4726_v22 = vmul.f32 -1.442695, %v7611_v4 }
 0x387   : > { %v5827_v44 = vpop.eup %5826  ;;  %v2934_v52 = vrot.slane %v2912_v47, %v7128_v45  ;;  %5846 = vrcp.f32 %v2315_v23  ;;  %v2328_v48 = vadd.f32 1.0, %v5825_v60  ;;  %v4728_v10 = vmul.f32 -1.442695, %v7615_v36 }
 0x388   : > { %v5829_v40 = vpop.eup %5828  ;;  %v2941_v63 = vrot.slane %v2913_v27, %v7128_v45  ;;  %5848 = vrcp.f32 %v2317_v55  ;;  %v2330_v21 = vadd.f32 1.0, %v5827_v44  ;;  %v4727_v11 = vmul.f32 -1.442695, %v7647_v37 }
 0x389   : > { %v5831_v29 = vpop.eup %5830  ;;  %5850 = vrcp.f32 %v2328_v48  ;;  %v2329_v59 = vadd.f32 1.0, %v5829_v40  ;;  %v4729_v6 = vmul.f32 -1.442695, %v7652_v28  ;;  %v7663_v46 = vadd.f32 %v7272_v20, %v7395_v31 }
 0x38a   : > { %v5833_v7 = vpop.eup %5832  ;;  %v2943_v30 = vcombine.low %v2934_v52, %v2941_v63  ;;  %5852 = vrcp.f32 %v2330_v21  ;;  %v2331_v61 = vadd.f32 1.0, %v5831_v29  ;;  %v7667_v34 = vrot.slane %v7377_v19, %v8145_v17 }
 0x38b   : > { %v5835_v15 = vpop.eup %5834  ;;  %5854 = vrcp.f32 %v2329_v59  ;;  %v2342_v35 = vadd.f32 1.0, %v5833_v7  ;;  %v7671_v24 = vadd.f32 %v8146_v39, %v7401_v54  ;;  %v7675_v14 = vadd.f32 %v8147_v50, %v7411_v33  ;;  %v8149_v54 = vld [vmem:[#allocation31_spill] sm:$0xff] }
 0x38c   : > { %v5837_v20 = vpop.eup %5836  ;;  %v2957_v31 = vrot.slane %v2943_v30, %v7128_v45  ;;  %5856 = vrcp.f32 %v2331_v61  ;;  %v2344_v2 = vadd.f32 1.0, %v5835_v15  ;;  %v7680_v43 = vadd.f32 %v8148_v49, %v7415_v3  ;;  %v8154_v50 = vld [vmem:[#allocation43_spill] sm:$0xff] }
 0x38d   : > { %v5839_v56 = vpop.eup %5838  ;;  %5858 = vrcp.f32 %v2342_v35  ;;  %v2343_v16 = vadd.f32 1.0, %v5837_v20  ;;  %v4740_v53 = vmul.f32 -1.442695, %v7663_v46  ;;  %v7685_v26 = vrot.slane %v7377_v19, %v8149_v54  ;;  %v8153_v35 = vld [vmem:[#allocation42_spill] sm:$0xff] }
 0x38e   : > { %v5841_v33 = vpop.eup %5840  ;;  %v2958_v47 = vcombine.low %v7551_v1, %v2957_v31  ;;  %5860 = vrcp.f32 %v2344_v2  ;;  %v2345_v23 = vadd.f32 1.0, %v5839_v56  ;;  %v7690_v25 = vadd.f32 %v7291_v8, %v7667_v34 }
 0x38f   : > { %v5843_v3 = vpop.eup %5842  ;;  %v2639_v60 = vmul.f32 %v5841_v33, %v7510_v57  ;;  %5862 = vrcp.f32 %v2343_v16  ;;  %v4742_v27 = vmul.f32 -1.442695, %v7671_v24  ;;  %v4741_v55 = vmul.f32 -1.442695, %v7675_v14 }
 0x390   : > { %v5845_v19 = vpop.eup %5844  ;;  %v2650_v44 = vmul.f32 %v5843_v3, %v7515_v42  ;;  %5864 = vrcp.f32 %v2345_v23  ;;  %v4743_v1 = vmul.f32 -1.442695, %v7680_v43  ;;  %v7701_v57 = vadd.f32 %v7293_v41, %v7685_v26  ;;  %3003 = vst [vmem:[%s7493_s3] sm:$0xff] %v2958_v47 }
 0x391   : > { %v5847_v52 = vpop.eup %5846  ;;  %v2858_v48 = vadd.f32 %v7635_v32, %v2639_v60  ;;  %v2652_v8 = vmul.f32 %v5845_v19, %v7520_v9  ;;  %5866 = vpow2.f32 %v4726_v22  ;;  %v4646_v42 = vmul.f32 -1.442695, %v7690_v25 }
 0x392   : > { %v5849_v40 = vpop.eup %5848  ;;  %v2820_v63 = vadd.f32 %v7638_v0, %v2650_v44  ;;  %v2651_v21 = vmul.f32 %v5847_v52, %v7525_v5  ;;  %5868 = vpow2.f32 %v4728_v10  ;;  %v7711_v9 = vadd.f32 %v7295_v12, %v7667_v34  ;;  %v8150_v5 = vld [vmem:[#allocation34_spill] sm:$0xff]  ;;  %v8156_v52 = vld [vmem:[#allocation45_spill] sm:$0xff] }
 0x393   : > { %v5851_v29 = vpop.eup %5850  ;;  %v2846_v59 = vadd.f32 %v7641_v62, %v2652_v8  ;;  %v2653_v32 = vmul.f32 %v5849_v40, %v7536_v18  ;;  %5870 = vpow2.f32 %v4727_v11  ;;  %v7717_v10 = vadd.f32 %v8150_v5, %v7685_v26  ;;  %v8151_v62 = vld [vmem:[#allocation29_spill] sm:$0xff]  ;;  %v8152_v18 = vld [vmem:[#allocation36_spill] sm:$0xff] }
 0x394   : > { %v5853_v41 = vpop.eup %5852  ;;  %v2833_v22 = vadd.f32 %v7643_v58, %v2651_v21  ;;  %v2664_v0 = vmul.f32 %v5851_v29, %v7555_v13  ;;  %5872 = vpow2.f32 %v4729_v6  ;;  %v7722_v11 = vadd.f32 %v8152_v18, %v7667_v34 }
 0x395   : > { %v5855_v7 = vpop.eup %5854  ;;  %v2859_v30 = vadd.f32 %v2858_v48, %v2653_v32  ;;  %v2666_v61 = vmul.f32 %v5853_v41, %v8151_v62  ;;  %5874 = vpow2.f32 %v4740_v53  ;;  %v4647_v13 = vmul.f32 -1.442695, %v7701_v57  ;;  %v8160_v62 = vld [vmem:[#allocation24_spill] sm:$0xff] }
 0x396   : > { %v5857_v12 = vpop.eup %5856  ;;  %v2821_v15 = vadd.f32 %v2820_v63, %v2664_v0  ;;  %v2665_v58 = vmul.f32 %v5855_v7, %v8153_v35  ;;  %5876 = vpow2.f32 %v4742_v27  ;;  %v4660_v31 = vmul.f32 -1.442695, %v7711_v9  ;;  %v8161_v35 = vld [vmem:[#allocation25_spill] sm:$0xff] }
 0x397   : > { %v5859_v6 = vpop.eup %5858  ;;  %v2847_v39 = vadd.f32 %v2846_v59, %v2666_v61  ;;  %v2667_v20 = vmul.f32 %v5857_v12, %v8154_v50  ;;  %5878 = vpow2.f32 %v4741_v55  ;;  %v4661_v16 = vmul.f32 -1.442695, %v7717_v10  ;;  %v3012_v3 = vld [vmem:[%s7493_s3] sm:$0xff] }
 0x398   : > { %v5861_v2 = vpop.eup %5860  ;;  %v2834_v49 = vadd.f32 %v2833_v22, %v2665_v58  ;;  %v2678_v56 = vmul.f32 %v5859_v6, %v7583_v38  ;;  %5880 = vpow2.f32 %v4743_v1  ;;  %v4674_v23 = vmul.f32 -1.442695, %v7722_v11  ;;  %v8155_v55 = vld [vmem:[#allocation44_spill] sm:$0xff]  ;;  %v8159_v22 = vld [vmem:[#allocation27_spill] sm:$0xff] }
 0x399   : > { %v5863_v53 = vpop.eup %5862  ;;  %v2860_v33 = vadd.f32 %v2859_v30, %v2667_v20  ;;  %v2680_v47 = vmul.f32 %v5861_v2, %v7587_v51  ;;  %5882 = vpow2.f32 %v4646_v42  ;;  %v7736_v44 = vmul.f32 0.015625, %v3012_v3  ;;  %v8157_v51 = vld [vmem:[#allocation37_spill] sm:$0xff]  ;;  %v8158_v42 = vld [vmem:[#allocation26_spill] sm:$0xff]  ;;  %v5405_v20 = vld [vmem:[#allocation11 + $0x180] sm:$0xff]  }
 0x39a   : > { %v5865_v60 = vpop.eup %5864  ;;  %v7733_v27 = vadd.f32 %v2821_v15, %v2678_v56  ;;  %v2679_v19 = vmul.f32 %v5863_v53, %v8155_v55  ;;  %5884 = vpow2.f32 %v4647_v13  ;;  %v7743_v8 = vadd.f32 %v8157_v51, %v7685_v26  ;;  %v5404_v13 = vld [vmem:[#allocation11 + $0x100] sm:$0xff]  }
 0x39b   : > { %v5867_v38 = vpop.eup %5866  ;;  %v7738_v1 = vadd.f32 %v2847_v39, %v2680_v47  ;;  %v2681_v48 = vmul.f32 %v5865_v60, %v8156_v52  ;;  %5886 = vpow2.f32 %v4660_v31  ;;  %v3027_v29 = vrot.slane %v7736_v44, %v8158_v42  ;;  %3016 = vst [vmem:[%s7493_s3] sm:$0xff] %v7736_v44  ;;  %v5406_v47 = vld [vmem:[#allocation11 + $0x148] sm:$0xff]   ;;  %v8164_v60 = vld [vmem:[#allocation39_spill] sm:$0xff] }
 0x39c   : > { %v5869_v40 = vpop.eup %5868  ;;  %v7745_v63 = vadd.f32 %v2834_v49, %v2679_v19  ;;  %v2356_v21 = vadd.f32 1.0, %v5867_v38  ;;  %5888 = vpow2.f32 %v4661_v16  ;;  %v3035_v0 = vrot.slane %v7736_v44, %v8159_v22  ;;  %v8162_v16 = vld [vmem:[#allocation23_spill] sm:$0xff]  ;;  %v5407_v38 = vld [vmem:[#allocation11 + $0x1c8] sm:$0xff]  }
 0x39d   : > { %v5871_v59 = vpop.eup %5870  ;;  %v7751_v32 = vadd.f32 %v2860_v33, %v2681_v48  ;;  %v2358_v41 = vadd.f32 1.0, %v5869_v40  ;;  %5890 = vpow2.f32 %v4674_v23  ;;  %v3091_v30 = vpack.c.bf16 %v3027_v29, %v3027_v29  ;;  %v8165_v51 = vld [vmem:[#allocation63_spill] sm:$0xff]  ;;  %v5408_v29 = vld [vmem:[#allocation11 + $0x108] sm:$0xff]  }
 0x39e   : > { %v5873_v5 = vpop.eup %5872  ;;  %5892 = vrcp.f32 %v2356_v21  ;;  %v2357_v7 = vadd.f32 1.0, %v5871_v59  ;;  %v3023_v61 = vrot.slane %v7736_v44, %v8160_v62  ;;  %v3093_v15 = vpack.c.bf16 %v3035_v0, %v3035_v0  ;;  %v8166_v0 = vld [vmem:[#allocation64_spill] sm:$0xff] }
 0x39f   : > { %v5875_v18 = vpop.eup %5874  ;;  %5894 = vrcp.f32 %v2358_v41  ;;  %v2359_v12 = vadd.f32 1.0, %v5873_v5  ;;  %v3031_v58 = vrot.slane %v7736_v44, %v8161_v35  ;;  %4033 = vmatprep.mubr.bf16.mxu0 %v3091_v30  ;;  %v3043_v31 = vrot.slane %v7736_v44, %v8149_v54  ;;  %v5410_v30 = vld [vmem:[#allocation11 + $0x150] sm:$0xff]  }
 0x3a0   : > { %v5877_v6 = vpop.eup %5876  ;;  %5896 = vrcp.f32 %v2357_v7  ;;  %v2370_v39 = vadd.f32 1.0, %v5875_v18  ;;  %v3090_v50 = vpack.c.bf16 %v3023_v61, %v3023_v61  ;;  %4073 = vmatprep.mubr.bf16.mxu1 %v3093_v15  ;;  %v8163_v53 = vsub.s32 7, %v8162_v16  ;;  %v5409_v7 = vld [vmem:[#allocation11 + $0x188] sm:$0xff]   ;;  %v8167_v15 = vld [vmem:[#allocation65_spill] sm:$0xff] }
 0x3a1   : > { %v5879_v2 = vpop.eup %5878  ;;  %5898 = vrcp.f32 %v2359_v12  ;;  %v2372_v49 = vadd.f32 1.0, %v5877_v6  ;;  %v3092_v56 = vpack.c.bf16 %v3031_v58, %v3031_v58  ;;  %v7766_v55 = vadd.f32 %v8164_v60, %v7667_v34 }
 0x3a2   : > { %v3051_v33 = vrot.slane %v7736_v44, %v8163_v53  ;;  %v5881_v23 = vpop.eup %5880  ;;  %5900 = vrcp.f32 %v2370_v39  ;;  %v2371_v3 = vadd.f32 1.0, %v5879_v2  ;;  %4034 = vmatmul.mubr.bf16.vlgmr.msra.gmra.mrb[56].mxu0 %v3090_v50  ;;  %v3095_v19 = vpack.c.bf16 %v3043_v31, %v3043_v31  ;;  %v8169_v53 = vld [vmem:[#allocation67_spill] sm:$0xff] }
 0x3a3   : > { %v5883_v52 = vpop.eup %5882  ;;  %5902 = vrcp.f32 %v2372_v49  ;;  %v2373_v48 = vadd.f32 1.0, %v5881_v23  ;;  %v7770_v40 = vadd.f32 %v8165_v51, %v7685_v26  ;;  %4074 = vmatmul.mubr.bf16.vlgmr.msra.gmra.mrb[64].mxu1 %v3092_v56  ;;  %4920 = vmatpush3.bf16.msra.mxu0 %v5404_v13  ;;  %v7774_v5 = vadd.f32 %v8166_v0, %v7667_v34  ;;  %v5411_v13 = vld [vmem:[#allocation11 + $0x1d0] sm:$0xff]   ;;  %v5415_v0 = vld [vmem:[#allocation11 + $0x1d8] sm:$0xff]  }
 0x3a4   : > { %v3097_v21 = vpack.c.bf16 %v3051_v33, %v3051_v33  ;;  %v5885_v59 = vpop.eup %5884  ;;  %5904 = vrcp.f32 %v2371_v3  ;;  %v2276_v41 = vadd.f32 1.0, %v5883_v52  ;;  %4942 = vmatpush3.bf16.msra.mxu1 %v5405_v20  ;;  %4113 = vmatprep.mubr.bf16.mxu0 %v3095_v19  ;;  %v4675_v12 = vmul.f32 -1.442695, %v7743_v8  ;;  %v8168_v20 = vld [vmem:[#allocation66_spill] sm:$0xff]  ;;  %v8170_v19 = vld [vmem:[#allocation40_spill] sm:$0xff] }
 0x3a5   : > { %v5887_v61 = vpop.eup %5886  ;;  %5906 = vrcp.f32 %v2373_v48  ;;  %v2277_v18 = vadd.f32 1.0, %v5885_v59  ;;  %v7779_v58 = vadd.f32 %v8167_v15, %v7685_v26  ;;  %4921 = vmatprep.subr.bf16.mxu0 %v5406_v47  ;;  %v4688_v50 = vmul.f32 -1.442695, %v7766_v55  ;;  %4943 = vmatprep.subr.bf16.mxu1 %v5407_v38  ;;  %v5412_v47 = vld [vmem:[#allocation11 + $0x110] sm:$0xff]   ;;  %v5414_v48 = vld [vmem:[#allocation11 + $0x158] sm:$0xff]  }
 0x3a6   : > { %4153 = vmatprep.mubr.bf16.mxu1 %v3097_v21  ;;  %v5889_v6 = vpop.eup %5888  ;;  %5908 = vrcp.f32 %v2276_v41  ;;  %v2290_v39 = vadd.f32 1.0, %v5887_v61  ;;  %v7784_v31 = vadd.f32 %v8168_v20, %v7667_v34  ;;  %v4689_v56 = vmul.f32 -1.442695, %v7770_v40  ;;  %v5413_v38 = vld [vmem:[#allocation11 + $0x190] sm:$0xff]  }
 0x3a7   : > { %v5891_v2 = vpop.eup %5890  ;;  %5910 = vrcp.f32 %v2277_v18  ;;  %v2291_v49 = vadd.f32 1.0, %v5889_v6  ;;  %v7789_v33 = vadd.f32 %v8169_v53, %v7685_v26  ;;  %4922 = vmatpush3.bf16.msra.mxu0 %v5408_v29  ;;  %v4702_v60 = vmul.f32 -1.442695, %v7774_v5  ;;  %v8171_v59 = vld [vmem:[#allocation41_spill] sm:$0xff] }
 0x3a8   : > { %v5893_v23 = vpop.eup %5892  ;;  %5912 = vrcp.f32 %v2290_v39  ;;  %v2304_v3 = vadd.f32 1.0, %v5891_v2  ;;  %v7794_v52 = vadd.f32 %v8170_v19, %v7667_v34  ;;  %4944 = vmatpush3.bf16.msra.mxu1 %v5409_v7  ;;  %4923 = vmatprep.subr.bf16.mxu0 %v5410_v30  ;;  %v4703_v29 = vmul.f32 -1.442695, %v7779_v58  ;;  %v8172_v30 = vld [vmem:[#allocation68_spill] sm:$0xff] }
 0x3a9   : > { %v5895_v51 = vpop.eup %5894  ;;  %v2692_v21 = vmul.f32 %v5893_v23, %v7611_v4  ;;  %5914 = vrcp.f32 %v2291_v49  ;;  %v7800_v41 = vadd.f32 %v8171_v59, %v7685_v26  ;;  %4945 = vmatprep.subr.bf16.mxu1 %v5411_v13  ;;  %v4716_v7 = vmul.f32 -1.442695, %v7784_v31  ;;  %v5416_v13 = vld [vmem:[#allocation11 + $0x118] sm:$0xff]   ;;  %v5418_v23 = vld [vmem:[#allocation11 + $0x160] sm:$0xff]  }
 0x3aa   : > { %v5897_v61 = vpop.eup %5896  ;;  %v2694_v18 = vmul.f32 %v5895_v51, %v7615_v36  ;;  %5916 = vrcp.f32 %v2304_v3  ;;  %v7806_v15 = vadd.f32 %v8172_v30, %v7667_v34  ;;  %v4717_v20 = vmul.f32 -1.442695, %v7789_v33  ;;  %v5417_v34 = vld [vmem:[#allocation11 + $0x198] sm:$0xff]   ;;  %v5419_v3 = vld [vmem:[#allocation11 + $0x1e0] sm:$0xff]  }
 0x3ab   : > { %v5899_v4 = vpop.eup %5898  ;;  %v2823_v6 = vadd.f32 %v7733_v27, %v2692_v21  ;;  %v2693_v39 = vmul.f32 %v5897_v61, %v7647_v37  ;;  %5918 = vpow2.f32 %v4675_v12  ;;  %4924 = vmatpush3.bf16.msra.mxu0 %v5412_v47  ;;  %v4730_v53 = vmul.f32 -1.442695, %v7794_v52 }
 0x3ac   : > { %v5901_v2 = vpop.eup %5900  ;;  %v2849_v36 = vadd.f32 %v7738_v1, %v2694_v18  ;;  %v2695_v49 = vmul.f32 %v5899_v4, %v7652_v28  ;;  %5920 = vpow2.f32 %v4688_v50  ;;  %4946 = vmatpush3.bf16.msra.mxu1 %v5413_v38  ;;  %4925 = vmatprep.subr.bf16.mxu0 %v5414_v48  ;;  %v4731_v47 = vmul.f32 -1.442695, %v7800_v41  ;;  %v5423_v18 = vld [vmem:[#allocation11 + $0x1e8] sm:$0xff]  }
 0x3ad   : > { %v5903_v27 = vpop.eup %5902  ;;  %v2836_v37 = vadd.f32 %v7745_v63, %v2693_v39  ;;  %v2706_v12 = vmul.f32 %v5901_v2, %v7663_v46  ;;  %5922 = vpow2.f32 %v4689_v56  ;;  %4947 = vmatprep.subr.bf16.mxu1 %v5415_v0  ;;  %v4744_v19 = vmul.f32 -1.442695, %v7806_v15  ;;  %v8173_v46 = vld [vmem:[#allocation69_spill] sm:$0xff]  ;;  %v5420_v56 = vld [vmem:[#allocation11 + $0x120] sm:$0xff]  }
 0x3ae   : > { %v5905_v1 = vpop.eup %5904  ;;  %v2862_v28 = vadd.f32 %v7751_v32, %v2695_v49  ;;  %v2708_v50 = vmul.f32 %v5903_v27, %v7671_v24  ;;  %5924 = vpow2.f32 %v4702_v60  ;;  %v7823_v63 = vadd.f32 %v8173_v46, %v7685_v26  ;;  %v5421_v24 = vld [vmem:[#allocation11 + $0x1a0] sm:$0xff]   ;;  %v5422_v60 = vld [vmem:[#allocation11 + $0x168] sm:$0xff]   ;;  %v5426_v27 = vld [vmem:[#allocation11 + $0x170] sm:$0xff]  }
 0x3af   : > { %v5907_v38 = vpop.eup %5906  ;;  %v2824_v48 = vadd.f32 %v2823_v6, %v2706_v12  ;;  %v2707_v51 = vmul.f32 %v5905_v1, %v7675_v14  ;;  %5926 = vpow2.f32 %v4703_v29  ;;  %4926 = vmatpush3.bf16.msra.mxu0 %v5416_v13  ;;  %v7828_v0 = vrot.slane %v7736_v44, %v8145_v17 }
 0x3b0   : > { %v5909_v21 = vpop.eup %5908  ;;  %v2850_v59 = vadd.f32 %v2849_v36, %v2708_v50  ;;  %v2709_v32 = vmul.f32 %v5907_v38, %v7680_v43  ;;  %5928 = vpow2.f32 %v4716_v7  ;;  %4948 = vmatpush3.bf16.msra.mxu1 %v5417_v34  ;;  %4927 = vmatprep.subr.bf16.mxu0 %v5418_v23  ;;  %v5424_v36 = vld [vmem:[#allocation11 + $0x128] sm:$0xff]  }
 0x3b1   : > { %v5911_v14 = vpop.eup %5910  ;;  %v2825_v29 = vrot.slane %v2824_v48, 4  ;;  %v2837_v61 = vadd.f32 %v2836_v37, %v2707_v51  ;;  %v2612_v26 = vmul.f32 %v5909_v21, %v7690_v25  ;;  %5930 = vpow2.f32 %v4717_v20  ;;  %4949 = vmatprep.subr.bf16.mxu1 %v5419_v3  ;;  %v5425_v23 = vld [vmem:[#allocation11 + $0x1a8] sm:$0xff]  }
 0x3b2   : > { %v5913_v30 = vpop.eup %5912  ;;  %v2851_v4 = vrot.slane %v2850_v59, 4  ;;  %v2863_v43 = vadd.f32 %v2862_v28, %v2709_v32  ;;  %v2613_v7 = vmul.f32 %v5911_v14, %v7701_v57  ;;  %5932 = vpow2.f32 %v4730_v53 }
 0x3b3   : > { %v5915_v6 = vpop.eup %5914  ;;  %v2826_v39 = vadd.f32 %v2825_v29, %v2824_v48  ;;  %v2838_v13 = vrot.slane %v2837_v61, 4  ;;  %v2626_v2 = vmul.f32 %v5913_v30, %v7711_v9  ;;  %5934 = vpow2.f32 %v4731_v47  ;;  %4928 = vmatpush3.bf16.msra.mxu0 %v5420_v56  ;;  %v5427_v9 = vld [vmem:[#allocation11 + $0x1f0] sm:$0xff]  }
 0x3b4   : > { %v5917_v49 = vpop.eup %5916  ;;  %v2852_v34 = vadd.f32 %v2851_v4, %v2850_v59  ;;  %v2864_v25 = vrot.slane %v2863_v43, 4  ;;  %v2627_v20 = vmul.f32 %v5915_v6, %v7717_v10  ;;  %5936 = vpow2.f32 %v4744_v19  ;;  %4950 = vmatpush3.bf16.msra.mxu1 %v5421_v24  ;;  %4929 = vmatprep.subr.bf16.mxu0 %v5422_v60  ;;  %v5428_v56 = vld [vmem:[#allocation11 + $0x130] sm:$0xff]   ;;  %v5430_v60 = vld [vmem:[#allocation11 + $0x178] sm:$0xff]  }
 0x3b5   : > { %v5919_v57 = vpop.eup %5918  ;;  %v2827_v53 = vrot.slane %v2826_v39, 2  ;;  %v2839_v37 = vadd.f32 %v2838_v13, %v2837_v61  ;;  %v2870_v12 = vadd.f32 %v2626_v2, %v2612_v26  ;;  %v2640_v3 = vmul.f32 %v5917_v49, %v7722_v11  ;;  %4951 = vmatprep.subr.bf16.mxu1 %v5423_v18  ;;  %v5429_v24 = vld [vmem:[#allocation11 + $0x1b0] sm:$0xff]   ;;  %v5431_v18 = vld [vmem:[#allocation11 + $0x1f8] sm:$0xff]  }
 0x3b6   : > { %v5921_v47 = vpop.eup %5920  ;;  %v2853_v1 = vrot.slane %v2852_v34, 2  ;;  %v2865_v28 = vadd.f32 %v2864_v25, %v2863_v43  ;;  %v7835_v50 = vadd.f32 %v2627_v20, %v2613_v7  ;;  %v2305_v38 = vadd.f32 1.0, %v5919_v57 }
 0x3b7   : > { %v5923_v10 = vpop.eup %5922  ;;  %v2828_v19 = vadd.f32 %v2827_v53, %v2826_v39  ;;  %v2840_v48 = vrot.slane %v2839_v37, 2  ;;  %v7837_v51 = vadd.f32 %v2870_v12, %v2640_v3  ;;  %v2318_v46 = vadd.f32 1.0, %v5921_v47  ;;  %4930 = vmatpush3.bf16.msra.mxu0 %v5424_v36  ;;  %v5432_v36 = vld [vmem:[#allocation11 + $0x138] sm:$0xff]  }
 0x3b8   : > { %v5925_v21 = vpop.eup %5924  ;;  %v2854_v59 = vadd.f32 %v2853_v1, %v2852_v34  ;;  %v2866_v32 = vrot.slane %v2865_v28, 2  ;;  %5938 = vrcp.f32 %v2305_v38  ;;  %v2319_v11 = vadd.f32 1.0, %v5923_v10  ;;  %4952 = vmatpush3.bf16.msra.mxu1 %v5425_v23  ;;  %4931 = vmatprep.subr.bf16.mxu0 %v5426_v27  ;;  %v5433_v23 = vld [vmem:[#allocation11 + $0x1b8] sm:$0xff]   ;;  %v5434_v27 = vld [vmem:[#allocation11 + $0x240] sm:$0xff]  }
 0x3b9   : > { %v5927_v14 = vpop.eup %5926  ;;  %v2829_v29 = vrot.slane %v2828_v19, 1  ;;  %v2841_v61 = vadd.f32 %v2840_v48, %v2839_v37  ;;  %5940 = vrcp.f32 %v2318_v46  ;;  %v2332_v26 = vadd.f32 1.0, %v5925_v21  ;;  %4953 = vmatprep.subr.bf16.mxu1 %v5427_v9  ;;  %v5435_v9 = vld [vmem:[#allocation11 + $0x2c0] sm:$0xff]  }
 0x3ba   : > { %v5929_v30 = vpop.eup %5928  ;;  %v2855_v4 = vrot.slane %v2854_v59, 1  ;;  %v2867_v43 = vadd.f32 %v2866_v32, %v2865_v28  ;;  %5942 = vrcp.f32 %v2319_v11  ;;  %v2333_v7 = vadd.f32 1.0, %v5927_v14  ;;  %v5436_v48 = vld [vmem:[#allocation11 + $0x200] sm:$0xff]   ;;  %v5439_v32 = vld [vmem:[#allocation11 + $0x2c8] sm:$0xff]  }
 0x3bb   : > { %v5931_v6 = vpop.eup %5930  ;;  %v2830_v39 = vadd.f32 %v2829_v29, %v2828_v19  ;;  %v2842_v13 = vrot.slane %v2841_v61, 1  ;;  %5944 = vrcp.f32 %v2332_v26  ;;  %v2346_v2 = vadd.f32 1.0, %v5929_v30  ;;  %4932 = vmatpush3.bf16.msra.mxu0 %v5428_v56  ;;  %v5438_v56 = vld [vmem:[#allocation11 + $0x248] sm:$0xff]   ;;  %v5442_v30 = vld [vmem:[#allocation11 + $0x250] sm:$0xff]  }
 0x3bc   : > { %v5933_v49 = vpop.eup %5932  ;;  %v2856_v34 = vadd.f32 %v2855_v4, %v2854_v59  ;;  %v2868_v25 = vrot.slane %v2867_v43, 1  ;;  %5946 = vrcp.f32 %v2333_v7  ;;  %v2347_v20 = vadd.f32 1.0, %v5931_v6  ;;  %4954 = vmatpush3.bf16.msra.mxu1 %v5429_v24  ;;  %4933 = vmatprep.subr.bf16.mxu0 %v5430_v60 }
 0x3bd   : > { %v5935_v57 = vpop.eup %5934  ;;  %v2843_v53 = vadd.f32 %v2842_v13, %v2841_v61  ;;  %5948 = vrcp.f32 %v2346_v2  ;;  %v2360_v37 = vadd.f32 1.0, %v5933_v49  ;;  %4955 = vmatprep.subr.bf16.mxu1 %v5431_v18  ;;  %v8174_v12 = vsub.s32 6, %v8162_v16  ;;  %v5441_v18 = vld [vmem:[#allocation11 + $0x288] sm:$0xff]   ;;  %v5444_v49 = vld [vmem:[#allocation11 + $0x210] sm:$0xff]  }
 0x3be   : > { %v5937_v47 = vpop.eup %5936  ;;  %v2869_v1 = vadd.f32 %v2868_v25, %v2867_v43  ;;  %5950 = vrcp.f32 %v2347_v20  ;;  %v2361_v28 = vadd.f32 1.0, %v5935_v57  ;;  %v4745_v38 = vmul.f32 -1.442695, %v7823_v63 }
 0x3bf   : > { %v3047_v3 = vrot.slane %v7736_v44, %v8174_v12  ;;  %v2959_v10 = vcombine.low %v2830_v39, %v2843_v53  ;;  %5952 = vrcp.f32 %v2360_v37  ;;  %v2374_v19 = vadd.f32 1.0, %v5937_v47  ;;  %4934 = vmatpush3.bf16.msra.mxu0 %v5432_v36  ;;  %v5437_v44 = vld [vmem:[#allocation11 + $0x280] sm:$0xff]  }
 0x3c0   : > { %v2960_v46 = vcombine.low %v2856_v34, %v2869_v1  ;;  %5954 = vrcp.f32 %v2361_v28  ;;  %4956 = vmatpush3.bf16.msra.mxu1 %v5433_v23  ;;  %v3094_v16 = vpack.c.bf16 %v7828_v0, %v7828_v0  ;;  %4963 = vmatprep.subr.bf16.mxu0 %v5434_v27  ;;  %v5440_v0 = vld [vmem:[#allocation11 + $0x208] sm:$0xff]   ;;  %v5449_v28 = vld [vmem:[#allocation11 + $0x298] sm:$0xff]  }
 0x3c1   : > { %v7846_v21 = vrot.slane %v2959_v10, %v7128_v45  ;;  %5956 = vrcp.f32 %v2374_v19  ;;  %v3096_v59 = vpack.c.bf16 %v3047_v3, %v3047_v3  ;;  %4985 = vmatprep.subr.bf16.mxu1 %v5435_v9  ;;  %v5451_v19 = vld [vmem:[#allocation11 + $0x2e0] sm:$0xff]  }
 0x3c2   : > { %v5939_v11 = vpop.eup %5938  ;;  %v7849_v24 = vrot.slane %v2960_v46, %v7128_v45  ;;  %5958 = vpow2.f32 %v4745_v38  ;;  %4114 = vmatmul.mubr.bf16.vlgmr.msra.gmra.mrb[60].mxu0 %v3094_v16  ;;  %v5454_v46 = vld [vmem:[#allocation11 + $0x268] sm:$0xff]  }
 0x3c3   : > { %v5941_v60 = vpop.eup %5940  ;;  %v2641_v14 = vmul.f32 %v5939_v11, %v7743_v8  ;;  %4154 = vmatmul.mubr.bf16.vlgmr.msra.gmra.mrb[68].mxu1 %v3096_v59  ;;  %4964 = vmatpush3.bf16.msra.mxu0 %v5436_v48  ;;  %v5443_v8 = vld [vmem:[#allocation11 + $0x2d0] sm:$0xff]   ;;  %v5455_v16 = vld [vmem:[#allocation11 + $0x2e8] sm:$0xff]  }
 0x3c4   : > { %v5943_v29 = vpop.eup %5942  ;;  %v2983_v61 = vcombine.low %v7846_v21, %v7849_v24  ;;  %v2654_v26 = vmul.f32 %v5941_v60, %v7766_v55  ;;  %4986 = vmatpush3.bf16.msra.mxu1 %v5437_v44  ;;  %4965 = vmatprep.subr.bf16.mxu0 %v5438_v56  ;;  %v5457_v56 = vld [vmem:[#allocation11 + $0x2a8] sm:$0xff]   ;;  %v5458_v59 = vld [vmem:[#allocation11 + $0x270] sm:$0xff]  }
 0x3c5   : > { %v5945_v4 = vpop.eup %5944  ;;  %v2884_v43 = vadd.f32 %v7835_v50, %v2641_v14  ;;  %v2655_v7 = vmul.f32 %v5943_v29, %v7770_v40  ;;  %4987 = vmatprep.subr.bf16.mxu1 %v5439_v32  ;;  %v5445_v40 = vld [vmem:[#allocation11 + $0x290] sm:$0xff]   ;;  %v5446_v50 = vld [vmem:[#allocation11 + $0x258] sm:$0xff]  }
 0x3c6   : > { %v5947_v6 = vpop.eup %5946  ;;  %v2872_v39 = vadd.f32 %v7837_v51, %v2654_v26  ;;  %v2668_v13 = vmul.f32 %v5945_v4, %v7774_v5  ;;  %v5447_v5 = vld [vmem:[#allocation11 + $0x2d8] sm:$0xff]   ;;  %v5459_v32 = vld [vmem:[#allocation11 + $0x2f0] sm:$0xff]  }
 0x3c7   : > { %v5949_v2 = vpop.eup %5948  ;;  %v2885_v36 = vadd.f32 %v2884_v43, %v2655_v7  ;;  %v2669_v55 = vmul.f32 %v5947_v6, %v7779_v58  ;;  %4966 = vmatpush3.bf16.msra.mxu0 %v5440_v0  ;;  %v5460_v60 = vld [vmem:[#allocation11 + $0x230] sm:$0xff]   ;;  %v5462_v0 = vld [vmem:[#allocation11 + $0x278] sm:$0xff]  }
 0x3c8   : > { %v5951_v34 = vpop.eup %5950  ;;  %v2873_v25 = vadd.f32 %v2872_v39, %v2668_v13  ;;  %v2682_v20 = vmul.f32 %v5949_v2, %v7784_v31  ;;  %4988 = vmatpush3.bf16.msra.mxu1 %v5441_v18  ;;  %4967 = vmatprep.subr.bf16.mxu0 %v5442_v30  ;;  %v5448_v31 = vld [vmem:[#allocation11 + $0x218] sm:$0xff]   ;;  %v5461_v14 = vld [vmem:[#allocation11 + $0x2b0] sm:$0xff]  }
 0x3c9   : > { %v5953_v23 = vpop.eup %5952  ;;  %v2886_v27 = vadd.f32 %v2885_v36, %v2669_v55  ;;  %v2683_v51 = vmul.f32 %v5951_v34, %v7789_v33  ;;  %4989 = vmatprep.subr.bf16.mxu1 %v5443_v8  ;;  %v5450_v33 = vld [vmem:[#allocation11 + $0x260] sm:$0xff]   ;;  %v5463_v26 = vld [vmem:[#allocation11 + $0x2f8] sm:$0xff]  }
 0x3ca   : > { %v5955_v57 = vpop.eup %5954  ;;  %v2874_v53 = vadd.f32 %v2873_v25, %v2682_v20  ;;  %v2696_v58 = vmul.f32 %v5953_v23, %v7794_v52  ;;  %v5452_v52 = vld [vmem:[#allocation11 + $0x220] sm:$0xff]   ;;  %v5464_v4 = vld [vmem:[#allocation11 + $0x238] sm:$0xff]  }
 0x3cb   : > { %v5957_v37 = vpop.eup %5956  ;;  %v2887_v12 = vadd.f32 %v2886_v27, %v2683_v51  ;;  %v2697_v3 = vmul.f32 %v5955_v57, %v7800_v41  ;;  %4968 = vmatpush3.bf16.msra.mxu0 %v5444_v49  ;;  %v5453_v41 = vld [vmem:[#allocation11 + $0x2a0] sm:$0xff]   ;;  %v5465_v7 = vld [vmem:[#allocation11 + $0x2b8] sm:$0xff]  }
 0x3cc   : > { %v5959_v9 = vpop.eup %5958  ;;  %v2875_v47 = vadd.f32 %v2874_v53, %v2696_v58  ;;  %v2710_v1 = vmul.f32 %v5957_v37, %v7806_v15  ;;  %4990 = vmatpush3.bf16.msra.mxu1 %v5445_v40  ;;  %4969 = vmatprep.subr.bf16.mxu0 %v5446_v50  ;;  %v5456_v15 = vld [vmem:[#allocation11 + $0x228] sm:$0xff]   ;;  %v5466_v8 = vld [vmem:[#allocation11 + $0x340] sm:$0xff]   ;;  %v2990_v40 = vrot.slane %v2983_v61, %v7128_v45 }
 0x3cd   : > { %v2888_v38 = vadd.f32 %v2887_v12, %v2697_v3  ;;  %v2375_v10 = vadd.f32 1.0, %v5959_v9  ;;  %4991 = vmatprep.subr.bf16.mxu1 %v5447_v5  ;;  %v2713_v23 = vld [vmem:[%s7493_s3 + $0x8] sm:$0x3f]  ;;  %v5467_v3 = vld [vmem:[#allocation11 + $0x300] sm:$0xff]  }
 0x3ce   : > { %v2876_v48 = vadd.f32 %v2875_v47, %v2710_v1  ;;  %v5468_v47 = vld [vmem:[#allocation11 + $0x348] sm:$0xff]   ;;  %v5473_v1 = vld [vmem:[#allocation11 + $0x318] sm:$0xff]  }
 0x3cf   : > { %5960 = vrcp.f32 %v2375_v10  ;;  %4970 = vmatpush3.bf16.msra.mxu0 %v5448_v31  ;;  %v5477_v10 = vld [vmem:[#allocation11 + $0x328] sm:$0xff]  }
 0x3d0   : > { %4992 = vmatpush3.bf16.msra.mxu1 %v5449_v28  ;;  %4971 = vmatprep.subr.bf16.mxu0 %v5450_v33  ;;  %v2877_v44 = vrot.slane %v2876_v48, 4  ;;  %v5474_v28 = vld [vmem:[#allocation11 + $0x360] sm:$0xff]  }
 0x3d1   : > { %4993 = vmatprep.subr.bf16.mxu1 %v5451_v19  ;;  %v5475_v33 = vld [vmem:[#allocation11 + $0x320] sm:$0xff]   ;;  %v5478_v19 = vld [vmem:[#allocation11 + $0x370] sm:$0xff]  }
 0x3d2   : > { %v2878_v11 = vadd.f32 %v2877_v44, %v2876_v48  ;;  %v5479_v48 = vld [vmem:[#allocation11 + $0x330] sm:$0xff]  }
 0x3d3   : > { %4972 = vmatpush3.bf16.msra.mxu0 %v5452_v52  ;;  %v5480_v52 = vld [vmem:[#allocation11 + $0x378] sm:$0xff]  }
 0x3d4   : > { %4994 = vmatpush3.bf16.msra.mxu1 %v5453_v41  ;;  %4973 = vmatprep.subr.bf16.mxu0 %v5454_v46  ;;  %v2879_v18 = vrot.slane %v2878_v11, 2  ;;  %v5481_v41 = vld [vmem:[#allocation11 + $0x338] sm:$0xff]  }
 0x3d5   : > { %4995 = vmatprep.subr.bf16.mxu1 %v5455_v16 }
 0x3d6   : > { %v2880_v6 = vadd.f32 %v2879_v18, %v2878_v11 }
 0x3d7   : > { %4974 = vmatpush3.bf16.msra.mxu0 %v5456_v15 }
 0x3d8   : > { %4996 = vmatpush3.bf16.msra.mxu1 %v5457_v56  ;;  %4975 = vmatprep.subr.bf16.mxu0 %v5458_v59  ;;  %v2881_v2 = vrot.slane %v2880_v6, 1  ;;  %v3328_v56 = vld [vmem:[#allocation13] sm:$0x1] }
 0x3d9   : > { %v5961_v29 = vpop.eup %5960  ;;  %4997 = vmatprep.subr.bf16.mxu1 %v5459_v32 }
 0x3da   : > { %v2711_v30 = vmul.f32 %v5961_v29, %v7823_v63  ;;  %v2882_v55 = vadd.f32 %v2881_v2, %v2880_v6 }
 0x3db   : > { %4976 = vmatpush3.bf16.msra.mxu0 %v5460_v60 }
 0x3dc   : > { %v2889_v43 = vadd.f32 %v2888_v38, %v2711_v30  ;;  %4998 = vmatpush3.bf16.msra.mxu1 %v5461_v14  ;;  %4977 = vmatprep.subr.bf16.mxu0 %v5462_v0  ;;  %v5476_v38 = vld [vmem:[#allocation11 + $0x368] sm:$0xff]  }
 0x3dd   : > { %4999 = vmatprep.subr.bf16.mxu1 %v5463_v26 }
 0x3de   : > { %v2890_v39 = vrot.slane %v2889_v43, 4 }
 0x3df   : > { %4978 = vmatpush3.bf16.msra.mxu0 %v5464_v4 }
 0x3e0   : > { %v2891_v13 = vadd.f32 %v2890_v39, %v2889_v43  ;;  %5000 = vmatpush3.bf16.msra.mxu1 %v5465_v7  ;;  %5007 = vmatprep.subr.bf16.mxu0 %v5466_v8 }
 0x3e2   : > { %v2892_v36 = vrot.slane %v2891_v13, 2 }
 0x3e4   : > { %v2893_v63 = vadd.f32 %v2892_v36, %v2891_v13 }
 0x3e6   : > { %v2894_v49 = vrot.slane %v2893_v63, 1 }
 0x3e8   : > { %v2895_v34 = vadd.f32 %v2894_v49, %v2893_v63 }
 0x3ea   : > { %v2961_v25 = vcombine.low %v2882_v55, %v2895_v34 }
 0x3ec   : > { %v2982_v20 = vrot.slane %v2961_v25, %v7128_v45 }
 0x3ee   : > { %v2997_v50 = vrot.slane %v2982_v20, %v7128_v45 }
 0x3f0   : > { %v2998_v27 = vcombine.low %v2990_v40, %v2997_v50 }
 0x3f2   : > { %v3002_v51 = vadd.f32 %v2998_v27, %v2713_v23 }
 0x3f4   : > { %3008 = vst.msk [vmem:[%s7493_s3 + $0x8] sm:$0x3f] %vm7486_vm0, %v3002_v51 }
 0x3fb   : > { %v3013_v57 = vld [vmem:[%s7493_s3 + $0x8] sm:$0x3f] }
 0x3fc   : > { %v3015_v53 = vmul.f32 0.015625, %v3013_v57 }
 0x3fe   : > { %v3059_v58 = vrot.slane %v3015_v53, %v8158_v42  ;;  %3017 = vst.msk [vmem:[%s7493_s3 + $0x8] sm:$0x3f] %vm7486_vm0, %v3015_v53  ;;  %v3067_v37 = vrot.slane %v3015_v53, %v8159_v22  ;;  %v3055_v21 = vrot.slane %v3015_v53, %v8160_v62  ;;  %v3063_v24 = vrot.slane %v3015_v53, %v8161_v35  ;;  %v5469_v22 = vld [vmem:[#allocation11 + $0x308] sm:$0xff]   ;;  %v5470_v62 = vld [vmem:[#allocation11 + $0x350] sm:$0xff]  }
 0x3ff   : > { %v3075_v45 = vrot.slane %v3015_v53, %v8149_v54  ;;  %v5471_v35 = vld [vmem:[#allocation11 + $0x310] sm:$0xff]   ;;  %v5472_v54 = vld [vmem:[#allocation11 + $0x358] sm:$0xff]   ;;  %v3071_v46 = vrot.slane %v3015_v53, %v8145_v17 }
 0x400   : > { %v3099_v61 = vpack.c.bf16 %v3059_v58, %v3059_v58  ;;  %v3101_v12 = vpack.c.bf16 %v3067_v37, %v3067_v37  ;;  %v3098_v31 = vpack.c.bf16 %v3055_v21, %v3055_v21  ;;  %v3100_v9 = vpack.c.bf16 %v3063_v24, %v3063_v24 }
 0x401   : > { %v3103_v42 = vpack.c.bf16 %v3075_v45, %v3075_v45  ;;  %v3102_v16 = vpack.c.bf16 %v3071_v46, %v3071_v46 }
 0x402   : > { %4193 = vmatprep.mubr.bf16.mxu0 %v3099_v61  ;;  %4233 = vmatprep.mubr.bf16.mxu1 %v3101_v12 }
 0x403   : > { %4194 = vmatmul.mubr.bf16.vlgmr.msra.gmra.mrb[64].mxu0 %v3098_v31  ;;  %4234 = vmatmul.mubr.bf16.vlgmr.msra.gmra.mrb[72].mxu1 %v3100_v9 }
 0x404   : > { %5008 = vmatpush3.bf16.msra.mxu0 %v5467_v3  ;;  %4273 = vmatprep.mubr.bf16.mxu0 %v3103_v42 }
 0x405   : > { %5009 = vmatprep.subr.bf16.mxu0 %v5468_v47 }
 0x408   : > { %5010 = vmatpush3.bf16.msra.mxu0 %v5469_v22 }
 0x409   : > { %5011 = vmatprep.subr.bf16.mxu0 %v5470_v62 }
 0x40c   : > { %5012 = vmatpush3.bf16.msra.mxu0 %v5471_v35 }
 0x40d   : > { %5013 = vmatprep.subr.bf16.mxu0 %v5472_v54 }
 0x410   : > { %5014 = vmatpush3.bf16.msra.mxu0 %v5473_v1 }
 0x411   : > { %5015 = vmatprep.subr.bf16.mxu0 %v5474_v28 }
 0x414   : > { %5016 = vmatpush3.bf16.msra.mxu0 %v5475_v33 }
 0x415   : > { %5017 = vmatprep.subr.bf16.mxu0 %v5476_v38 }
 0x418   : > { %5018 = vmatpush3.bf16.msra.mxu0 %v5477_v10 }
 0x419   : > { %5019 = vmatprep.subr.bf16.mxu0 %v5478_v19 }
 0x41c   : > { %5020 = vmatpush3.bf16.msra.mxu0 %v5479_v48 }
 0x41d   : > { %5021 = vmatprep.subr.bf16.mxu0 %v5480_v52 }
 0x420   : > { %5022 = vmatpush3.bf16.msra.mxu0 %v5481_v41 }
 0x423   : > { %4274 = vmatmul.mubr.bf16.vlgmr.msra.gmra.mrb[68].mxu0 %v3102_v16 }
 0x475   : > { %v4891_v44 = vpop.f32.mrb[56].mxu0 }
 0x476   : > { %v4913_v15 = vpop.f32.mrb[64].mxu1  ;;  %v4892_v59 = vpop.f32.mrb[57].mxu0 }
 0x477   : > { %v4893_v32 = vadd.f32 %v4892_v59, %v4891_v44  ;;  %v4914_v11 = vpop.f32.mrb[65].mxu1  ;;  %v4894_v60 = vpop.f32.mrb[58].mxu0 }
 0x478   : > { %v4915_v14 = vadd.f32 %v4914_v11, %v4913_v15  ;;  %v4916_v0 = vpop.f32.mrb[66].mxu1  ;;  %v4895_v29 = vpop.f32.mrb[59].mxu0 }
 0x479   : > { %v4036_v26 = vadd.f32 %v4893_v32, %v3328_v56  ;;  %v4917_v18 = vpop.f32.mrb[67].mxu1 }
 0x47b   : > { %v4076_v17 = vadd.f32 %v4915_v14, %v4036_v26 }
 0x47c   : > { %6173 = shalt.err (!%p6170_p8)
}
 0x47d   : > { %s6174_s21 = scalar_lea.hbm %s7891_s23, 224  ;;  %s6178_s2 = scalar_lea.hbm %s7972_s7, 448 }
 0x47e   : > { %p6175_p1 = scmp.ne.s32.totalorder %s7891_s23, %s6174_s21  ;;  %p6179_p13 = scmp.lt.u32.totalorder %s7891_s23, %s7972_s7 }
 0x47f   : > { %p6180_p11 = scmp.lt.u32.totalorder %s6178_s2, %s6174_s21  ;;  %p6182_p2 = scmp.lt.u32.totalorder %s6174_s21, %s7891_s23 }
 0x480   : > { %p6176_p3 = pnand %p6175_p1, %p8176_p9 }
 0x481   : > { %p6181_p4 = por %p6180_p11, %p6179_p13 }
 0x482   : > { %p6177_p6 = pneg %p6176_p3 }
 0x483   : > { %p6183_p10 = por %p6182_p2, %p6181_p4 }
 0x485   : > { %p6184_p12 = pnand %p6183_p10, %p6177_p6 }
 0x487   : > { %6187 = shalt.err (!%p6184_p12)
}
 0x488   : > { %5081 = dma.vmem_to_hbm [thread:$0]  (%p8176_p9), %s4302_s13, 224, %s7891_s23, %s4283_s18  }
 0x489   : > { %s4859_s13 = sshll.u32 %s6278_s30, 4  ;;  %s430_s1 = scalar_lea.vmem [#allocation15], %s6636_s25 }
 0x48a   : > { %s4314_s19 = sshll.u32 %s430_s1, 4  ;;  %s8177_s16 = sld [smem:[#allocation73_spill]]  ;;  %s7918_s19 = int_to_ptr.vmem [resolvable:$true] %s4314_s19 }
 0x48b   : > { %s4288_s11 = scalar_lea.sflag [#allocation16], %s6636_s25  ;;  %s6188_s14 = scalar_lea.vmem %s7918_s19, 16 }
 0x48c   : > { %p6189_p0 = scmp.ne.s32.totalorder %s7918_s19, %s6188_s14  ;;  %s6303_s30 = smov [#allocation15]  }
 0x48d   : > { %s6192_s21 = sshll.u32 %s6303_s30, 4  ;;  %s6193_s21 = int_to_ptr.vmem [resolvable:$false] %s6192_s21 }
 0x48e   : > { %p6190_p7 = pnand %p6189_p0, %p8176_p9  ;;  %s6194_s24 = scalar_lea.vmem %s6193_s21, 32 }
 0x48f   : > { %p6195_p8 = scmp.lt.s32.totalorder %s7918_s19, %s6193_s21  ;;  %p6196_p1 = scmp.lt.s32.totalorder %s6194_s24, %s6188_s14 }
 0x490   : > { %s7916_s17 = scalar_lea.hbm %s8177_s16, %s4859_s13  ;;  %p6191_p5 = pneg %p6190_p7 }
 0x491   : > { %p6197_p3 = por %p6196_p1, %p6195_p8 }
 0x493   : > { %p6198_p6 = pnand %p6197_p3, %p6191_p5 }
 0x495   : > { %v4935_v30 = vpop.f32.mrb[60].mxu0 }
 0x496   : > { %v4957_v4 = vpop.f32.mrb[68].mxu1  ;;  %v4936_v43 = vpop.f32.mrb[61].mxu0 }
 0x497   : > { %v4937_v7 = vadd.f32 %v4936_v43, %v4935_v30  ;;  %v4958_v8 = vpop.f32.mrb[69].mxu1  ;;  %v4938_v6 = vpop.f32.mrb[62].mxu0 }
 0x498   : > { %v4959_v39 = vadd.f32 %v4958_v8, %v4957_v4  ;;  %v4960_v13 = vpop.f32.mrb[70].mxu1  ;;  %v4939_v2 = vpop.f32.mrb[63].mxu0 }
 0x499   : > { %v4116_v36 = vadd.f32 %v4937_v7, %v4076_v17  ;;  %v4961_v63 = vpop.f32.mrb[71].mxu1 }
 0x49b   : > { %v4156_v55 = vadd.f32 %v4959_v39, %v4116_v36 }
 0x4d6   : > { %v4979_v49 = vpop.f32.mrb[64].mxu0  ;;  %v5001_v34 = vpop.f32.mrb[72].mxu1 }
 0x4d7   : > { %v4980_v25 = vpop.f32.mrb[65].mxu0  ;;  %v5002_v20 = vpop.f32.mrb[73].mxu1 }
 0x4d8   : > { %v4981_v40 = vadd.f32 %v4980_v25, %v4979_v49  ;;  %v5003_v50 = vadd.f32 %v5002_v20, %v5001_v34  ;;  %v4982_v23 = vpop.f32.mrb[66].mxu0  ;;  %v5004_v27 = vpop.f32.mrb[74].mxu1 }
 0x4d9   : > { %v4983_v51 = vpop.f32.mrb[67].mxu0  ;;  %v5005_v5 = vpop.f32.mrb[75].mxu1 }
 0x4da   : > { %v4196_v57 = vadd.f32 %v4981_v40, %v4156_v55 }
 0x4dc   : > { %v4236_v53 = vadd.f32 %v5003_v50, %v4196_v57 }
 0x4f6   : > { %v5023_v58 = vpop.f32.mrb[68].mxu0 }
 0x4f7   : > { %v5024_v37 = vpop.f32.mrb[69].mxu0 }
 0x4f8   : > { %v5025_v21 = vadd.f32 %v5024_v37, %v5023_v58  ;;  %v5026_v24 = vpop.f32.mrb[70].mxu0 }
 0x4f9   : > { %v5027_v45 = vpop.f32.mrb[71].mxu0 }
 0x4fa   : > { %v4276_v61 = vadd.f32 %v5025_v21, %v4236_v53 }
 0x4fc   : > { %4281 = vst [vmem:[%s430_s1] sm:$0x1] %v4276_v61 }
 0x4fd   : > { %6201 = shalt.err (!%p6198_p6)
}
 0x4fe   : > { %s6202_s25 = scalar_lea.hbm %s7916_s17, 16  ;;  %s6206_s3 = scalar_lea.hbm %s8177_s16, 32 }
 0x4ff   : > { %p6203_p13 = scmp.ne.s32.totalorder %s7916_s17, %s6202_s25  ;;  %p6207_p2 = scmp.lt.u32.totalorder %s7916_s17, %s8177_s16 }
 0x500   : > { %p6208_p10 = scmp.lt.u32.totalorder %s6206_s3, %s6202_s25  ;;  %p6210_p0 = scmp.lt.u32.totalorder %s6202_s25, %s7916_s17 }
 0x501   : > { %p6204_p11 = pnand %p6203_p13, %p8176_p9 }
 0x502   : > { %p6209_p12 = por %p6208_p10, %p6207_p2 }
 0x503   : > { %p6205_p4 = pneg %p6204_p11 }
 0x504   : > { %p6211_p7 = por %p6210_p0, %p6209_p12 }
 0x506   : > { %p6212_p5 = pnand %p6211_p7, %p6205_p4 }
 0x508   : > { %6215 = shalt.err (!%p6212_p5)
}
 0x509   : > { %5082 = dma.vmem_to_hbm [thread:$0]  (%p8176_p9), %s7918_s19, 16, %s7916_s17, %s4288_s11  }
 0x50a PF: > { %s4326_s1 = sand.u32 1, %s6266_s27   ;;  %p8178_p8 = scmp.ne.s32.totalorder %s8032_s26, 0 }
 0x50b   : > { %p8179_p1 = scmp.ge.s32.totalorder %s6286_s10, 2  ;;  %s4327_s23 = scalar_lea.sflag [#allocation4], %s4326_s1 }
 0x50d   : > { %p5109_p3 = pnand %p8179_p1, %p8178_p8 }
 0x50f   : > { %6257 = dma.done.wait (!%p5109_p3), %s4327_s23, 224  }
 0x510   : > { %6259 = vsyncadd (!%p5109_p3), %s4327_s23, 4294967072  ;;  %s4336_s18 = scalar_lea.sflag [#allocation16], %s4326_s1 }
 0x511   : > { %6261 = dma.done.wait (!%p5109_p3), %s4336_s18, 16  }
 0x512   : > { %6263 = vsyncadd (!%p5109_p3), %s4336_s18, 4294967280  ;;  %s31_s10 = sadd.s32 1, %s6286_s10   ;;  %s8180_s27 = smov %s6270_s28 }
 0x513   : > { %p28_p6 = scmp.ge.s32.totalorder %s31_s10, 4   ;;  %s8181_s28 = smov %s6274_s29 }
 0x514   : > { %s8182_s29 = smov %s6580_s8  ;;  %s8183_s30 = smov %s6282_s9 }
 0x515   : > { %s8184_s9 = smov %s8186_s15  ;;  %30 = sbr.rel (!%p28_p6) target bundleno = 16 (0x10), region = 142 }
 0x51c   :  { %4340 = vsyncpa [#allocation3], 1 }
 0x51d   :  { %4342 = vsyncpa [#allocation3 + $0x1], 1 }
 0x51e   :  { %4343 = vsyncpa [#allocation6], 1 }
 0x51f   :  { %4344 = vsyncpa [#allocation9], 1 }
 0x520   :  { %4345 = vsyncpa [#allocation12], 1 }
 0x521   :  { %4346 = vsyncpa [#allocation4], 1 }
 0x522   :  { %4348 = vsyncpa [#allocation4 + $0x1], 1 }
 0x523   :  { %4349 = vsyncpa [#allocation16], 1 }
 0x524   :  { %4351 = vsyncpa [#allocation16 + $0x1], 1 }

</bundles_post_ra>
